<compile_context>
chip_gen: v7x
topology: tpu7x:2x2x1
jax: 0.10.0
libtpu: 0.0.40
codegen_flags: <defaults>
</compile_context>

<pallas_src>
import numpy as np
import jax
import jax.numpy as jnp
from jax.experimental import pallas as pl
from jax.experimental.pallas import tpu as pltpu


# ----------------------------------------------------------------------------
# Pallas kernel: analytic embedding + Karatsuba complex matmul + <Z> readout.
# ----------------------------------------------------------------------------
def _quantum_kernel(x_ref, bits_ref, ma_ref, mb_ref, mab_ref, zsign_ref, out_ref):
    B, n = x_ref.shape          # (batch tile, num_qubits)
    D = ma_ref.shape[0]         # 2 ** num_qubits

    x = x_ref[...].astype(jnp.float32)
    c = jnp.cos(0.5 * x)        # (B, n)
    s = jnp.sin(0.5 * x)

    # Per-qubit bit masks, computed once (table holds exactly 0.0 / 1.0).
    bits = bits_ref[...] != 0.0                    # (n, D) bool

    # --- AngleEmbedding applied to |0..0>, analytically (pure VPU):
    #     amp_j = prod_q [ cos(x_q/2) if bit_q(j)==0 else -i*sin(x_q/2) ]
    re = jnp.ones((B, D), jnp.float32)
    im = jnp.zeros((B, D), jnp.float32)
    for q in range(n):
        bit = bits[q:q + 1, :]                     # (1, D), broadcasts over batch
        cq = c[:, q:q + 1]                         # (B, 1)
        sq = s[:, q:q + 1]
        mag = jnp.where(bit, sq, cq)               # (B, D)
        nmag = jnp.where(bit, -sq, cq)             # sign folded into (B,1) operand
        re, im = mag * jnp.where(bit, im, re), nmag * jnp.where(bit, re, im)
    # TODO(synk): for n >= ~10, build the amplitudes by Kronecker doubling
    # (widths 2,4,...,D) to cut the VPU work from O(n*B*D) to O(B*D).

    # --- Folded BasicEntanglerLayers: (re + i*im) @ (A + i*B), Karatsuba form:
    #     P1 = re@A, P2 = im@B, P3 = (re+im)@(A+B); real = P1-P2, imag = P3-P1-P2.
    p1 = jnp.dot(re, ma_ref[...], preferred_element_type=jnp.float32)
    p2 = jnp.dot(im, mb_ref[...], preferred_element_type=jnp.float32)
    p3 = jnp.dot(re + im, mab_ref[...], preferred_element_type=jnp.float32)
    re_o = p1 - p2
    im_o = p3 - p1 - p2

    # --- <Z_w> = sum_j |amp_j|^2 * (+1 if bit_w(j)==0 else -1), lane-dense (D,128)
    prob = re_o * re_o + im_o * im_o
    out_ref[...] = jnp.dot(prob, zsign_ref[...], preferred_element_type=jnp.float32)


# ----------------------------------------------------------------------------
# Host/XLA-side constant construction (batch-independent, amortized).
# ----------------------------------------------------------------------------
def _round_up(a, m):
    return ((a + m - 1) // m) * m


def _pick_batch_tile(B):
    """Batch tile: big tiles to amortize per-step overhead; >=2 steps for megacore."""
    if B < 128:
        return _round_up(max(B, 1), 8)
    half = -(-B // 2)
    return min(512, _round_up(half, 8))


def _cnot_ring_perm(n):
    """Composed index map f of the BasicEntanglerLayers CNOT ring: new[f[j]] = old[j]."""
    D = 2 ** n
    idx = np.arange(D)
    if n == 1:
        pairs = []
    elif n == 2:
        pairs = [(0, 1)]
    else:
        pairs = [(i, (i + 1) % n) for i in range(n)]
    f = idx.copy()
    for (ctrl, tgt) in pairs:
        f = f ^ (((f >> ctrl) & 1) << tgt)
    return f


def _fold_entangler(weights, num_qubits):
    """Fold ALL BasicEntanglerLayers into one complex matrix M = A + iB.

    Row-state convention: state_new = state @ M.  Built by pushing the rows of
    the identity through the per-layer gate maps (weights-only, O(L*n*D^2)
    precompute amortized over the whole batch).
    """
    n = num_qubits
    D = 2 ** n
    L = weights.shape[0]
    idx = np.arange(D)
    flip = [idx ^ (1 << q) for q in range(n)]      # RX pairing j <-> j ^ 2^q
    f = _cnot_ring_perm(n)
    f_inv = np.argsort(f)

    w = weights.astype(jnp.float32)
    cw = jnp.cos(0.5 * w)
    sw = jnp.sin(0.5 * w)

    re = jnp.eye(D, dtype=jnp.float32)
    im = jnp.zeros((D, D), jnp.float32)
    for l in range(L):
        for q in range(n):
            c, s = cw[l, q], sw[l, q]
            re_p = re[:, flip[q]]
            im_p = im[:, flip[q]]
            # RX on row-states: new[j] = c*old[j] - i*s*old[j ^ 2^q]
            re, im = c * re + s * im_p, c * im - s * re_p
        # CNOT ring permutation on row-states: new[f[j]] = old[j]
        re = re[:, f_inv]
        im = im[:, f_inv]
    return re, im


def _measurement_and_bit_tables(num_qubits, lane_pad):
    n = num_qubits
    D = 2 ** n
    idx = np.arange(D)
    bits = np.stack([(idx >> q) & 1 for q in range(n)], axis=0).astype(np.float32)  # (n, D)
    zsign = np.zeros((D, lane_pad), np.float32)                                     # (D, 128)
    zsign[:, :n] = (1.0 - 2.0 * bits.T)
    return bits, zsign


def quantum_layer_forward(x, weights):
    """QuantumLayer forward: x (B, n) angles -> (B, n) <Z> expectation values."""
    B, n = x.shape
    D = 2 ** n
    NP = max(128, _round_up(n, 128))               # lane-dense readout width

    ma, mb = _fold_entangler(weights, n)           # (D, D) f32 each
    mab = ma + mb                                  # Karatsuba third operand
    bits_np, zsign_np = _measurement_and_bit_tables(n, NP)
    bits = jnp.asarray(bits_np)
    zsign = jnp.asarray(zsign_np)

    tb = _pick_batch_tile(B)
    bp = _round_up(B, tb)
    x_f32 = x.astype(jnp.float32)
    if bp != B:
        x_f32 = jnp.pad(x_f32, ((0, bp - B), (0, 0)))

    # Circuit constants stay VMEM-resident (block index (0,0) every step).
    # Single-buffer them once double-buffering would meaningfully eat VMEM.
    const_bytes = (3 * D * D + n * D + D * NP) * 4
    single_buffer = 2 * const_bytes > (16 << 20)
    const_kwargs = dict(pipeline_mode=pl.Buffered(1)) if single_buffer else {}

    def const_spec(shape):
        return pl.BlockSpec(shape, lambda i: (0, 0), **const_kwargs)

    vmem_need = ((1 if single_buffer else 2) * const_bytes
                 + 2 * (tb * n + tb * NP) * 4       # pipelined x / out tiles
                 + 12 * tb * D * 4                  # in-kernel f32 temporaries
                 + (4 << 20))
    vmem_limit = int(min(max(vmem_need, 32 << 20), 110 << 20))

    out = pl.pallas_call(
        _quantum_kernel,
        out_shape=jax.ShapeDtypeStruct((bp, NP), jnp.float32),
        grid=(bp // tb,),
        in_specs=[
            pl.BlockSpec((tb, n), lambda i: (i, 0)),   # per-sample angles (pipelined)
            const_spec((n, D)),                        # bit table
            const_spec((D, D)),                        # A  = Re(folded entangler)
            const_spec((D, D)),                        # B  = Im(folded entangler)
            const_spec((D, D)),                        # A + B
            const_spec((D, NP)),                       # Z-sign readout (lane padded)
        ],
        out_specs=pl.BlockSpec((tb, NP), lambda i: (i, 0)),
        compiler_params=pltpu.CompilerParams(
            dimension_semantics=("parallel",),
            vmem_limit_bytes=vmem_limit),
    )(x_f32, bits, ma, mb, mab, zsign)
    return out[:B, :n]


# ----------------------------------------------------------------------------
# Independent numpy reference (complex statevector, gate-by-gate application).
# ----------------------------------------------------------------------------
def _ref_forward_np(x, weights):
    x = np.asarray(x, np.float64)
    w = np.asarray(weights, np.float64)
    B, n = x.shape
    L = w.shape[0]
    D = 2 ** n
    idx = np.arange(D)

    def apply_1q(state, gate, q):
        st = state.reshape(B, 2 ** (n - 1 - q), 2, 2 ** q)
        a0, a1 = st[:, :, 0, :], st[:, :, 1, :]
        n0 = gate[0, 0] * a0 + gate[0, 1] * a1
        n1 = gate[1, 0] * a0 + gate[1, 1] * a1
        return np.stack([n0, n1], axis=2).reshape(B, D)

    def rx_gate(theta):
        c, s = np.cos(theta / 2.0), np.sin(theta / 2.0)
        return np.array([[c, -1j * s], [-1j * s, c]], np.complex128)

    def apply_cnot(state, c, t):
        f = idx ^ (((idx >> c) & 1) << t)
        new = np.empty_like(state)
        new[:, f] = state
        return new

    state = np.zeros((B, D), np.complex128)
    state[:, 0] = 1.0

    # AngleEmbedding: per-sample RX(x[b, q]) on wire q.
    for q in range(n):
        c = np.cos(x[:, q] / 2.0)[:, None, None]
        s = np.sin(x[:, q] / 2.0)[:, None, None]
        st = state.reshape(B, 2 ** (n - 1 - q), 2, 2 ** q)
        a0, a1 = st[:, :, 0, :], st[:, :, 1, :]
        n0 = c * a0 + (-1j * s) * a1
        n1 = (-1j * s) * a0 + c * a1
        state = np.stack([n0, n1], axis=2).reshape(B, D)

    if n == 1:
        pairs = []
    elif n == 2:
        pairs = [(0, 1)]
    else:
        pairs = [(i, (i + 1) % n) for i in range(n)]
    for l in range(L):
        for q in range(n):
            state = apply_1q(state, rx_gate(w[l, q]), q)
        for (c, t) in pairs:
            state = apply_cnot(state, c, t)

    prob = np.abs(state) ** 2
    zsign = np.stack([1.0 - 2.0 * ((idx >> q) & 1) for q in range(n)], axis=1)
    return prob @ zsign


if __name__ == "__main__":
    num_qubits = 8
    num_qlayers = 2
    batch = 8

    key = jax.random.PRNGKey(0)
    kx, kw = jax.random.split(key)
    # inputs: angles (e.g. pooled image features scaled to radians)
    x = jax.random.uniform(kx, (batch, num_qubits), jnp.float32,
                           minval=-np.pi, maxval=np.pi)
    # TorchLayer default init for BasicEntanglerLayers weights: U(0, 2*pi)
    weights = jax.random.uniform(kw, (num_qlayers, num_qubits), jnp.float32,
                                 minval=0.0, maxval=2.0 * np.pi)

    out = quantum_layer_forward(x, weights)
    out = jax.block_until_ready(out)

    ref = _ref_forward_np(np.asarray(x), np.asarray(weights))
    assert out.shape == (batch, num_qubits)
    np.testing.assert_allclose(np.asarray(out), ref, rtol=1e-4, atol=2e-4)

    print("KERNEL_OK")
</pallas_src>

<mosaic_0001>
module attributes {stable_mosaic.version = 11 : i64} {
  func.func @_quantum_kernel(%arg0: i32, %arg1: memref<8x8xf32, #tpu.memory_space<vmem>>, %arg2: memref<8x256xf32, #tpu.memory_space<vmem>>, %arg3: memref<256x256xf32, #tpu.memory_space<vmem>>, %arg4: memref<256x256xf32, #tpu.memory_space<vmem>>, %arg5: memref<256x256xf32, #tpu.memory_space<vmem>>, %arg6: memref<256x128xf32, #tpu.memory_space<vmem>>, %arg7: memref<8x128xf32, #tpu.memory_space<vmem>>) attributes {dimension_semantics = [#tpu.dimension_semantics<parallel>], iteration_bounds = array<i64: 1>, scalar_prefetch = 0 : i64, scratch_operands = 0 : i64, tpu.core_type = #tpu.core_type<tc>, window_params = [{transform_indices = @transform_0, window_bounds = array<i64: 8, 8>}, {pipeline_mode = #tpu.pipeline_mode<synchronous>, transform_indices = @transform_1, window_bounds = array<i64: 8, 256>}, {pipeline_mode = #tpu.pipeline_mode<synchronous>, transform_indices = @transform_2, window_bounds = array<i64: 256, 256>}, {pipeline_mode = #tpu.pipeline_mode<synchronous>, transform_indices = @transform_3, window_bounds = array<i64: 256, 256>}, {pipeline_mode = #tpu.pipeline_mode<synchronous>, transform_indices = @transform_4, window_bounds = array<i64: 256, 256>}, {pipeline_mode = #tpu.pipeline_mode<synchronous>, transform_indices = @transform_5, window_bounds = array<i64: 256, 128>}, {transform_indices = @transform_6, window_bounds = array<i64: 8, 128>}]} {
    %c0 = arith.constant 0 : index
    %c0_0 = arith.constant 0 : index
    %0 = vector.load %arg1[%c0, %c0_0] : memref<8x8xf32, #tpu.memory_space<vmem>>, vector<8x8xf32>
    %cst = arith.constant 5.000000e-01 : f32
    %1 = vector.broadcast %cst : f32 to vector<8x8xf32>
    %2 = arith.mulf %1, %0 : vector<8x8xf32>
    %3 = math.cos %2 : vector<8x8xf32>
    %cst_1 = arith.constant 5.000000e-01 : f32
    %4 = vector.broadcast %cst_1 : f32 to vector<8x8xf32>
    %5 = arith.mulf %4, %0 : vector<8x8xf32>
    %6 = math.sin %5 : vector<8x8xf32>
    %c0_2 = arith.constant 0 : index
    %c0_3 = arith.constant 0 : index
    %7 = vector.load %arg2[%c0_2, %c0_3] : memref<8x256xf32, #tpu.memory_space<vmem>>, vector<8x256xf32>
    %cst_4 = arith.constant 0.000000e+00 : f32
    %8 = vector.broadcast %cst_4 : f32 to vector<8x256xf32>
    %9 = arith.cmpf one, %7, %8 : vector<8x256xf32>
    %cst_5 = arith.constant 1.000000e+00 : f32
    %10 = vector.broadcast %cst_5 : f32 to vector<8x256xf32>
    %cst_6 = arith.constant 0.000000e+00 : f32
    %11 = vector.broadcast %cst_6 : f32 to vector<8x256xf32>
    %12 = vector.extract_strided_slice %9 {offsets = [0, 0], sizes = [1, 256], strides = [1, 1]} : vector<8x256xi1> to vector<1x256xi1>
    %13 = vector.extract_strided_slice %3 {offsets = [0, 0], sizes = [8, 1], strides = [1, 1]} : vector<8x8xf32> to vector<8x1xf32>
    %14 = vector.extract_strided_slice %6 {offsets = [0, 0], sizes = [8, 1], strides = [1, 1]} : vector<8x8xf32> to vector<8x1xf32>
    %15 = vector.shape_cast %12 : vector<1x256xi1> to vector<1x256xi1>
    %16 = vector.broadcast %15 : vector<1x256xi1> to vector<8x256xi1>
    %17 = vector.shape_cast %14 : vector<8x1xf32> to vector<8x1xf32>
    %18 = vector.broadcast %17 : vector<8x1xf32> to vector<8x256xf32>
    %19 = vector.shape_cast %13 : vector<8x1xf32> to vector<8x1xf32>
    %20 = vector.broadcast %19 : vector<8x1xf32> to vector<8x256xf32>
    %21 = arith.select %16, %18, %20 : vector<8x256xi1>, vector<8x256xf32>
    %cst_7 = arith.constant 0.000000e+00 : f32
    %22 = vector.broadcast %cst_7 : f32 to vector<8x1xf32>
    %23 = arith.subf %22, %14 : vector<8x1xf32>
    %24 = vector.shape_cast %12 : vector<1x256xi1> to vector<1x256xi1>
    %25 = vector.broadcast %24 : vector<1x256xi1> to vector<8x256xi1>
    %26 = vector.shape_cast %23 : vector<8x1xf32> to vector<8x1xf32>
    %27 = vector.broadcast %26 : vector<8x1xf32> to vector<8x256xf32>
    %28 = vector.shape_cast %13 : vector<8x1xf32> to vector<8x1xf32>
    %29 = vector.broadcast %28 : vector<8x1xf32> to vector<8x256xf32>
    %30 = arith.select %25, %27, %29 : vector<8x256xi1>, vector<8x256xf32>
    %31 = vector.shape_cast %12 : vector<1x256xi1> to vector<1x256xi1>
    %32 = vector.broadcast %31 : vector<1x256xi1> to vector<8x256xi1>
    %33 = arith.select %32, %11, %10 : vector<8x256xi1>, vector<8x256xf32>
    %34 = arith.mulf %21, %33 : vector<8x256xf32>
    %35 = vector.shape_cast %12 : vector<1x256xi1> to vector<1x256xi1>
    %36 = vector.broadcast %35 : vector<1x256xi1> to vector<8x256xi1>
    %37 = arith.select %36, %10, %11 : vector<8x256xi1>, vector<8x256xf32>
    %38 = arith.mulf %30, %37 : vector<8x256xf32>
    %39 = vector.extract_strided_slice %9 {offsets = [1, 0], sizes = [1, 256], strides = [1, 1]} : vector<8x256xi1> to vector<1x256xi1>
    %40 = vector.extract_strided_slice %3 {offsets = [0, 1], sizes = [8, 1], strides = [1, 1]} : vector<8x8xf32> to vector<8x1xf32>
    %41 = vector.extract_strided_slice %6 {offsets = [0, 1], sizes = [8, 1], strides = [1, 1]} : vector<8x8xf32> to vector<8x1xf32>
    %42 = vector.shape_cast %39 : vector<1x256xi1> to vector<1x256xi1>
    %43 = vector.broadcast %42 : vector<1x256xi1> to vector<8x256xi1>
    %44 = vector.shape_cast %41 : vector<8x1xf32> to vector<8x1xf32>
    %45 = vector.broadcast %44 : vector<8x1xf32> to vector<8x256xf32>
    %46 = vector.shape_cast %40 : vector<8x1xf32> to vector<8x1xf32>
    %47 = vector.broadcast %46 : vector<8x1xf32> to vector<8x256xf32>
    %48 = arith.select %43, %45, %47 : vector<8x256xi1>, vector<8x256xf32>
    %cst_8 = arith.constant 0.000000e+00 : f32
    %49 = vector.broadcast %cst_8 : f32 to vector<8x1xf32>
    %50 = arith.subf %49, %41 : vector<8x1xf32>
    %51 = vector.shape_cast %39 : vector<1x256xi1> to vector<1x256xi1>
    %52 = vector.broadcast %51 : vector<1x256xi1> to vector<8x256xi1>
    %53 = vector.shape_cast %50 : vector<8x1xf32> to vector<8x1xf32>
    %54 = vector.broadcast %53 : vector<8x1xf32> to vector<8x256xf32>
    %55 = vector.shape_cast %40 : vector<8x1xf32> to vector<8x1xf32>
    %56 = vector.broadcast %55 : vector<8x1xf32> to vector<8x256xf32>
    %57 = arith.select %52, %54, %56 : vector<8x256xi1>, vector<8x256xf32>
    %58 = vector.shape_cast %39 : vector<1x256xi1> to vector<1x256xi1>
    %59 = vector.broadcast %58 : vector<1x256xi1> to vector<8x256xi1>
    %60 = arith.select %59, %38, %34 : vector<8x256xi1>, vector<8x256xf32>
    %61 = arith.mulf %48, %60 : vector<8x256xf32>
    %62 = vector.shape_cast %39 : vector<1x256xi1> to vector<1x256xi1>
    %63 = vector.broadcast %62 : vector<1x256xi1> to vector<8x256xi1>
    %64 = arith.select %63, %34, %38 : vector<8x256xi1>, vector<8x256xf32>
    %65 = arith.mulf %57, %64 : vector<8x256xf32>
    %66 = vector.extract_strided_slice %9 {offsets = [2, 0], sizes = [1, 256], strides = [1, 1]} : vector<8x256xi1> to vector<1x256xi1>
    %67 = vector.extract_strided_slice %3 {offsets = [0, 2], sizes = [8, 1], strides = [1, 1]} : vector<8x8xf32> to vector<8x1xf32>
    %68 = vector.extract_strided_slice %6 {offsets = [0, 2], sizes = [8, 1], strides = [1, 1]} : vector<8x8xf32> to vector<8x1xf32>
    %69 = vector.shape_cast %66 : vector<1x256xi1> to vector<1x256xi1>
    %70 = vector.broadcast %69 : vector<1x256xi1> to vector<8x256xi1>
    %71 = vector.shape_cast %68 : vector<8x1xf32> to vector<8x1xf32>
    %72 = vector.broadcast %71 : vector<8x1xf32> to vector<8x256xf32>
    %73 = vector.shape_cast %67 : vector<8x1xf32> to vector<8x1xf32>
    %74 = vector.broadcast %73 : vector<8x1xf32> to vector<8x256xf32>
    %75 = arith.select %70, %72, %74 : vector<8x256xi1>, vector<8x256xf32>
    %cst_9 = arith.constant 0.000000e+00 : f32
    %76 = vector.broadcast %cst_9 : f32 to vector<8x1xf32>
    %77 = arith.subf %76, %68 : vector<8x1xf32>
    %78 = vector.shape_cast %66 : vector<1x256xi1> to vector<1x256xi1>
    %79 = vector.broadcast %78 : vector<1x256xi1> to vector<8x256xi1>
    %80 = vector.shape_cast %77 : vector<8x1xf32> to vector<8x1xf32>
    %81 = vector.broadcast %80 : vector<8x1xf32> to vector<8x256xf32>
    %82 = vector.shape_cast %67 : vector<8x1xf32> to vector<8x1xf32>
    %83 = vector.broadcast %82 : vector<8x1xf32> to vector<8x256xf32>
    %84 = arith.select %79, %81, %83 : vector<8x256xi1>, vector<8x256xf32>
    %85 = vector.shape_cast %66 : vector<1x256xi1> to vector<1x256xi1>
    %86 = vector.broadcast %85 : vector<1x256xi1> to vector<8x256xi1>
    %87 = arith.select %86, %65, %61 : vector<8x256xi1>, vector<8x256xf32>
    %88 = arith.mulf %75, %87 : vector<8x256xf32>
    %89 = vector.shape_cast %66 : vector<1x256xi1> to vector<1x256xi1>
    %90 = vector.broadcast %89 : vector<1x256xi1> to vector<8x256xi1>
    %91 = arith.select %90, %61, %65 : vector<8x256xi1>, vector<8x256xf32>
    %92 = arith.mulf %84, %91 : vector<8x256xf32>
    %93 = vector.extract_strided_slice %9 {offsets = [3, 0], sizes = [1, 256], strides = [1, 1]} : vector<8x256xi1> to vector<1x256xi1>
    %94 = vector.extract_strided_slice %3 {offsets = [0, 3], sizes = [8, 1], strides = [1, 1]} : vector<8x8xf32> to vector<8x1xf32>
    %95 = vector.extract_strided_slice %6 {offsets = [0, 3], sizes = [8, 1], strides = [1, 1]} : vector<8x8xf32> to vector<8x1xf32>
    %96 = vector.shape_cast %93 : vector<1x256xi1> to vector<1x256xi1>
    %97 = vector.broadcast %96 : vector<1x256xi1> to vector<8x256xi1>
    %98 = vector.shape_cast %95 : vector<8x1xf32> to vector<8x1xf32>
    %99 = vector.broadcast %98 : vector<8x1xf32> to vector<8x256xf32>
    %100 = vector.shape_cast %94 : vector<8x1xf32> to vector<8x1xf32>
    %101 = vector.broadcast %100 : vector<8x1xf32> to vector<8x256xf32>
    %102 = arith.select %97, %99, %101 : vector<8x256xi1>, vector<8x256xf32>
    %cst_10 = arith.constant 0.000000e+00 : f32
    %103 = vector.broadcast %cst_10 : f32 to vector<8x1xf32>
    %104 = arith.subf %103, %95 : vector<8x1xf32>
    %105 = vector.shape_cast %93 : vector<1x256xi1> to vector<1x256xi1>
    %106 = vector.broadcast %105 : vector<1x256xi1> to vector<8x256xi1>
    %107 = vector.shape_cast %104 : vector<8x1xf32> to vector<8x1xf32>
    %108 = vector.broadcast %107 : vector<8x1xf32> to vector<8x256xf32>
    %109 = vector.shape_cast %94 : vector<8x1xf32> to vector<8x1xf32>
    %110 = vector.broadcast %109 : vector<8x1xf32> to vector<8x256xf32>
    %111 = arith.select %106, %108, %110 : vector<8x256xi1>, vector<8x256xf32>
    %112 = vector.shape_cast %93 : vector<1x256xi1> to vector<1x256xi1>
    %113 = vector.broadcast %112 : vector<1x256xi1> to vector<8x256xi1>
    %114 = arith.select %113, %92, %88 : vector<8x256xi1>, vector<8x256xf32>
    %115 = arith.mulf %102, %114 : vector<8x256xf32>
    %116 = vector.shape_cast %93 : vector<1x256xi1> to vector<1x256xi1>
    %117 = vector.broadcast %116 : vector<1x256xi1> to vector<8x256xi1>
    %118 = arith.select %117, %88, %92 : vector<8x256xi1>, vector<8x256xf32>
    %119 = arith.mulf %111, %118 : vector<8x256xf32>
    %120 = vector.extract_strided_slice %9 {offsets = [4, 0], sizes = [1, 256], strides = [1, 1]} : vector<8x256xi1> to vector<1x256xi1>
    %121 = vector.extract_strided_slice %3 {offsets = [0, 4], sizes = [8, 1], strides = [1, 1]} : vector<8x8xf32> to vector<8x1xf32>
    %122 = vector.extract_strided_slice %6 {offsets = [0, 4], sizes = [8, 1], strides = [1, 1]} : vector<8x8xf32> to vector<8x1xf32>
    %123 = vector.shape_cast %120 : vector<1x256xi1> to vector<1x256xi1>
    %124 = vector.broadcast %123 : vector<1x256xi1> to vector<8x256xi1>
    %125 = vector.shape_cast %122 : vector<8x1xf32> to vector<8x1xf32>
    %126 = vector.broadcast %125 : vector<8x1xf32> to vector<8x256xf32>
    %127 = vector.shape_cast %121 : vector<8x1xf32> to vector<8x1xf32>
    %128 = vector.broadcast %127 : vector<8x1xf32> to vector<8x256xf32>
    %129 = arith.select %124, %126, %128 : vector<8x256xi1>, vector<8x256xf32>
    %cst_11 = arith.constant 0.000000e+00 : f32
    %130 = vector.broadcast %cst_11 : f32 to vector<8x1xf32>
    %131 = arith.subf %130, %122 : vector<8x1xf32>
    %132 = vector.shape_cast %120 : vector<1x256xi1> to vector<1x256xi1>
    %133 = vector.broadcast %132 : vector<1x256xi1> to vector<8x256xi1>
    %134 = vector.shape_cast %131 : vector<8x1xf32> to vector<8x1xf32>
    %135 = vector.broadcast %134 : vector<8x1xf32> to vector<8x256xf32>
    %136 = vector.shape_cast %121 : vector<8x1xf32> to vector<8x1xf32>
    %137 = vector.broadcast %136 : vector<8x1xf32> to vector<8x256xf32>
    %138 = arith.select %133, %135, %137 : vector<8x256xi1>, vector<8x256xf32>
    %139 = vector.shape_cast %120 : vector<1x256xi1> to vector<1x256xi1>
    %140 = vector.broadcast %139 : vector<1x256xi1> to vector<8x256xi1>
    %141 = arith.select %140, %119, %115 : vector<8x256xi1>, vector<8x256xf32>
    %142 = arith.mulf %129, %141 : vector<8x256xf32>
    %143 = vector.shape_cast %120 : vector<1x256xi1> to vector<1x256xi1>
    %144 = vector.broadcast %143 : vector<1x256xi1> to vector<8x256xi1>
    %145 = arith.select %144, %115, %119 : vector<8x256xi1>, vector<8x256xf32>
    %146 = arith.mulf %138, %145 : vector<8x256xf32>
    %147 = vector.extract_strided_slice %9 {offsets = [5, 0], sizes = [1, 256], strides = [1, 1]} : vector<8x256xi1> to vector<1x256xi1>
    %148 = vector.extract_strided_slice %3 {offsets = [0, 5], sizes = [8, 1], strides = [1, 1]} : vector<8x8xf32> to vector<8x1xf32>
    %149 = vector.extract_strided_slice %6 {offsets = [0, 5], sizes = [8, 1], strides = [1, 1]} : vector<8x8xf32> to vector<8x1xf32>
    %150 = vector.shape_cast %147 : vector<1x256xi1> to vector<1x256xi1>
    %151 = vector.broadcast %150 : vector<1x256xi1> to vector<8x256xi1>
    %152 = vector.shape_cast %149 : vector<8x1xf32> to vector<8x1xf32>
    %153 = vector.broadcast %152 : vector<8x1xf32> to vector<8x256xf32>
    %154 = vector.shape_cast %148 : vector<8x1xf32> to vector<8x1xf32>
    %155 = vector.broadcast %154 : vector<8x1xf32> to vector<8x256xf32>
    %156 = arith.select %151, %153, %155 : vector<8x256xi1>, vector<8x256xf32>
    %cst_12 = arith.constant 0.000000e+00 : f32
    %157 = vector.broadcast %cst_12 : f32 to vector<8x1xf32>
    %158 = arith.subf %157, %149 : vector<8x1xf32>
    %159 = vector.shape_cast %147 : vector<1x256xi1> to vector<1x256xi1>
    %160 = vector.broadcast %159 : vector<1x256xi1> to vector<8x256xi1>
    %161 = vector.shape_cast %158 : vector<8x1xf32> to vector<8x1xf32>
    %162 = vector.broadcast %161 : vector<8x1xf32> to vector<8x256xf32>
    %163 = vector.shape_cast %148 : vector<8x1xf32> to vector<8x1xf32>
    %164 = vector.broadcast %163 : vector<8x1xf32> to vector<8x256xf32>
    %165 = arith.select %160, %162, %164 : vector<8x256xi1>, vector<8x256xf32>
    %166 = vector.shape_cast %147 : vector<1x256xi1> to vector<1x256xi1>
    %167 = vector.broadcast %166 : vector<1x256xi1> to vector<8x256xi1>
    %168 = arith.select %167, %146, %142 : vector<8x256xi1>, vector<8x256xf32>
    %169 = arith.mulf %156, %168 : vector<8x256xf32>
    %170 = vector.shape_cast %147 : vector<1x256xi1> to vector<1x256xi1>
    %171 = vector.broadcast %170 : vector<1x256xi1> to vector<8x256xi1>
    %172 = arith.select %171, %142, %146 : vector<8x256xi1>, vector<8x256xf32>
    %173 = arith.mulf %165, %172 : vector<8x256xf32>
    %174 = vector.extract_strided_slice %9 {offsets = [6, 0], sizes = [1, 256], strides = [1, 1]} : vector<8x256xi1> to vector<1x256xi1>
    %175 = vector.extract_strided_slice %3 {offsets = [0, 6], sizes = [8, 1], strides = [1, 1]} : vector<8x8xf32> to vector<8x1xf32>
    %176 = vector.extract_strided_slice %6 {offsets = [0, 6], sizes = [8, 1], strides = [1, 1]} : vector<8x8xf32> to vector<8x1xf32>
    %177 = vector.shape_cast %174 : vector<1x256xi1> to vector<1x256xi1>
    %178 = vector.broadcast %177 : vector<1x256xi1> to vector<8x256xi1>
    %179 = vector.shape_cast %176 : vector<8x1xf32> to vector<8x1xf32>
    %180 = vector.broadcast %179 : vector<8x1xf32> to vector<8x256xf32>
    %181 = vector.shape_cast %175 : vector<8x1xf32> to vector<8x1xf32>
    %182 = vector.broadcast %181 : vector<8x1xf32> to vector<8x256xf32>
    %183 = arith.select %178, %180, %182 : vector<8x256xi1>, vector<8x256xf32>
    %cst_13 = arith.constant 0.000000e+00 : f32
    %184 = vector.broadcast %cst_13 : f32 to vector<8x1xf32>
    %185 = arith.subf %184, %176 : vector<8x1xf32>
    %186 = vector.shape_cast %174 : vector<1x256xi1> to vector<1x256xi1>
    %187 = vector.broadcast %186 : vector<1x256xi1> to vector<8x256xi1>
    %188 = vector.shape_cast %185 : vector<8x1xf32> to vector<8x1xf32>
    %189 = vector.broadcast %188 : vector<8x1xf32> to vector<8x256xf32>
    %190 = vector.shape_cast %175 : vector<8x1xf32> to vector<8x1xf32>
    %191 = vector.broadcast %190 : vector<8x1xf32> to vector<8x256xf32>
    %192 = arith.select %187, %189, %191 : vector<8x256xi1>, vector<8x256xf32>
    %193 = vector.shape_cast %174 : vector<1x256xi1> to vector<1x256xi1>
    %194 = vector.broadcast %193 : vector<1x256xi1> to vector<8x256xi1>
    %195 = arith.select %194, %173, %169 : vector<8x256xi1>, vector<8x256xf32>
    %196 = arith.mulf %183, %195 : vector<8x256xf32>
    %197 = vector.shape_cast %174 : vector<1x256xi1> to vector<1x256xi1>
    %198 = vector.broadcast %197 : vector<1x256xi1> to vector<8x256xi1>
    %199 = arith.select %198, %169, %173 : vector<8x256xi1>, vector<8x256xf32>
    %200 = arith.mulf %192, %199 : vector<8x256xf32>
    %201 = vector.extract_strided_slice %9 {offsets = [7, 0], sizes = [1, 256], strides = [1, 1]} : vector<8x256xi1> to vector<1x256xi1>
    %202 = vector.extract_strided_slice %3 {offsets = [0, 7], sizes = [8, 1], strides = [1, 1]} : vector<8x8xf32> to vector<8x1xf32>
    %203 = vector.extract_strided_slice %6 {offsets = [0, 7], sizes = [8, 1], strides = [1, 1]} : vector<8x8xf32> to vector<8x1xf32>
    %204 = vector.shape_cast %201 : vector<1x256xi1> to vector<1x256xi1>
    %205 = vector.broadcast %204 : vector<1x256xi1> to vector<8x256xi1>
    %206 = vector.shape_cast %203 : vector<8x1xf32> to vector<8x1xf32>
    %207 = vector.broadcast %206 : vector<8x1xf32> to vector<8x256xf32>
    %208 = vector.shape_cast %202 : vector<8x1xf32> to vector<8x1xf32>
    %209 = vector.broadcast %208 : vector<8x1xf32> to vector<8x256xf32>
    %210 = arith.select %205, %207, %209 : vector<8x256xi1>, vector<8x256xf32>
    %cst_14 = arith.constant 0.000000e+00 : f32
    %211 = vector.broadcast %cst_14 : f32 to vector<8x1xf32>
    %212 = arith.subf %211, %203 : vector<8x1xf32>
    %213 = vector.shape_cast %201 : vector<1x256xi1> to vector<1x256xi1>
    %214 = vector.broadcast %213 : vector<1x256xi1> to vector<8x256xi1>
    %215 = vector.shape_cast %212 : vector<8x1xf32> to vector<8x1xf32>
    %216 = vector.broadcast %215 : vector<8x1xf32> to vector<8x256xf32>
    %217 = vector.shape_cast %202 : vector<8x1xf32> to vector<8x1xf32>
    %218 = vector.broadcast %217 : vector<8x1xf32> to vector<8x256xf32>
    %219 = arith.select %214, %216, %218 : vector<8x256xi1>, vector<8x256xf32>
    %220 = vector.shape_cast %201 : vector<1x256xi1> to vector<1x256xi1>
    %221 = vector.broadcast %220 : vector<1x256xi1> to vector<8x256xi1>
    %222 = arith.select %221, %200, %196 : vector<8x256xi1>, vector<8x256xf32>
    %223 = arith.mulf %210, %222 : vector<8x256xf32>
    %224 = vector.shape_cast %201 : vector<1x256xi1> to vector<1x256xi1>
    %225 = vector.broadcast %224 : vector<1x256xi1> to vector<8x256xi1>
    %226 = arith.select %225, %196, %200 : vector<8x256xi1>, vector<8x256xf32>
    %227 = arith.mulf %219, %226 : vector<8x256xf32>
    %c0_15 = arith.constant 0 : index
    %c0_16 = arith.constant 0 : index
    %228 = vector.load %arg3[%c0_15, %c0_16] : memref<256x256xf32, #tpu.memory_space<vmem>>, vector<256x256xf32>
    %cst_17 = arith.constant dense<0.000000e+00> : vector<8x256xf32>
    %229 = tpu.matmul %223, %228, %cst_17 {dimension_numbers = #tpu.dot_dimension_numbers<[1], [0], [0], [1], [0, 0, 1, 1], [], []>} : vector<8x256xf32>, vector<256x256xf32>, vector<8x256xf32> -> vector<8x256xf32>
    %c0_18 = arith.constant 0 : index
    %c0_19 = arith.constant 0 : index
    %230 = vector.load %arg4[%c0_18, %c0_19] : memref<256x256xf32, #tpu.memory_space<vmem>>, vector<256x256xf32>
    %cst_20 = arith.constant dense<0.000000e+00> : vector<8x256xf32>
    %231 = tpu.matmul %227, %230, %cst_20 {dimension_numbers = #tpu.dot_dimension_numbers<[1], [0], [0], [1], [0, 0, 1, 1], [], []>} : vector<8x256xf32>, vector<256x256xf32>, vector<8x256xf32> -> vector<8x256xf32>
    %232 = arith.addf %223, %227 : vector<8x256xf32>
    %c0_21 = arith.constant 0 : index
    %c0_22 = arith.constant 0 : index
    %233 = vector.load %arg5[%c0_21, %c0_22] : memref<256x256xf32, #tpu.memory_space<vmem>>, vector<256x256xf32>
    %cst_23 = arith.constant dense<0.000000e+00> : vector<8x256xf32>
    %234 = tpu.matmul %232, %233, %cst_23 {dimension_numbers = #tpu.dot_dimension_numbers<[1], [0], [0], [1], [0, 0, 1, 1], [], []>} : vector<8x256xf32>, vector<256x256xf32>, vector<8x256xf32> -> vector<8x256xf32>
    %235 = arith.subf %229, %231 : vector<8x256xf32>
    %236 = arith.subf %234, %229 : vector<8x256xf32>
    %237 = arith.subf %236, %231 : vector<8x256xf32>
    %238 = arith.mulf %235, %235 : vector<8x256xf32>
    %239 = arith.mulf %237, %237 : vector<8x256xf32>
    %240 = arith.addf %238, %239 : vector<8x256xf32>
    %c0_24 = arith.constant 0 : index
    %c0_25 = arith.constant 0 : index
    %241 = vector.load %arg6[%c0_24, %c0_25] : memref<256x128xf32, #tpu.memory_space<vmem>>, vector<256x128xf32>
    %cst_26 = arith.constant dense<0.000000e+00> : vector<8x128xf32>
    %242 = tpu.matmul %240, %241, %cst_26 {dimension_numbers = #tpu.dot_dimension_numbers<[1], [0], [0], [1], [0, 0, 1, 1], [], []>} : vector<8x256xf32>, vector<256x128xf32>, vector<8x128xf32> -> vector<8x128xf32>
    %c0_27 = arith.constant 0 : index
    %c0_28 = arith.constant 0 : index
    %243 = vector.load %arg7[%c0_27, %c0_28] : memref<8x128xf32, #tpu.memory_space<vmem>>, vector<8x128xf32>
    tpu.vector_store %arg7[%c0_27, %c0_28], %242 {strides = array<i32>} : memref<8x128xf32, #tpu.memory_space<vmem>>, vector<8x128xf32>,
    return
  }
  func.func @transform_0(%arg0: i32) -> (i32, i32) {
    %c0_i32 = arith.constant 0 : i32
    %c0_i32_0 = arith.constant 0 : i32
    return %arg0, %c0_i32 : i32, i32
  }
  func.func @transform_1(%arg0: i32) -> (i32, i32) {
    %c0_i32 = arith.constant 0 : i32
    %c0_i32_0 = arith.constant 0 : i32
    %c0_i32_1 = arith.constant 0 : i32
    return %c0_i32, %c0_i32_0 : i32, i32
  }
  func.func @transform_2(%arg0: i32) -> (i32, i32) {
    %c0_i32 = arith.constant 0 : i32
    %c0_i32_0 = arith.constant 0 : i32
    %c0_i32_1 = arith.constant 0 : i32
    return %c0_i32, %c0_i32_0 : i32, i32
  }
  func.func @transform_3(%arg0: i32) -> (i32, i32) {
    %c0_i32 = arith.constant 0 : i32
    %c0_i32_0 = arith.constant 0 : i32
    %c0_i32_1 = arith.constant 0 : i32
    return %c0_i32, %c0_i32_0 : i32, i32
  }
  func.func @transform_4(%arg0: i32) -> (i32, i32) {
    %c0_i32 = arith.constant 0 : i32
    %c0_i32_0 = arith.constant 0 : i32
    %c0_i32_1 = arith.constant 0 : i32
    return %c0_i32, %c0_i32_0 : i32, i32
  }
  func.func @transform_5(%arg0: i32) -> (i32, i32) {
    %c0_i32 = arith.constant 0 : i32
    %c0_i32_0 = arith.constant 0 : i32
    %c0_i32_1 = arith.constant 0 : i32
    return %c0_i32, %c0_i32_0 : i32, i32
  }
  func.func @transform_6(%arg0: i32) -> (i32, i32) {
    %c0_i32 = arith.constant 0 : i32
    %c0_i32_0 = arith.constant 0 : i32
    return %arg0, %c0_i32 : i32, i32
  }
}

</mosaic_0001>

<bundles_post_ra>
// kernel: tpu_custom_call.1
= control target key start
LH: loop header
LB: loop body
LE: loop exit
PB: predicated region body
PF: predicated region fallthrough
CT: control target
= control target key end

     0   :  { %11 = vsyncpa [#allocation3], 0  ;;  %s6999_s0 = inlined_call_operand.hbm [shape: f32[8,8], index: 0, kind: input, shape index: {}]   ;;  %s7000_s1 = inlined_call_operand.hbm [shape: f32[8,256], index: 1, kind: input, shape index: {}]   ;;  %s7001_s2 = inlined_call_operand.hbm [shape: f32[256,256], index: 2, kind: input, shape index: {}]   ;;  %s7002_s3 = inlined_call_operand.hbm [shape: f32[256,256], index: 3, kind: input, shape index: {}]   ;;  %s7003_s4 = inlined_call_operand.hbm [shape: f32[256,256], index: 4, kind: input, shape index: {}]   ;;  %s7004_s5 = inlined_call_operand.hbm [shape: f32[256,128], index: 5, kind: input, shape index: {}]   ;;  %s7005_s6 = inlined_call_operand.hbm [shape: f32[8,128], index: 6, kind: output, shape index: {}]  }
   0x1   :  { %12 = vsyncpa [#allocation6], 0 }
   0x2   :  { %13 = vsyncpa [#allocation9], 0 }
   0x3   :  { %14 = vsyncpa [#allocation12], 0 }
   0x4   :  { %15 = vsyncpa [#allocation4], 0  ;;  %s3353_s21 = smov [#allocation5]   ;;  %s3189_s25 = scalar_lea.hbm %s7000_s1, 256 }
   0x5   :  { %s32_s22 = sshll.u32 %s3353_s21, 4  ;;  %p3190_p0 = scmp.ne.s32.totalorder %s7000_s1, %s3189_s25  ;;  %s33_s22 = int_to_ptr.vmem [resolvable:$true] %s32_s22 }
   0x6   :  { %p3193_p1 = scmp.lt.u32.totalorder %s3189_s25, %s7000_s1 }
   0x8   :  { %p3195_p2 = pnand %p3193_p1, %p3190_p0 }
   0xa   :  { %3198 = shalt.err (!%p3195_p2)
}
   0xb   :  { %s3199_s30 = scalar_lea.vmem %s33_s22, 256  ;;  %p3204_p4 = scmp.lt.s32.totalorder %s33_s22, %s33_s22 }
   0xc   :  { %p3200_p3 = scmp.ne.s32.totalorder %s33_s22, %s3199_s30  ;;  %p3205_p5 = scmp.lt.s32.totalorder %s3199_s30, %s3199_s30 }
   0xe   :  { %p3206_p6 = por %p3205_p5, %p3204_p4 }
  0x10   :  { %p3207_p7 = pnand %p3206_p6, %p3200_p3 }
  0x12   :  { %3210 = shalt.err (!%p3207_p7)
}
  0x13   :  { %35 = dma.hbm_to_vmem [thread:$0]  %s7000_s1, 256, %s33_s22, [#allocation6]  }
  0x14   :  { %s3354_s9 = smov [#allocation8]   ;;  %s3355_s11 = smov [#allocation2]  }
  0x15   :  { %s53_s10 = sshll.u32 %s3354_s9, 4  ;;  %s22_s12 = sshll.u32 %s3355_s11, 4  ;;  %s54_s10 = int_to_ptr.vmem [resolvable:$true] %s53_s10  ;;  %s23_s12 = int_to_ptr.vmem [resolvable:$true] %s22_s12 }
  0x16   :  { %s3211_s15 = scalar_lea.hbm %s7002_s3, 8192 }
  0x17   :  { %p3212_p8 = scmp.ne.s32.totalorder %s7002_s3, %s3211_s15  ;;  %p3215_p9 = scmp.lt.u32.totalorder %s3211_s15, %s7002_s3 }
  0x19   :  { %p3217_p10 = pnand %p3215_p9, %p3212_p8 }
  0x1b   :  { %3220 = shalt.err (!%p3217_p10)
}
  0x1c   :  { %s3221_s1 = scalar_lea.vmem %s54_s10, 8192  ;;  %p3226_p12 = scmp.lt.s32.totalorder %s54_s10, %s54_s10 }
  0x1d   :  { %p3222_p11 = scmp.ne.s32.totalorder %s54_s10, %s3221_s1  ;;  %p3227_p13 = scmp.lt.s32.totalorder %s3221_s1, %s3221_s1 }
  0x1f   :  { %p3228_p0 = por %p3227_p13, %p3226_p12 }
  0x21   :  { %p3229_p1 = pnand %p3228_p0, %p3222_p11 }
  0x23   :  { %3232 = shalt.err (!%p3229_p1)
}
  0x24   :  { %s3356_s20 = smov 256   ;;  %s3357_s21 = smov 16  }
  0x25   :  { %59 = dma.hbm_to_vmem [thread:$0]  %s7002_s3, 8192, %s54_s10, [#allocation9], %s3356_s20, %s3356_s20, %s3357_s21  }
  0x26   :  { %s3233_s26 = scalar_lea.hbm %s6999_s0, 128 }
  0x27   :  { %p3234_p2 = scmp.ne.s32.totalorder %s6999_s0, %s3233_s26  ;;  %p3237_p3 = scmp.lt.u32.totalorder %s3233_s26, %s6999_s0 }
  0x29   :  { %p3239_p4 = pnand %p3237_p3, %p3234_p2 }
  0x2b   :  { %3242 = shalt.err (!%p3239_p4)
}
  0x2c   :  { %s3243_s7 = scalar_lea.vmem %s23_s12, 128  ;;  %p3248_p6 = scmp.lt.s32.totalorder %s23_s12, %s23_s12 }
  0x2d   :  { %p3244_p5 = scmp.ne.s32.totalorder %s23_s12, %s3243_s7  ;;  %p3249_p7 = scmp.lt.s32.totalorder %s3243_s7, %s3243_s7 }
  0x2f   :  { %p3250_p8 = por %p3249_p7, %p3248_p6 }
  0x31   :  { %p3251_p9 = pnand %p3250_p8, %p3244_p5 }
  0x33   :  { %3254 = shalt.err (!%p3251_p9)
}
  0x34   :  { %25 = dma.hbm_to_vmem [thread:$0]  %s6999_s0, 128, %s23_s12, [#allocation3]  }
  0x35   :  { %s3358_s9 = smov [#allocation7]   ;;  %s3359_s11 = smov [#allocation10]  }
  0x36   :  { %s41_s10 = sshll.u32 %s3358_s9, 4  ;;  %s65_s13 = sshll.u32 %s3359_s11, 4  ;;  %s42_s10 = int_to_ptr.vmem [resolvable:$true] %s41_s10  ;;  %s66_s13 = int_to_ptr.vmem [resolvable:$true] %s65_s13 }
  0x37   :  { %s3255_s16 = scalar_lea.hbm %s7001_s2, 8192 }
  0x38   :  { %p3256_p10 = scmp.ne.s32.totalorder %s7001_s2, %s3255_s16  ;;  %p3259_p11 = scmp.lt.u32.totalorder %s3255_s16, %s7001_s2 }
  0x3a   :  { %p3261_p12 = pnand %p3259_p11, %p3256_p10 }
  0x3c   :  { %3264 = shalt.err (!%p3261_p12)
}
  0x3d   :  { %s3265_s0 = scalar_lea.vmem %s42_s10, 8192  ;;  %p3270_p0 = scmp.lt.s32.totalorder %s42_s10, %s42_s10 }
  0x3e   :  { %p3266_p13 = scmp.ne.s32.totalorder %s42_s10, %s3265_s0  ;;  %p3271_p1 = scmp.lt.s32.totalorder %s3265_s0, %s3265_s0 }
  0x40   :  { %p3272_p2 = por %p3271_p1, %p3270_p0 }
  0x42   :  { %p3273_p3 = pnand %p3272_p2, %p3266_p13 }
  0x44   :  { %3276 = shalt.err (!%p3273_p3)
}
  0x45   :  { %47 = dma.hbm_to_vmem [thread:$0]  %s7001_s2, 8192, %s42_s10, [#allocation6], %s3356_s20, %s3356_s20, %s3357_s21  }
  0x46   :  { %s3277_s25 = scalar_lea.hbm %s7003_s4, 8192 }
  0x47   :  { %p3278_p4 = scmp.ne.s32.totalorder %s7003_s4, %s3277_s25  ;;  %p3281_p5 = scmp.lt.u32.totalorder %s3277_s25, %s7003_s4 }
  0x49   :  { %p3283_p6 = pnand %p3281_p5, %p3278_p4 }
  0x4b   :  { %3286 = shalt.err (!%p3283_p6)
}
  0x4c   :  { %s3287_s30 = scalar_lea.vmem %s66_s13, 8192  ;;  %p3292_p8 = scmp.lt.s32.totalorder %s66_s13, %s66_s13 }
  0x4d   :  { %p3288_p7 = scmp.ne.s32.totalorder %s66_s13, %s3287_s30  ;;  %p3293_p9 = scmp.lt.s32.totalorder %s3287_s30, %s3287_s30 }
  0x4f   :  { %p3294_p10 = por %p3293_p9, %p3292_p8 }
  0x51   :  { %p3295_p11 = pnand %p3294_p10, %p3288_p7 }
  0x53   :  { %3298 = shalt.err (!%p3295_p11)
}
  0x54   :  { %71 = dma.hbm_to_vmem [thread:$0]  %s7003_s4, 8192, %s66_s13, [#allocation9], %s3356_s20, %s3356_s20, %s3357_s21  }
  0x55   :  { %s3360_s3 = smov [#allocation11]   ;;  %s3299_s11 = scalar_lea.hbm %s7004_s5, 4096 }
  0x56   :  { %s77_s8 = sshll.u32 %s3360_s3, 4  ;;  %p3300_p12 = scmp.ne.s32.totalorder %s7004_s5, %s3299_s11  ;;  %s78_s8 = int_to_ptr.vmem [resolvable:$true] %s77_s8 }
  0x57   :  { %p3303_p13 = scmp.lt.u32.totalorder %s3299_s11, %s7004_s5 }
  0x59   :  { %p3305_p0 = pnand %p3303_p13, %p3300_p12 }
  0x5b   :  { %3308 = shalt.err (!%p3305_p0)
}
  0x5c   :  { %s3309_s18 = scalar_lea.vmem %s78_s8, 4096  ;;  %p3314_p2 = scmp.lt.s32.totalorder %s78_s8, %s78_s8 }
  0x5d   :  { %p3310_p1 = scmp.ne.s32.totalorder %s78_s8, %s3309_s18  ;;  %p3315_p3 = scmp.lt.s32.totalorder %s3309_s18, %s3309_s18 }
  0x5f   :  { %p3316_p4 = por %p3315_p3, %p3314_p2 }
  0x61   :  { %p3317_p5 = pnand %p3316_p4, %p3310_p1 }
  0x63   :  { %3320 = shalt.err (!%p3317_p5)
}
  0x64   :  { %s3361_s4 = smov 128   ;;  %s3362_s20 = smov 8  }
  0x65   :  { %83 = dma.hbm_to_vmem [thread:$0]  %s7004_s5, 4096, %s78_s8, [#allocation12], %s3361_s4, %s3361_s4, %s3362_s20  }
  0x66   :  { %3343 = dma.done.wait [#allocation3], 128  }
  0x67   :  { %3344 = vsyncadd [#allocation3], 4294967168 }
  0x68   :  { %3345 = dma.done.wait [#allocation6], 8448  }
  0x69   :  { %3346 = vsyncadd [#allocation6], 4294958848 }
  0x6a   :  { %3347 = dma.done.wait [#allocation9], 16384  }
  0x6b   :  { %3348 = vsyncadd [#allocation9], 4294950912 }
  0x6c   :  { %3349 = dma.done.wait [#allocation12], 4096  }
  0x6d   :  { %3350 = vsyncadd [#allocation12], 4294963200  ;;  %v3363_v0 = vmov 1   ;;  %v3364_v1 = vmov 0   ;;  %v102_v2 = vld [vmem:[#allocation2] sm:$0xff]  ;;  %s3379_s5 = smov [#allocation13]  }
  0x6e   :  { %3165 = vset.pattern.permute.xlu1 %v3363_v0  ;;  %3164 = vset.pattern.permute.xlu0 %v3364_v1  ;;  %v3498_v3 = vmul.f32 0.5, %v102_v2  ;;  %v3365_v15 = vmov 683565275   ;;  %v3366_v17 = vmov 2475754826   ;;  %s2854_s19 = sshll.u32 %s3379_s5, 4  ;;  %s2855_s19 = int_to_ptr.vmem [resolvable:$true] %s2854_s19 }
  0x6f   :  { %v3367_v19 = vmov 2131351028   ;;  %v3368_v21 = vmov 2102212464   ;;  %v3369_v23 = vmov 920167782   ;;  %p3326_p7 = scmp.lt.s32.totalorder %s2855_s19, %s2855_s19 }
  0x70   :  { %v107_v4 = vand.u32 2139095040, %v3498_v3  ;;  %v104_v6 = vand.u32 2147483647, %v3498_v3  ;;  %v3370_v30 = vmov 1326507024   ;;  %vm106_vm7 = vcmp.lt.s32.totalorder %v3498_v3, 0 }
  0x71   :  { %vm196_vm15 = vweird.f32 %v3498_v3  ;;  %s3321_s1 = scalar_lea.vmem %s2855_s19, 128 }
  0x72   :  { %v108_v5 = vshrl.u32 %v107_v4, 23  ;;  %v111_v9 = vand.u32 8388607, %v104_v6  ;;  %vm105_vm8 = vcmp.le.f32.partialorder %v104_v6, 0.7853982  ;;  %p3322_p6 = scmp.ne.s32.totalorder %s2855_s19, %s3321_s1  ;;  %p3327_p8 = scmp.lt.s32.totalorder %s3321_s1, %s3321_s1 }
  0x74   :  { %v2866_v7 = vadd.s32 4294967169, %v108_v5  ;;  %v112_v12 = vor.u32 8388608, %v111_v9  ;;  %p3328_p9 = por %p3327_p8, %p3326_p7 }
  0x76   :  { %v114_v8 = vadd.s32 1, %v2866_v7  ;;  %v152_v32 = vshll.u32 %v112_v12, 8  ;;  %p3329_p10 = pnand %p3328_p9, %p3322_p6 }
  0x78   :  { %vm115_vm0 = vcmp.gt.s32.totalorder %v114_v8, 0 }
  0x79   :  { %v116_v10 = vsel %vm115_vm0, %v114_v8, 0 }
  0x7a   :  { %v118_v11 = vand.u32 31, %v116_v10  ;;  %v117_v13 = vshrl.u32 %v116_v10, 5 }
  0x7c   :  { %v119_v14 = vsub.s32 32, %v118_v11  ;;  %v121_v16 = vshll.u32 %v3365_v15, %v118_v11  ;;  %v124_v18 = vshll.u32 %v3366_v17, %v118_v11  ;;  %v127_v20 = vshll.u32 %v3367_v19, %v118_v11 }
  0x7d   :  { %v130_v22 = vshll.u32 %v3368_v21, %v118_v11  ;;  %v133_v24 = vshll.u32 %v3369_v23, %v118_v11  ;;  %vm136_vm1 = vcmp.lt.s32.totalorder %v117_v13, 1  ;;  %vm139_vm2 = vcmp.lt.s32.totalorder %v117_v13, 4 }
  0x7e   :  { %v120_v25 = vshrl.u32 %v3365_v15, %v119_v14  ;;  %v122_v26 = vshrl.u32 %v3366_v17, %v119_v14  ;;  %v125_v27 = vshrl.u32 %v3367_v19, %v119_v14  ;;  %v128_v28 = vshrl.u32 %v3368_v21, %v119_v14 }
  0x7f   :  { %v131_v29 = vshrl.u32 %v3369_v23, %v119_v14  ;;  %v134_v31 = vshrl.u32 %v3370_v30, %v119_v14  ;;  %vm137_vm3 = vcmp.lt.s32.totalorder %v117_v13, 2  ;;  %vm138_vm4 = vcmp.lt.s32.totalorder %v117_v13, 3 }
  0x80   :  { %v123_v33 = vor.u32 %v122_v26, %v121_v16  ;;  %v126_v34 = vor.u32 %v125_v27, %v124_v18  ;;  %v129_v35 = vor.u32 %v128_v28, %v127_v20 }
  0x81   :  { %v132_v36 = vor.u32 %v131_v29, %v130_v22  ;;  %v135_v37 = vor.u32 %v134_v31, %v133_v24 }
  0x82   :  { %v140_v38 = vsel %vm136_vm1, %v120_v25, %v123_v33  ;;  %v141_v39 = vsel %vm139_vm2, %v129_v35, 2102212464  ;;  %v144_v40 = vsel %vm136_vm1, %v123_v33, %v126_v34  ;;  %v148_v41 = vsel %vm136_vm1, %v126_v34, %v129_v35 }
  0x83   :  { %v142_v42 = vsel %vm138_vm4, %v126_v34, %v141_v39  ;;  %v145_v43 = vsel %vm139_vm2, %v132_v36, 920167782  ;;  %v149_v44 = vsel %vm139_vm2, %v135_v37, 1326507024  ;;  %v3371_v39 = vmov 2  }
  0x84   :  { %v146_v45 = vsel %vm138_vm4, %v129_v35, %v145_v43  ;;  %v150_v46 = vsel %vm138_vm4, %v132_v36, %v149_v44  ;;  %v143_v47 = vsel %vm137_vm3, %v140_v38, %v142_v42  ;;  %v3373_v42 = vmov 4   ;;  %v2167_v44 = vld [vmem:[#allocation7] sm:$0xff] }
  0x85   :  { %v147_v48 = vsel %vm137_vm3, %v144_v40, %v146_v45  ;;  %v151_v49 = vsel %vm137_vm3, %v148_v41, %v150_v46  ;;  %v159_v54 = vmul.u32 %v152_v32, %v143_v47  ;;  %v2168_v40 = vld [vmem:[#allocation7 + $0x8] sm:$0xff]  ;;  %v2170_v41 = vld [vmem:[#allocation7 + $0x18] sm:$0xff]  ;;  %v2169_v45 = vld [vmem:[#allocation7 + $0x10] sm:$0xff]  ;;  %vm2249_vm2 = vcmask 1041409  }
  0x86   :  { %v3504_v50 = vmul.u32.u64.low %v152_v32, %v151_v49  ;;  %v3505_v51 = vmul.u32.u64.high %v152_v32, %v151_v49, %v3504_v50  ;;  %v3507_v52 = vmul.u32.u64.low %v152_v32, %v147_v48  ;;  %v3508_v53 = vmul.u32.u64.high %v152_v32, %v147_v48, %v3507_v52  ;;  %v2172_v48 = vld [vmem:[#allocation7 + $0x28] sm:$0xff]  ;;  %v2174_v49 = vld [vmem:[#allocation7 + $0x38] sm:$0xff] }
  0x87   :  { %v2909_v43 = vpack.c.bf16 %v2170_v41, %v2168_v40  ;;  %v2911_v46 = vpack.c.bf16 %v2169_v45, %v2167_v44  ;;  %v2913_v50 = vpack.c.bf16 %v2174_v49, %v2172_v48  ;;  %v2372_v40 = vld [vmem:[#allocation8 + $0x88] sm:$0xff]  ;;  %v2373_v44 = vld [vmem:[#allocation8 + $0x90] sm:$0xff]  ;;  %v2194_v48 = vld [vmem:[#allocation7 + $0xd8] sm:$0xff]  ;;  %vm2252_vm3 = vcmask 1042434  }
  0x88   :  { %vm161_vm5 = vc.u32 %v3505_v51, %v3507_v52  ;;  %v162_v55 = vadd.s32 1, %v3508_v53  ;;  %v160_v5 = vadd.s32 %v3507_v52, %v3505_v51  ;;  %v2171_v51 = vld [vmem:[#allocation7 + $0x20] sm:$0xff]  ;;  %v2173_v52 = vld [vmem:[#allocation7 + $0x30] sm:$0xff]  ;;  %vm2255_vm4 = vcmask 1043459  }
  0x89   :  { %2910 = vmatprep.subr.bf16.mxu0 %v2909_v43  ;;  %v2371_v43 = vld [vmem:[#allocation8 + $0x80] sm:$0xff] }
  0x8a   :  { %v163_v56 = vsel %vm161_vm5, %v162_v55, %v3508_v53  ;;  %2912 = vmatpush1.bf16.msra.mxu0 %v2911_v46  ;;  %v2356_v53 = vld [vmem:[#allocation8 + $0x8] sm:$0xff]  ;;  %v2358_v55 = vld [vmem:[#allocation8 + $0x18] sm:$0xff]  ;;  %v2991_v46 = vpack.c.bf16 %v2373_v44, %v2371_v43  ;;  %v2191_v49 = vld [vmem:[#allocation7 + $0xc0] sm:$0xff]  ;;  %vm2258_vm5 = vcmask 1044484  }
  0x8b   :  { %v164_v57 = vadd.s32 %v163_v56, %v159_v54  ;;  %v2915_v54 = vpack.c.bf16 %v2173_v52, %v2171_v51  ;;  %2914 = vmatprep.subr.bf16.mxu0 %v2913_v50  ;;  %v2973_v56 = vpack.c.bf16 %v2358_v55, %v2356_v53  ;;  %v2193_v51 = vld [vmem:[#allocation7 + $0xd0] sm:$0xff]  ;;  %v2376_v52 = vld [vmem:[#allocation8 + $0xa8] sm:$0xff]  ;;  %v2378_v53 = vld [vmem:[#allocation8 + $0xb8] sm:$0xff] }
  0x8c   :  { %v2993_v55 = vpack.c.bf16 %v2378_v53, %v2376_v52 }
  0x8d   :  { %v165_v58 = vadd.s32 536870912, %v164_v57  ;;  %2974 = vmatprep.subr.bf16.mxu1 %v2973_v56  ;;  %v3543_v56 = vld [vmem:[#allocation5] sm:$0xff] }
  0x8e   :  { %2916 = vmatpush1.bf16.msra.mxu0 %v2915_v54  ;;  %v2935_v54 = vpack.c.bf16 %v2193_v51, %v2191_v49  ;;  %7243 = vst [vmem:[#allocation19_spill] sm:$0xff] %v3543_v56  ;;  %vm313_vm0 = vcmp.ne.f32.partialorder %v3543_v56, 0.0 }
  0x8f   :  { %v166_v59 = vshrl.u32 %v165_v58, 30  ;;  %v3376_v58 = vmov 7  }
  0x91   :  { %v167_v60 = vshll.u32 %v166_v59, 30  ;;  %v190_v18 = vsub.s32 4, %v166_v59 }
  0x93   :  { %v168_v61 = vsub.s32 %v164_v57, %v167_v60  ;;  %v191_v21 = vsel %vm106_vm7, %v190_v18, %v166_v59  ;;  %v3374_v57 = vmov 5   ;;  %v2357_v59 = vld [vmem:[#allocation8 + $0x10] sm:$0xff]  ;;  %v2364_v18 = vld [vmem:[#allocation8 + $0x48] sm:$0xff] }
  0x94   :  { %v193_v24 = vsel %vm105_vm8, 0, %v191_v21  ;;  %v2363_v21 = vld [vmem:[#allocation8 + $0x40] sm:$0xff] }
  0x95   :  { %v170_v62 = vsub.s32 0, %v168_v61  ;;  %v300_v25 = vadd.s32 3, %v193_v24  ;;  %v197_v27 = vand.u32 3, %v193_v24 }
  0x97   :  { %v2867_v63 = vmin.u32 %v170_v62, %v168_v61  ;;  %v301_v26 = vand.u32 3, %v300_v25  ;;  %vm202_vm10 = vcmp.eq.s32.totalorder %v197_v27, 2  ;;  %vm199_vm12 = vcmp.eq.s32.totalorder %v197_v27, 0  ;;  %v2178_v62 = vld [vmem:[#allocation7 + $0x58] sm:$0xff]  ;;  %v2184_v25 = vld [vmem:[#allocation7 + $0x88] sm:$0xff] }
  0x98   :  { %vm198_vm14 = vcmp.lt.s32.totalorder %v197_v27, 2 }
  0x99   :  { %v172_v2 = vclz %v2867_v63  ;;  %vm306_vm9 = vcmp.eq.s32.totalorder %v301_v26, 2  ;;  %vm303_vm11 = vcmp.eq.s32.totalorder %v301_v26, 0  ;;  %vm302_vm13 = vcmp.lt.s32.totalorder %v301_v26, 2  ;;  %v2186_v26 = vld [vmem:[#allocation7 + $0x98] sm:$0xff] }
  0x9a   :  { %v2925_v27 = vpack.c.bf16 %v2186_v26, %v2184_v25 }
  0x9b   :  { %v2868_v4 = vadd.s32 4294967294, %v172_v2  ;;  %v2175_v2 = vld [vmem:[#allocation7 + $0x40] sm:$0xff] }
  0x9d   :  { %vm2869_vm6 = vcmp.lt.s32.totalorder %v2868_v4, 0 }
  0x9e   :  { %v175_v7 = vsel %vm2869_vm6, 0, %v2868_v4  ;;  %v2177_v4 = vld [vmem:[#allocation7 + $0x50] sm:$0xff]  ;;  %vm2261_vm6 = vcmask 1045509  }
  0x9f   :  { %v176_v8 = vsub.s32 32, %v175_v7  ;;  %v177_v9 = vshll.u32 %v168_v61, %v175_v7  ;;  %v180_v10 = vsub.s32 4294967266, %v175_v7  ;;  %v2176_v61 = vld [vmem:[#allocation7 + $0x48] sm:$0xff]  ;;  %v2919_v7 = vpack.c.bf16 %v2177_v4, %v2175_v2 }
  0xa0   :  { %v2917_v63 = vpack.c.bf16 %v2178_v62, %v2176_v61  ;;  %v3378_v62 = vmov 0.0  }
  0xa1   :  { %v178_v11 = vshrl.u32 %v160_v5, %v176_v8  ;;  %v181_v12 = vadd.s32 127, %v180_v10  ;;  %v2360_v5 = vld [vmem:[#allocation8 + $0x28] sm:$0xff]  ;;  %v2362_v8 = vld [vmem:[#allocation8 + $0x38] sm:$0xff]  ;;  %v2359_v10 = vld [vmem:[#allocation8 + $0x20] sm:$0xff] }
  0xa2   :  { %2918 = vmatprep.subr.bf16.mxu0 %v2917_v63  ;;  %v3564_v63 = vsel %vm313_vm0, 1.0, %v3378_v62 }
  0xa3   :  { %v179_v13 = vor.u32 %v178_v11, %v177_v9  ;;  %v182_v14 = vshll.u32 %v181_v12, 23  ;;  %v2977_v9 = vpack.c.bf16 %v2362_v8, %v2360_v5  ;;  %2920 = vmatpush1.bf16.msra.mxu0 %v2919_v7  ;;  %v2361_v11 = vld [vmem:[#allocation8 + $0x30] sm:$0xff] }
  0xa4   :  { %v2979_v12 = vpack.c.bf16 %v2361_v11, %v2359_v10 }
  0xa5   :  { %v183_v15 = vor.u32 4788187, %v182_v14  ;;  %v186_v16 = vcvt.s32.f32 %v179_v13  ;;  %v2180_v13 = vld [vmem:[#allocation7 + $0x68] sm:$0xff]  ;;  %v2182_v14 = vld [vmem:[#allocation7 + $0x78] sm:$0xff] }
  0xa7   :  { %v184_v17 = vand.u32 2147483647, %v183_v15  ;;  %v2921_v15 = vpack.c.bf16 %v2182_v14, %v2180_v13 }
  0xa9   :  { %v187_v19 = vmul.f32 %v186_v16, %v184_v17  ;;  %v2179_v16 = vld [vmem:[#allocation7 + $0x60] sm:$0xff]  ;;  %v2181_v17 = vld [vmem:[#allocation7 + $0x70] sm:$0xff]  ;;  %2922 = vmatprep.subr.bf16.mxu0 %v2921_v15 }
  0xab   :  { %v188_v20 = vxor.u32 2147483648, %v187_v19 }
  0xad   :  { %v189_v22 = vsel %vm106_vm7, %v188_v20, %v187_v19  ;;  %v2923_v19 = vpack.c.bf16 %v2181_v17, %v2179_v16  ;;  %v2366_v20 = vld [vmem:[#allocation8 + $0x58] sm:$0xff]  ;;  %vm2264_vm7 = vcmask 1046534  }
  0xae   :  { %v192_v23 = vsel %vm105_vm8, %v3498_v3, %v189_v22  ;;  %v3372_v3 = vmov 3   ;;  %v2365_v22 = vld [vmem:[#allocation8 + $0x50] sm:$0xff]  ;;  %vm2266_vm8 = vcmask 1047559  }
  0xaf   :  { %3185 = vcosq.f32 %v192_v23  ;;  %v2983_v24 = vpack.c.bf16 %v2365_v22, %v2363_v21  ;;  %2924 = vmatpush1.bf16.msra.mxu0 %v2923_v19 }
  0xb0   :  { %3187 = vsinq.f32 %v192_v23  ;;  %v2981_v23 = vpack.c.bf16 %v2366_v20, %v2364_v18  ;;  %2926 = vmatprep.subr.bf16.mxu0 %v2925_v27 }
  0xb9   :  { %v3186_v28 = vpop.eup %3185 }
  0xba   :  { %v3188_v29 = vpop.eup %3187  ;;  %v203_v30 = vxor.u32 2147483648, %v3186_v28 }
  0xbb   :  { %v200_v31 = vxor.u32 2147483648, %v3188_v29 }
  0xbc   :  { %v308_v6 = vsel %vm306_vm9, %v203_v30, %v3188_v29  ;;  %v204_v32 = vsel %vm202_vm10, %v203_v30, %v3188_v29  ;;  %v2185_v29 = vld [vmem:[#allocation7 + $0x90] sm:$0xff]  ;;  %v2368_v30 = vld [vmem:[#allocation8 + $0x68] sm:$0xff] }
  0xbd   :  { %v305_v33 = vsel %vm303_vm11, %v3186_v28, %v200_v31  ;;  %v201_v34 = vsel %vm199_vm12, %v3186_v28, %v200_v31  ;;  %v2183_v28 = vld [vmem:[#allocation7 + $0x80] sm:$0xff] }
  0xbe   :  { %v309_v35 = vsel %vm302_vm13, %v305_v33, %v308_v6  ;;  %v205_v36 = vsel %vm198_vm14, %v201_v34, %v204_v32  ;;  %v2927_v31 = vpack.c.bf16 %v2185_v29, %v2183_v28  ;;  %v2370_v6 = vld [vmem:[#allocation8 + $0x78] sm:$0xff]  ;;  %v2367_v32 = vld [vmem:[#allocation8 + $0x60] sm:$0xff]  ;;  %v2369_v33 = vld [vmem:[#allocation8 + $0x70] sm:$0xff] }
  0xbf   :  { %v3519_v37 = vsel %vm196_vm15, nan, %v309_v35  ;;  %v206_v38 = vsel %vm196_vm15, nan, %v205_v36  ;;  %v2985_v34 = vpack.c.bf16 %v2370_v6, %v2368_v30  ;;  %v2987_v35 = vpack.c.bf16 %v2369_v33, %v2367_v32  ;;  %v2188_v36 = vld [vmem:[#allocation7 + $0xa8] sm:$0xff] }
  0xc0   :  { %446 = vperm.xlu1 %3165, %v3519_v37   ;;  %321 = vperm.xlu0 %3164, %v3519_v37   ;;  %v3528_v47 = vsub.f32 0.0, %v3519_v37 }
  0xc1   :  { %2928 = vmatpush1.bf16.msra.mxu0 %v2927_v31 }
  0xc4   :  { %3167 = vset.pattern.permute.xlu1 %v3371_v39  ;;  %325 = vperm.xlu0 %3164, %v206_v38  }
  0xc5   :  { %692 = vperm.xlu1 %3167, %v3519_v37  }
  0xc8   :  { %3166 = vset.pattern.permute.xlu0 %v3363_v0 }
  0xc9   :  { %3169 = vset.pattern.permute.xlu1 %v3372_v3  ;;  %449 = vperm.xlu0 %3166, %v206_v38  }
  0xca   :  { %938 = vperm.xlu1 %3169, %v3519_v37  }
  0xcd   :  { %3168 = vset.pattern.permute.xlu0 %v3371_v39 }
  0xce   :  { %3171 = vset.pattern.permute.xlu1 %v3373_v42  ;;  %695 = vperm.xlu0 %3168, %v206_v38  }
  0xcf   :  { %1184 = vperm.xlu1 %3171, %v3519_v37  }
  0xd2   :  { %3170 = vset.pattern.permute.xlu0 %v3372_v3 }
  0xd3   :  { %3173 = vset.pattern.permute.xlu1 %v3364_v1  ;;  %941 = vperm.xlu0 %3170, %v206_v38   ;;  %v3375_v1 = vmov 6  }
  0xd4   :  { %376 = vperm.xlu1 %3173, %v3528_v47  }
  0xd7   :  { %3172 = vset.pattern.permute.xlu0 %v3373_v42 }
  0xd8   :  { %3174 = vset.pattern.permute.xlu1 %v3363_v0  ;;  %1187 = vperm.xlu0 %3172, %v206_v38   ;;  %v2355_v0 = vld [vmem:[#allocation8] sm:$0xff] }
  0xd9   :  { %498 = vperm.xlu1 %3174, %v3528_v47   ;;  %v2975_v60 = vpack.c.bf16 %v2357_v59, %v2355_v0  ;;  %v3377_v0 = vmov 1.0  }
  0xda   :  { %v3555_v59 = vsel %vm313_vm0, 0.0, %v3377_v0 }
  0xdb   :  { %2976 = vmatpush1.bf16.msra.mxu1 %v2975_v60 }
  0xdc   :  { %3176 = vset.pattern.permute.xlu0 %v3374_v57  ;;  %2978 = vmatprep.subr.bf16.mxu1 %v2977_v9 }
  0xdd   :  { %3175 = vset.pattern.permute.xlu1 %v3374_v57  ;;  %1433 = vperm.xlu0 %3176, %v206_v38  }
  0xde   :  { %1430 = vperm.xlu1 %3175, %v3519_v37  }
  0xdf   :  { %2980 = vmatpush1.bf16.msra.mxu1 %v2979_v12 }
  0xe0   :  { %2982 = vmatprep.subr.bf16.mxu1 %v2981_v23 }
  0xe1   :  { %3182 = vset.pattern.permute.xlu0 %v3375_v1 }
  0xe2   :  { %3177 = vset.pattern.permute.xlu1 %v3371_v39  ;;  %1679 = vperm.xlu0 %3182, %v206_v38   ;;  %v2187_v39 = vld [vmem:[#allocation7 + $0xa0] sm:$0xff] }
  0xe3   :  { %744 = vperm.xlu1 %3177, %v3528_v47   ;;  %2984 = vmatpush1.bf16.msra.mxu1 %v2983_v24 }
  0xe4   :  { %2986 = vmatprep.subr.bf16.mxu1 %v2985_v34 }
  0xe6   :  { %3184 = vset.pattern.permute.xlu0 %v3376_v58 }
  0xe7   :  { %3178 = vset.pattern.permute.xlu1 %v3372_v3  ;;  %1925 = vperm.xlu0 %3184, %v206_v38   ;;  %v2189_v3 = vld [vmem:[#allocation7 + $0xb0] sm:$0xff] }
  0xe8   :  { %990 = vperm.xlu1 %3178, %v3528_v47   ;;  %2988 = vmatpush1.bf16.msra.mxu1 %v2987_v35  ;;  %v2931_v41 = vpack.c.bf16 %v2189_v3, %v2187_v39 }
  0xec   :  { %3179 = vset.pattern.permute.xlu1 %v3373_v42  ;;  %v2374_v42 = vld [vmem:[#allocation8 + $0x98] sm:$0xff] }
  0xed   :  { %1236 = vperm.xlu1 %3179, %v3528_v47   ;;  %v2989_v45 = vpack.c.bf16 %v2374_v42, %v2372_v40 }
  0xef   :  { %2990 = vmatprep.subr.bf16.mxu1 %v2989_v45 }
  0xf0   :  { %2992 = vmatpush1.bf16.msra.mxu1 %v2991_v46 }
  0xf1   :  { %3180 = vset.pattern.permute.xlu1 %v3374_v57  ;;  %2994 = vmatprep.subr.bf16.mxu1 %v2993_v55  ;;  %v3545_v57 = vld [vmem:[#allocation5 + $0x8] sm:$0xff] }
  0xf2   :  { %1482 = vperm.xlu1 %3180, %v3528_v47   ;;  %vm314_vm1 = vcmp.ne.f32.partialorder %v3545_v57, 0.0 }
  0xf3   :  { %v3560_v61 = vsel %vm314_vm1, 0.0, %v3377_v0  ;;  %v3568_v2 = vsel %vm314_vm1, 1.0, %v3378_v62 }
  0xf6   :  { %3181 = vset.pattern.permute.xlu1 %v3375_v1 }
  0xf7   :  { %1676 = vperm.xlu1 %3181, %v3519_v37  }
  0xfb   :  { %1728 = vperm.xlu1 %3181, %v3528_v47  }
  0xff   :  { %3183 = vset.pattern.permute.xlu1 %v3376_v58 }
 0x100   :  { %1922 = vperm.xlu1 %3183, %v3519_v37   ;;  %v2190_v37 = vld [vmem:[#allocation7 + $0xb8] sm:$0xff] }
 0x101   :  { %v2929_v38 = vpack.c.bf16 %v2190_v37, %v2188_v36 }
 0x103   :  { %2930 = vmatprep.subr.bf16.mxu0 %v2929_v38 }
 0x104   :  { %1974 = vperm.xlu1 %3183, %v3528_v47   ;;  %v2192_v47 = vld [vmem:[#allocation7 + $0xc8] sm:$0xff]  ;;  %2932 = vmatpush1.bf16.msra.mxu0 %v2931_v41 }
 0x105   :  { %v2933_v50 = vpack.c.bf16 %v2194_v48, %v2192_v47 }
 0x107   :  { %2934 = vmatprep.subr.bf16.mxu0 %v2933_v50 }
 0x108   :  { %2936 = vmatpush1.bf16.msra.mxu0 %v2935_v54 }
 0x13f   :  { %v3548_v1 = vpop.permute.xlu1 %446  ;;  %v3550_v58 = vpop.permute.xlu0 %321 }
 0x140   :  { %7244 = vst [vmem:[#allocation20_spill] sm:$0xff] %v3548_v1  ;;  %v329_v13 = vrot.slane %v3550_v58, 3  ;;  %v330_v14 = vrot.slane %v3550_v58, 4  ;;  %v331_v15 = vrot.slane %v3550_v58, 5  ;;  %v332_v16 = vrot.slane %v3550_v58, 6 }
 0x141   :  { %v333_v18 = vrot.slane %v3550_v58, 7 }
 0x143   :  { %v3582_v17 = vpop.permute.xlu0 %325 }
 0x144   :  { %v3585_v19 = vpop.permute.xlu1 %692  ;;  %v3588_v20 = vrot.slane %v3582_v17, 1  ;;  %v3591_v21 = vrot.slane %v3582_v17, 3  ;;  %v3594_v22 = vrot.slane %v3582_v17, 4  ;;  %v3600_v26 = vrot.slane %v3582_v17, 2 }
 0x145   :  { %7245 = vst [vmem:[#allocation21_spill] sm:$0xff] %v3585_v19  ;;  %v3607_v31 = vrot.slane %v3582_v17, 5  ;;  %v3610_v6 = vrot.slane %v3582_v17, 6  ;;  %v3613_v32 = vrot.slane %v3582_v17, 7  ;;  %v357_v33 = vsel %vm313_vm0, %v3550_v58, %v3582_v17 }
 0x146   :  { %v358_v34 = vsel %vm314_vm1, %v3550_v58, %v3582_v17  ;;  %v3628_v36 = vsel %vm313_vm0, %v329_v13, %v3591_v21  ;;  %v3633_v37 = vsel %vm314_vm1, %v329_v13, %v3591_v21  ;;  %v3638_v38 = vsel %vm313_vm0, %v330_v14, %v3594_v22 }
 0x147   :  { %v3654_v42 = vsel %vm314_vm1, %v330_v14, %v3594_v22  ;;  %v3692_v62 = vsel %vm313_vm0, %v331_v15, %v3607_v31  ;;  %v3697_v13 = vsel %vm314_vm1, %v331_v15, %v3607_v31  ;;  %v3702_v14 = vsel %vm313_vm0, %v332_v16, %v3610_v6 }
 0x148   :  { %v3623_v35 = vpop.permute.xlu0 %449  ;;  %v370_v15 = vsel %vm314_vm1, %v332_v16, %v3610_v6  ;;  %v371_v49 = vsel %vm313_vm0, %v333_v18, %v3613_v32  ;;  %v372_v4 = vsel %vm314_vm1, %v333_v18, %v3613_v32  ;;  %v3762_v28 = vmul.f32 %v3555_v59, %v357_v33 }
 0x149   :  { %v3641_v39 = vrot.slane %v3623_v35, 7  ;;  %v3644_v3 = vrot.slane %v3623_v35, 1  ;;  %v3647_v40 = vrot.slane %v3623_v35, 2  ;;  %v3649_v41 = vpop.permute.xlu1 %938  ;;  %v3657_v43 = vrot.slane %v3623_v35, 3 }
 0x14a   :  { %7246 = vst [vmem:[#allocation22_spill] sm:$0xff] %v3649_v41  ;;  %v3660_v44 = vrot.slane %v3623_v35, 4  ;;  %v3663_v45 = vrot.slane %v3623_v35, 5  ;;  %v3666_v46 = vrot.slane %v3623_v35, 6  ;;  %v3672_v47 = vsel %vm313_vm0, %v3548_v1, %v3623_v35 }
 0x14b   :  { %7247 = vst [vmem:[#allocation23_spill] sm:$0xff] %v3672_v47  ;;  %v3678_v48 = vsel %vm314_vm1, %v3548_v1, %v3623_v35  ;;  %v3774_v11 = vmul.f32 %v3560_v61, %v358_v34 }
 0x14c   :  { %7248 = vst [vmem:[#allocation24_spill] sm:$0xff] %v3678_v48 }
 0x14d   :  { %v3687_v0 = vpop.permute.xlu0 %695  ;;  %v596_v48 = vrot.slane %v3774_v11, 7 }
 0x14e   :  { %7249 = vst [vmem:[#allocation25_spill] sm:$0xff] %v3687_v0  ;;  %v3705_v54 = vrot.slane %v3687_v0, 6  ;;  %v3708_v55 = vrot.slane %v3687_v0, 7  ;;  %v3711_v53 = vrot.slane %v3687_v0, 1  ;;  %v3713_v52 = vpop.permute.xlu1 %1184  ;;  %v3719_v30 = vrot.slane %v3687_v0, 2 }
 0x14f   :  { %7253 = vst [vmem:[#allocation29_spill] sm:$0xff] %v3713_v52  ;;  %v3722_v27 = vrot.slane %v3687_v0, 3  ;;  %v3725_v25 = vrot.slane %v3687_v0, 4  ;;  %v3728_v51 = vrot.slane %v3687_v0, 5  ;;  %v3734_v50 = vsel %vm313_vm0, %v3585_v19, %v3687_v0 }
 0x150   :  { %7250 = vst [vmem:[#allocation26_spill] sm:$0xff] %v3705_v54  ;;  %7251 = vst [vmem:[#allocation27_spill] sm:$0xff] %v3708_v55  ;;  %v3740_v16 = vsel %vm314_vm1, %v3585_v19, %v3687_v0 }
 0x151   :  { %7252 = vst [vmem:[#allocation28_spill] sm:$0xff] %v3711_v53  ;;  %7254 = vst [vmem:[#allocation30_spill] sm:$0xff] %v3719_v30 }
 0x152   :  { %7255 = vst [vmem:[#allocation31_spill] sm:$0xff] %v3722_v27  ;;  %7256 = vst [vmem:[#allocation32_spill] sm:$0xff] %v3725_v25  ;;  %v3749_v12 = vpop.permute.xlu0 %941 }
 0x153   :  { %7257 = vst [vmem:[#allocation33_spill] sm:$0xff] %v3728_v51  ;;  %7258 = vst [vmem:[#allocation34_spill] sm:$0xff] %v3734_v50  ;;  %v3765_v24 = vrot.slane %v3749_v12, 5  ;;  %v3768_v23 = vrot.slane %v3749_v12, 6  ;;  %v3771_v5 = vrot.slane %v3749_v12, 7  ;;  %v377_v29 = vpop.permute.xlu1 %376  ;;  %v3777_v10 = vrot.slane %v3749_v12, 1 }
 0x154   :  { %7259 = vst [vmem:[#allocation35_spill] sm:$0xff] %v3740_v16  ;;  %7260 = vst [vmem:[#allocation36_spill] sm:$0xff] %v3749_v12  ;;  %v3780_v18 = vrot.slane %v3749_v12, 2  ;;  %v3783_v33 = vrot.slane %v3749_v12, 3  ;;  %v3786_v9 = vrot.slane %v3749_v12, 4  ;;  %v3792_v8 = vsel %vm313_vm0, %v3649_v41, %v3749_v12 }
 0x155   :  { %7261 = vst [vmem:[#allocation37_spill] sm:$0xff] %v3765_v24  ;;  %7262 = vst [vmem:[#allocation38_spill] sm:$0xff] %v3768_v23  ;;  %v378_v34 = vrot.slane %v377_v29, 1  ;;  %v379_v7 = vrot.slane %v377_v29, 2  ;;  %v380_v60 = vrot.slane %v377_v29, 3  ;;  %v381_v52 = vrot.slane %v377_v29, 4 }
 0x156   :  { %7263 = vst [vmem:[#allocation39_spill] sm:$0xff] %v3771_v5  ;;  %7264 = vst [vmem:[#allocation40_spill] sm:$0xff] %v3777_v10  ;;  %v382_v10 = vrot.slane %v377_v29, 5  ;;  %v383_v5 = vrot.slane %v377_v29, 6  ;;  %v384_v23 = vrot.slane %v377_v29, 7  ;;  %v3850_v50 = vmul.f32 %v3555_v59, %v3628_v36 }
 0x157   :  { %7265 = vst [vmem:[#allocation41_spill] sm:$0xff] %v3780_v18  ;;  %7266 = vst [vmem:[#allocation42_spill] sm:$0xff] %v3783_v33  ;;  %v3798_v33 = vsel %vm314_vm1, %v3649_v41, %v3749_v12  ;;  %v395_v18 = vsel %vm313_vm0, %v378_v34, %v3588_v20  ;;  %v396_v24 = vsel %vm314_vm1, %v378_v34, %v3588_v20 }
 0x158   :  { %7267 = vst [vmem:[#allocation43_spill] sm:$0xff] %v3786_v9  ;;  %7268 = vst [vmem:[#allocation44_spill] sm:$0xff] %v3792_v8  ;;  %v393_v9 = vsel %vm313_vm0, %v377_v29, %v3582_v17  ;;  %v394_v8 = vsel %vm314_vm1, %v377_v29, %v3582_v17  ;;  %v398_v12 = vsel %vm314_vm1, %v379_v7, %v3600_v26 }
 0x159   :  { %7269 = vst [vmem:[#allocation45_spill] sm:$0xff] %v3798_v33  ;;  %v397_v33 = vsel %vm313_vm0, %v379_v7, %v3600_v26  ;;  %v399_v17 = vsel %vm313_vm0, %v380_v60, %v3591_v21  ;;  %v400_v29 = vsel %vm314_vm1, %v380_v60, %v3591_v21  ;;  %v401_v34 = vsel %vm313_vm0, %v381_v52, %v3594_v22 }
 0x15a   :  { %v402_v41 = vsel %vm314_vm1, %v381_v52, %v3594_v22  ;;  %v403_v7 = vsel %vm313_vm0, %v382_v10, %v3607_v31  ;;  %v404_v16 = vsel %vm314_vm1, %v382_v10, %v3607_v31  ;;  %v405_v60 = vsel %vm313_vm0, %v383_v5, %v3610_v6 }
 0x15b   :  { %v406_v21 = vsel %vm314_vm1, %v383_v5, %v3610_v6  ;;  %v407_v22 = vsel %vm313_vm0, %v384_v23, %v3613_v32  ;;  %v408_v52 = vsel %vm314_vm1, %v384_v23, %v3613_v32  ;;  %v3854_v10 = vmul.f32 %v3560_v61, %v3633_v37 }
 0x15c   :  { %v3858_v31 = vmul.f32 %v3555_v59, %v3638_v38  ;;  %v3862_v5 = vmul.f32 %v3560_v61, %v3654_v42  ;;  %v3866_v6 = vmul.f32 %v3555_v59, %v3692_v62  ;;  %v3870_v23 = vmul.f32 %v3560_v61, %v3697_v13 }
 0x15d   :  { %v3874_v32 = vmul.f32 %v3555_v59, %v3702_v14  ;;  %v3877_v36 = vmul.f32 %v3560_v61, %v370_v15  ;;  %v3880_v37 = vmul.f32 %v3555_v59, %v371_v49  ;;  %v3883_v38 = vmul.f32 %v3560_v61, %v372_v4 }
 0x15e   :  { %7270 = vst [vmem:[#allocation46_spill] sm:$0xff] %v3862_v5  ;;  %7271 = vst [vmem:[#allocation47_spill] sm:$0xff] %v3866_v6  ;;  %v3886_v42 = vmul.f32 %v3564_v63, %v393_v9  ;;  %v3889_v62 = vmul.f32 %v3568_v2, %v394_v8  ;;  %v3892_v13 = vmul.f32 %v3564_v63, %v395_v18  ;;  %v7294_v54 = vrot.slane %v3862_v5, 7 }
 0x15f   :  { %7272 = vst [vmem:[#allocation48_spill] sm:$0xff] %v3870_v23  ;;  %7273 = vst [vmem:[#allocation49_spill] sm:$0xff] %v3874_v32  ;;  %v3895_v14 = vmul.f32 %v3568_v2, %v396_v24  ;;  %v3898_v15 = vmul.f32 %v3564_v63, %v397_v33  ;;  %v3901_v49 = vmul.f32 %v3568_v2, %v398_v12 }
 0x160   :  { %7274 = vst [vmem:[#allocation50_spill] sm:$0xff] %v3877_v36  ;;  %7275 = vst [vmem:[#allocation51_spill] sm:$0xff] %v3880_v37  ;;  %v3904_v4 = vmul.f32 %v3564_v63, %v399_v17  ;;  %v3907_v9 = vmul.f32 %v3568_v2, %v400_v29  ;;  %v3910_v8 = vmul.f32 %v3564_v63, %v401_v34  ;;  %v548_v27 = vrot.slane %v3889_v62, 7 }
 0x161   :  { %7276 = vst [vmem:[#allocation52_spill] sm:$0xff] %v3883_v38  ;;  %7277 = vst [vmem:[#allocation53_spill] sm:$0xff] %v3898_v15  ;;  %v3913_v18 = vmul.f32 %v3568_v2, %v402_v41  ;;  %v3916_v24 = vmul.f32 %v3564_v63, %v403_v7  ;;  %v3919_v33 = vmul.f32 %v3568_v2, %v404_v16  ;;  %v7280_v41 = vrot.slane %v3548_v1, 7 }
 0x162   :  { %7278 = vst [vmem:[#allocation54_spill] sm:$0xff] %v3901_v49  ;;  %v3922_v12 = vmul.f32 %v3564_v63, %v405_v60  ;;  %v3925_v17 = vmul.f32 %v3568_v2, %v406_v21  ;;  %v3928_v29 = vmul.f32 %v3564_v63, %v407_v22  ;;  %v3931_v34 = vmul.f32 %v3568_v2, %v408_v52 }
 0x163   :  { %v481_v7 = vsel %vm313_vm0, %v7280_v41, %v3641_v39  ;;  %v7281_v16 = vmov %v7280_v41  ;;  %v7282_v21 = vrot.slane %v3548_v1, 3  ;;  %v7284_v52 = vrot.slane %v3548_v1, 4 }
 0x164   :  { %7279 = vst [vmem:[#allocation55_spill] sm:$0xff] %v3925_v17  ;;  %v482_v60 = vsel %vm314_vm1, %v7281_v16, %v3641_v39  ;;  %v7290_v62 = vrot.slane %v3850_v50, 7  ;;  %v7291_v55 = vrot.slane %v3904_v4, 7  ;;  %v7295_v19 = vrot.slane %v3913_v18, 7 }
 0x165   :  { %v489_v63 = vsel %vm313_vm0, %v7282_v21, %v3657_v43  ;;  %v7283_v2 = vmov %v7282_v21  ;;  %v491_v41 = vsel %vm313_vm0, %v7284_v52, %v3660_v44  ;;  %v7285_v16 = vmov %v7284_v52 }
 0x166   :  { %v490_v22 = vsel %vm314_vm1, %v7283_v2, %v3657_v43  ;;  %v492_v51 = vsel %vm314_vm1, %v7285_v16, %v3660_v44  ;;  %v7286_v21 = vrot.slane %v3548_v1, 5  ;;  %v7288_v52 = vrot.slane %v3548_v1, 6 }
 0x167   :  { %v636_v49 = vsel %vm314_vm1, %v7295_v19, %v7294_v54  ;;  %v7296_v15 = vrot.slane %v3866_v6, 7  ;;  %v7297_v47 = vrot.slane %v3916_v24, 7  ;;  %v7301_v5 = vrot.slane %v3922_v12, 7 }
 0x168   :  { %v493_v30 = vsel %vm313_vm0, %v7286_v21, %v3663_v45  ;;  %v7287_v2 = vmov %v7286_v21  ;;  %v495_v0 = vsel %vm313_vm0, %v7288_v52, %v3666_v46  ;;  %v7289_v16 = vmov %v7288_v52 }
 0x169   :  { %v494_v53 = vsel %vm314_vm1, %v7287_v2, %v3663_v45  ;;  %v496_v25 = vsel %vm314_vm1, %v7289_v16, %v3666_v46  ;;  %v547_v21 = vrot.slane %v3886_v42, 7  ;;  %v595_v52 = vrot.slane %v3762_v28, 7 }
 0x16a   :  { %v7036_v16 = vrot.slane %v3858_v31, 7  ;;  %v628_v42 = vsel %vm314_vm1, %v548_v27, %v596_v48  ;;  %v4021_v2 = vsel %vm313_vm0, %v7291_v55, %v7290_v62  ;;  %v7293_v28 = vrot.slane %v3910_v8, 7 }
 0x16b   :  { %v627_v1 = vsel %vm313_vm0, %v547_v21, %v595_v52  ;;  %7292 = vst [vmem:[#allocation56_spill] sm:$0xff] %v4021_v2  ;;  %v637_v55 = vsel %vm313_vm0, %v7297_v47, %v7296_v15  ;;  %v7298_v62 = vrot.slane %v3870_v23, 7  ;;  %v7299_v2 = vrot.slane %v3919_v33, 7 }
 0x16c   :  { %v635_v11 = vsel %vm313_vm0, %v7293_v28, %v7036_v16  ;;  %v7300_v16 = vrot.slane %v3874_v32, 7  ;;  %v7302_v54 = vrot.slane %v3877_v36, 7  ;;  %v7303_v6 = vrot.slane %v3925_v17, 7 }
 0x16d   :  { %v638_v28 = vsel %vm314_vm1, %v7299_v2, %v7298_v62  ;;  %v7304_v15 = vrot.slane %v3880_v37, 7  ;;  %v7305_v23 = vrot.slane %v3928_v29, 7  ;;  %v7306_v62 = vrot.slane %v3883_v38, 7 }
 0x16e   :  { %v639_v19 = vsel %vm313_vm0, %v7301_v5, %v7300_v16  ;;  %v640_v47 = vsel %vm314_vm1, %v7303_v6, %v7302_v54  ;;  %v7307_v32 = vrot.slane %v3931_v34, 7  ;;  %v4071_v16 = vmul.f32 %v627_v1, %v481_v7 }
 0x16f   :  { %v641_v2 = vsel %vm313_vm0, %v7305_v23, %v7304_v15  ;;  %v4073_v36 = vmul.f32 %v628_v42, %v482_v60  ;;  %v4075_v17 = vmul.f32 %v635_v11, %v489_v63  ;;  %v4077_v6 = vmul.f32 %v636_v49, %v490_v22 }
 0x170   :  { %v642_v5 = vsel %vm314_vm1, %v7307_v32, %v7306_v62  ;;  %v4079_v54 = vmul.f32 %v637_v55, %v491_v41  ;;  %v4081_v37 = vmul.f32 %v638_v28, %v492_v51  ;;  %v4083_v23 = vmul.f32 %v639_v19, %v493_v30  ;;  %v4103_v30 = vpop.permute.xlu0 %1187  ;;  %v499_v19 = vpop.permute.xlu1 %498 }
 0x171   :  { %v4085_v15 = vmul.f32 %v640_v47, %v494_v53  ;;  %v7308_v38 = vrot.slane %v3854_v10, 7  ;;  %v7309_v32 = vrot.slane %v3907_v9, 7  ;;  %v4095_v7 = vmul.f32 %v641_v2, %v495_v0  ;;  %7312 = vst [vmem:[#allocation59_spill] sm:$0xff] %v4103_v30 }
 0x172   :  { %v4097_v49 = vmul.f32 %v642_v5, %v496_v25  ;;  %v4101_v51 = vsel %vm313_vm0, %v595_v52, %v547_v21  ;;  %v4107_v53 = vsel %vm314_vm1, %v596_v48, %v548_v27  ;;  %v4120_v48 = vrot.slane %v4103_v30, 4 }
 0x173   :  { %v4093_v1 = vsel %vm314_vm1, %v7309_v32, %v7308_v38  ;;  %7311 = vst [vmem:[#allocation58_spill] sm:$0xff] %v4095_v7  ;;  %v4123_v42 = vrot.slane %v4103_v30, 5  ;;  %v4126_v11 = vrot.slane %v4103_v30, 6  ;;  %v4129_v55 = vrot.slane %v4103_v30, 7 }
 0x174   :  { %7310 = vst [vmem:[#allocation57_spill] sm:$0xff] %v4093_v1  ;;  %7313 = vst [vmem:[#allocation60_spill] sm:$0xff] %v4120_v48  ;;  %v4132_v28 = vrot.slane %v4103_v30, 1  ;;  %v7318_v47 = vrot.slane %v3550_v58, 1  ;;  %v7320_v32 = vrot.slane %v3550_v58, 2  ;;  %v501_v22 = vrot.slane %v499_v19, 1 }
 0x175   :  { %7314 = vst [vmem:[#allocation61_spill] sm:$0xff] %v4123_v42  ;;  %7315 = vst [vmem:[#allocation62_spill] sm:$0xff] %v4126_v11  ;;  %v502_v25 = vrot.slane %v499_v19, 2  ;;  %v504_v58 = vrot.slane %v499_v19, 4  ;;  %v505_v63 = vrot.slane %v499_v19, 5  ;;  %v7326_v42 = vrot.slane %v3850_v50, 7 }
 0x176   :  { %7316 = vst [vmem:[#allocation63_spill] sm:$0xff] %v4129_v55  ;;  %7317 = vst [vmem:[#allocation64_spill] sm:$0xff] %v4132_v28  ;;  %v359_v2 = vsel %vm313_vm0, %v7318_v47, %v3588_v20  ;;  %v7319_v62 = vmov %v7318_v47  ;;  %v361_v27 = vsel %vm313_vm0, %v7320_v32, %v3600_v26  ;;  %v7321_v52 = vmov %v7320_v32  ;;  %v7347_v55 = vld [vmem:[#allocation48_spill] sm:$0xff] }
 0x177   :  { %v360_v5 = vsel %vm314_vm1, %v7319_v62, %v3588_v20  ;;  %v362_v21 = vsel %vm314_vm1, %v7321_v52, %v3600_v26  ;;  %v4155_v47 = vrot.slane %v4103_v30, 2  ;;  %v413_v41 = vmul.f32 %v3555_v59, %v359_v2 }
 0x178   :  { %v414_v0 = vmul.f32 %v3560_v61, %v360_v5  ;;  %v4160_v20 = vmul.f32 %v3555_v59, %v361_v27  ;;  %v500_v62 = vrot.slane %v499_v19, 7  ;;  %v503_v32 = vrot.slane %v499_v19, 3 }
 0x179   :  { %7322 = vst [vmem:[#allocation65_spill] sm:$0xff] %v4155_v47  ;;  %v4163_v38 = vmul.f32 %v3560_v61, %v362_v21  ;;  %v506_v26 = vrot.slane %v499_v19, 6  ;;  %v517_v59 = vsel %vm313_vm0, %v499_v19, %v3623_v35  ;;  %v518_v61 = vsel %vm314_vm1, %v499_v19, %v3623_v35 }
 0x17a   :  { %v515_v52 = vsel %vm313_vm0, %v500_v62, %v3641_v39  ;;  %v516_v2 = vsel %vm314_vm1, %v500_v62, %v3641_v39  ;;  %v519_v21 = vsel %vm313_vm0, %v501_v22, %v3644_v3  ;;  %v520_v27 = vsel %vm314_vm1, %v501_v22, %v3644_v3 }
 0x17b   :  { %v521_v39 = vsel %vm313_vm0, %v502_v25, %v3647_v40  ;;  %v522_v5 = vsel %vm314_vm1, %v502_v25, %v3647_v40  ;;  %v523_v35 = vsel %vm313_vm0, %v503_v32, %v3657_v43  ;;  %v524_v19 = vsel %vm314_vm1, %v503_v32, %v3657_v43 }
 0x17c   :  { %v525_v22 = vsel %vm313_vm0, %v504_v58, %v3660_v44  ;;  %v526_v62 = vsel %vm314_vm1, %v504_v58, %v3660_v44  ;;  %v527_v25 = vsel %vm313_vm0, %v505_v63, %v3663_v45  ;;  %v528_v60 = vsel %vm314_vm1, %v505_v63, %v3663_v45 }
 0x17d   :  { %v529_v43 = vsel %vm313_vm0, %v506_v26, %v3666_v46  ;;  %v597_v32 = vrot.slane %v413_v41, 7  ;;  %v530_v47 = vsel %vm314_vm1, %v506_v26, %v3666_v46  ;;  %v598_v28 = vrot.slane %v414_v0, 7 }
 0x17e   :  { %v7052_v44 = vrot.slane %v4160_v20, 7  ;;  %v7323_v30 = vrot.slane %v3892_v13, 7  ;;  %v7325_v41 = vrot.slane %v3904_v4, 7  ;;  %v7327_v0 = vrot.slane %v3907_v9, 7 }
 0x17f   :  { %v7328_v26 = vrot.slane %v3854_v10, 7  ;;  %v7332_v9 = vrot.slane %v3910_v8, 7  ;;  %v7333_v10 = vrot.slane %v3858_v31, 7  ;;  %v7340_v8 = vrot.slane %v3913_v18, 7 }
 0x180   :  { %v629_v11 = vsel %vm313_vm0, %v7323_v30, %v597_v32  ;;  %v7324_v45 = vmov %v7323_v30  ;;  %v665_v46 = vsel %vm313_vm0, %v7326_v42, %v7325_v41  ;;  %v7329_v30 = vrot.slane %v3895_v14, 7  ;;  %v7334_v41 = vld [vmem:[#allocation24_spill] sm:$0xff] }
 0x181   :  { %v661_v63 = vsel %vm313_vm0, %v597_v32, %v7324_v45  ;;  %v666_v58 = vsel %vm314_vm1, %v7328_v26, %v7327_v0  ;;  %v7330_v32 = vld [vmem:[#allocation23_spill] sm:$0xff]  ;;  %v667_v42 = vsel %vm313_vm0, %v7333_v10, %v7332_v9  ;;  %v7335_v26 = vld [vmem:[#allocation53_spill] sm:$0xff]  ;;  %v7343_v10 = vrot.slane %v3916_v24, 7 }
 0x182   :  { %v630_v13 = vsel %vm314_vm1, %v7329_v30, %v598_v28  ;;  %v4240_v45 = vmul.f32 %v629_v11, %v7330_v32  ;;  %v7331_v50 = vmov %v7329_v30  ;;  %v7336_v30 = vrot.slane %v7335_v26, 7  ;;  %v7337_v11 = vld [vmem:[#allocation54_spill] sm:$0xff]  ;;  %v7352_v24 = vld [vmem:[#allocation55_spill] sm:$0xff] }
 0x183   :  { %v662_v4 = vsel %vm314_vm1, %v598_v28, %v7331_v50  ;;  %v4253_v0 = vmul.f32 %v630_v13, %v7334_v41  ;;  %v7338_v32 = vrot.slane %v7337_v11, 7  ;;  %v7339_v28 = vrot.slane %v4163_v38, 7  ;;  %v7341_v50 = vld [vmem:[#allocation46_spill] sm:$0xff]  ;;  %v7344_v41 = vld [vmem:[#allocation47_spill] sm:$0xff] }
 0x184   :  { %v663_v14 = vsel %vm313_vm0, %v7052_v44, %v7336_v30  ;;  %v7342_v9 = vrot.slane %v7341_v50, 7  ;;  %v7345_v48 = vrot.slane %v7344_v41, 7  ;;  %v7346_v44 = vrot.slane %v3919_v33, 7  ;;  %v7354_v41 = vld [vmem:[#allocation50_spill] sm:$0xff] }
 0x185   :  { %v664_v31 = vsel %vm314_vm1, %v7339_v28, %v7338_v32  ;;  %v7348_v1 = vrot.slane %v7347_v55, 7  ;;  %v7349_v18 = vrot.slane %v3922_v12, 7  ;;  %v7350_v28 = vld [vmem:[#allocation49_spill] sm:$0xff]  ;;  %v7355_v11 = vrot.slane %v7354_v41, 7  ;;  %v7357_v55 = vld [vmem:[#allocation51_spill] sm:$0xff] }
 0x186   :  { %v668_v13 = vsel %vm314_vm1, %v7342_v9, %v7340_v8  ;;  %v669_v30 = vsel %vm313_vm0, %v7345_v48, %v7343_v10  ;;  %v7351_v50 = vrot.slane %v7350_v28, 7  ;;  %v7353_v9 = vrot.slane %v7352_v24, 7 }
 0x187   :  { %v670_v32 = vsel %vm314_vm1, %v7348_v1, %v7346_v44  ;;  %v7356_v33 = vrot.slane %v3928_v29, 7  ;;  %v7358_v10 = vrot.slane %v7357_v55, 7  ;;  %v7359_v12 = vrot.slane %v3931_v34, 7  ;;  %v7360_v44 = vld [vmem:[#allocation52_spill] sm:$0xff] }
 0x188   :  { %v671_v8 = vsel %vm313_vm0, %v7351_v50, %v7349_v18  ;;  %v672_v48 = vsel %vm314_vm1, %v7355_v11, %v7353_v9  ;;  %v7361_v28 = vrot.slane %v7360_v44, 7  ;;  %v4310_v50 = vmul.f32 %v4101_v51, %v515_v52 }
 0x189   :  { %v673_v1 = vsel %vm313_vm0, %v7358_v10, %v7356_v33  ;;  %v4313_v24 = vmul.f32 %v4107_v53, %v516_v2  ;;  %v677_v11 = vmul.f32 %v661_v63, %v517_v59  ;;  %v678_v29 = vmul.f32 %v662_v4, %v518_v61  ;;  %v7362_v61 = vld [vmem:[#allocation26_spill] sm:$0xff]  ;;  %v7372_v4 = vld [vmem:[#allocation32_spill] sm:$0xff] }
 0x18a   :  { %v674_v18 = vsel %vm314_vm1, %v7361_v28, %v7359_v12  ;;  %v4315_v9 = vmul.f32 %v663_v14, %v519_v21  ;;  %v4317_v41 = vmul.f32 %v664_v31, %v520_v27  ;;  %v4319_v33 = vmul.f32 %v665_v46, %v521_v39  ;;  %v7363_v21 = vld [vmem:[#allocation21_spill] sm:$0xff] }
 0x18b   :  { %v4321_v34 = vmul.f32 %v666_v58, %v522_v5  ;;  %v4323_v55 = vmul.f32 %v667_v42, %v523_v35  ;;  %v4325_v10 = vmul.f32 %v668_v13, %v524_v19  ;;  %v4327_v12 = vmul.f32 %v669_v30, %v525_v22  ;;  %v7366_v19 = vld [vmem:[#allocation27_spill] sm:$0xff] }
 0x18c   :  { %v4329_v51 = vmul.f32 %v670_v32, %v526_v62  ;;  %v4331_v53 = vmul.f32 %v671_v8, %v527_v25  ;;  %v4333_v52 = vmul.f32 %v672_v48, %v528_v60  ;;  %v4335_v2 = vmul.f32 %v673_v1, %v529_v43  ;;  %v7369_v25 = vld [vmem:[#allocation31_spill] sm:$0xff] }
 0x18d   :  { %v4337_v59 = vmul.f32 %v674_v18, %v530_v47  ;;  %v7364_v27 = vrot.slane %v7363_v21, 6  ;;  %v7367_v60 = vrot.slane %v7363_v21, 7  ;;  %v7370_v43 = vrot.slane %v7363_v21, 3 }
 0x18e   :  { %v7373_v42 = vrot.slane %v7363_v21, 4  ;;  %v7054_v31 = vrot.slane %v4310_v50, 7  ;;  %v7055_v13 = vrot.slane %v4313_v24, 7  ;;  %v795_v30 = vrot.slane %v677_v11, 7 }
 0x18f   :  { %v727_v39 = vsel %vm313_vm0, %v7364_v27, %v7362_v61  ;;  %v7365_v5 = vmov %v7364_v27  ;;  %v729_v22 = vsel %vm313_vm0, %v7367_v60, %v7366_v19  ;;  %v7368_v47 = vmov %v7367_v60 }
 0x190   :  { %v728_v35 = vsel %vm314_vm1, %v7365_v5, %v7362_v61  ;;  %v730_v62 = vsel %vm314_vm1, %v7368_v47, %v7366_v19  ;;  %v737_v58 = vsel %vm313_vm0, %v7370_v43, %v7369_v25  ;;  %v7371_v63 = vmov %v7370_v43 }
 0x191   :  { %v738_v46 = vsel %vm314_vm1, %v7371_v63, %v7369_v25  ;;  %v739_v14 = vsel %vm313_vm0, %v7373_v42, %v7372_v4  ;;  %v796_v32 = vrot.slane %v678_v29, 7  ;;  %v7056_v44 = vrot.slane %v4323_v55, 7 }
 0x192   :  { %v7059_v28 = vrot.slane %v4325_v10, 7  ;;  %v7057_v18 = vrot.slane %v4327_v12, 7  ;;  %v7058_v27 = vrot.slane %v4329_v51, 7  ;;  %v7060_v60 = vrot.slane %v4331_v53, 7 }
 0x193   :  { %v7062_v11 = vrot.slane %v4333_v52, 7  ;;  %v843_v47 = vrot.slane %v4240_v45, 7  ;;  %v844_v43 = vrot.slane %v4253_v0, 7  ;;  %v7374_v63 = vrot.slane %v4071_v16, 7 }
 0x194   :  { %v7375_v1 = vrot.slane %v4073_v36, 7  ;;  %v7376_v45 = vrot.slane %v4075_v17, 7  ;;  %v7378_v8 = vrot.slane %v4079_v54, 7  ;;  %v7385_v29 = vrot.slane %v4095_v7, 7 }
 0x195   :  { %v873_v42 = vsel %vm313_vm0, %v7054_v31, %v7374_v63  ;;  %v7379_v31 = vrot.slane %v4081_v37, 7  ;;  %v7390_v7 = vrot.slane %v4337_v59, 7 }
 0x196   :  { %v874_v5 = vsel %vm314_vm1, %v7055_v13, %v7375_v1  ;;  %v4408_v0 = vsel %vm313_vm0, %v7056_v44, %v7376_v45  ;;  %v883_v63 = vsel %vm313_vm0, %v7057_v18, %v7378_v8  ;;  %v875_v13 = vsel %vm313_vm0, %v795_v30, %v843_v47 }
 0x197   :  { %7377 = vst [vmem:[#allocation23_spill] sm:$0xff] %v4408_v0  ;;  %v884_v1 = vsel %vm314_vm1, %v7058_v27, %v7379_v31  ;;  %v876_v45 = vsel %vm314_vm1, %v796_v32, %v844_v43  ;;  %v7380_v44 = vrot.slane %v4077_v6, 7  ;;  %v7382_v18 = vrot.slane %v4083_v23, 7 }
 0x198   :  { %v7383_v27 = vrot.slane %v4085_v15, 7  ;;  %v4458_v0 = vmul.f32 %v874_v5, %v728_v35  ;;  %v4464_v21 = vmul.f32 %v876_v45, %v730_v62  ;;  %v4486_v62 = vsel %vm314_vm1, %v844_v43, %v796_v32 }
 0x199   :  { %v4432_v8 = vsel %vm314_vm1, %v7059_v28, %v7380_v44  ;;  %v885_v31 = vsel %vm313_vm0, %v7060_v60, %v7382_v18  ;;  %v7386_v44 = vrot.slane %v4335_v2, 7  ;;  %v4460_v18 = vpop.permute.xlu1 %1430  ;;  %v4462_v60 = vmul.f32 %v875_v13, %v729_v22 }
 0x19a   :  { %7381 = vst [vmem:[#allocation24_spill] sm:$0xff] %v4432_v8  ;;  %v4446_v48 = vsel %vm314_vm1, %v7062_v11, %v7383_v27  ;;  %v4456_v8 = vmul.f32 %v873_v42, %v727_v39  ;;  %7388 = vst [vmem:[#allocation47_spill] sm:$0xff] %v4460_v18  ;;  %v4466_v27 = vmul.f32 %v883_v63, %v737_v58  ;;  %v7403_v13 = vrot.slane %v7335_v26, 7  ;;  %v7407_v18 = vld [vmem:[#allocation56_spill] sm:$0xff] }
 0x19b   :  { %7384 = vst [vmem:[#allocation53_spill] sm:$0xff] %v4446_v48  ;;  %v4454_v28 = vsel %vm313_vm0, %v7386_v44, %v7385_v29  ;;  %v4468_v11 = vmul.f32 %v884_v1, %v738_v46  ;;  %v7389_v48 = vrot.slane %v4097_v49, 7  ;;  %v4478_v35 = vmul.f32 %v885_v31, %v739_v14 }
 0x19c   :  { %7387 = vst [vmem:[#allocation46_spill] sm:$0xff] %v4454_v28  ;;  %v4482_v22 = vsel %vm313_vm0, %v843_v47, %v795_v30  ;;  %v7397_v47 = vld [vmem:[#allocation20_spill] sm:$0xff]  ;;  %v7417_v28 = vrot.slane %v4315_v9, 7 }
 0x19d   :  { %v4476_v39 = vsel %vm314_vm1, %v7390_v7, %v7389_v48  ;;  %v4492_v7 = vpop.permute.xlu0 %1433  ;;  %v745_v44 = vpop.permute.xlu1 %744  ;;  %v7398_v43 = vrot.slane %v7397_v47, 1  ;;  %v7400_v30 = vrot.slane %v7397_v47, 2 }
 0x19e   :  { %7391 = vst [vmem:[#allocation48_spill] sm:$0xff] %v4476_v39  ;;  %7392 = vst [vmem:[#allocation49_spill] sm:$0xff] %v4492_v7  ;;  %v4504_v1 = vrot.slane %v4492_v7, 3  ;;  %v4507_v45 = vrot.slane %v4492_v7, 4  ;;  %v4510_v31 = vrot.slane %v4492_v7, 5  ;;  %v4513_v32 = vrot.slane %v4492_v7, 6 }
 0x19f   :  { %v485_v42 = vsel %vm313_vm0, %v7398_v43, %v3644_v3  ;;  %v7399_v63 = vmov %v7398_v43  ;;  %v487_v48 = vsel %vm313_vm0, %v7400_v30, %v3647_v40  ;;  %v7401_v14 = vmov %v7400_v30  ;;  %v7408_v7 = vld [vmem:[#allocation57_spill] sm:$0xff] }
 0x1a0   :  { %7393 = vst [vmem:[#allocation55_spill] sm:$0xff] %v4504_v1  ;;  %7394 = vst [vmem:[#allocation50_spill] sm:$0xff] %v4507_v45  ;;  %v486_v29 = vsel %vm314_vm1, %v7399_v63, %v3644_v3  ;;  %v488_v5 = vsel %vm314_vm1, %v7401_v14, %v3647_v40  ;;  %v7402_v43 = vrot.slane %v4160_v20, 7  ;;  %v7404_v3 = vrot.slane %v4163_v38, 7  ;;  %v7405_v63 = vld [vmem:[#allocation54_spill] sm:$0xff] }
 0x1a1   :  { %7395 = vst [vmem:[#allocation51_spill] sm:$0xff] %v4510_v31  ;;  %7396 = vst [vmem:[#allocation52_spill] sm:$0xff] %v4513_v32  ;;  %v7406_v58 = vrot.slane %v7405_v63, 7  ;;  %v4548_v39 = vmul.f32 %v7407_v18, %v487_v48  ;;  %v4551_v40 = vmul.f32 %v7408_v7, %v488_v5  ;;  %v746_v20 = vrot.slane %v745_v44, 6  ;;  %v7409_v5 = vld [vmem:[#allocation25_spill] sm:$0xff] }
 0x1a2   :  { %v631_v46 = vsel %vm313_vm0, %v7403_v13, %v7402_v43  ;;  %v747_v14 = vrot.slane %v745_v44, 7  ;;  %v748_v26 = vrot.slane %v745_v44, 1  ;;  %v749_v32 = vrot.slane %v745_v44, 2 }
 0x1a3   :  { %v632_v30 = vsel %vm314_vm1, %v7406_v58, %v7404_v3  ;;  %v647_v47 = vmul.f32 %v631_v46, %v485_v42  ;;  %v750_v31 = vrot.slane %v745_v44, 3  ;;  %v751_v13 = vrot.slane %v745_v44, 4  ;;  %v7411_v3 = vld [vmem:[#allocation30_spill] sm:$0xff] }
 0x1a4   :  { %v648_v43 = vmul.f32 %v632_v30, %v486_v29  ;;  %v752_v38 = vrot.slane %v745_v44, 5  ;;  %v761_v63 = vsel %vm313_vm0, %v746_v20, %v7362_v61  ;;  %v762_v18 = vsel %vm314_vm1, %v746_v20, %v7362_v61  ;;  %v7410_v29 = vld [vmem:[#allocation28_spill] sm:$0xff] }
 0x1a5   :  { %v763_v58 = vsel %vm313_vm0, %v747_v14, %v7366_v19  ;;  %v764_v46 = vsel %vm314_vm1, %v747_v14, %v7366_v19  ;;  %v765_v7 = vsel %vm313_vm0, %v745_v44, %v7409_v5  ;;  %v766_v48 = vsel %vm314_vm1, %v745_v44, %v7409_v5  ;;  %v7412_v5 = vld [vmem:[#allocation33_spill] sm:$0xff] }
 0x1a6   :  { %v767_v61 = vsel %vm313_vm0, %v748_v26, %v7410_v29  ;;  %v768_v42 = vsel %vm314_vm1, %v748_v26, %v7410_v29  ;;  %v769_v19 = vsel %vm313_vm0, %v749_v32, %v7411_v3  ;;  %v770_v30 = vsel %vm314_vm1, %v749_v32, %v7411_v3 }
 0x1a7   :  { %v771_v44 = vsel %vm313_vm0, %v750_v31, %v7369_v25  ;;  %v772_v20 = vsel %vm314_vm1, %v750_v31, %v7369_v25  ;;  %v773_v14 = vsel %vm313_vm0, %v751_v13, %v7372_v4  ;;  %v774_v26 = vsel %vm314_vm1, %v751_v13, %v7372_v4 }
 0x1a8   :  { %v775_v32 = vsel %vm313_vm0, %v752_v38, %v7412_v5  ;;  %v845_v45 = vrot.slane %v647_v47, 7  ;;  %v846_v1 = vrot.slane %v648_v43, 7  ;;  %v776_v25 = vsel %vm314_vm1, %v752_v38, %v7412_v5 }
 0x1a9   :  { %v7413_v3 = vrot.slane %v4310_v50, 7  ;;  %v7414_v29 = vrot.slane %v4071_v16, 7  ;;  %v7415_v4 = vrot.slane %v4313_v24, 7  ;;  %v7416_v47 = vrot.slane %v4073_v36, 7 }
 0x1aa   :  { %v877_v38 = vsel %vm313_vm0, %v7417_v28, %v845_v45  ;;  %v7418_v31 = vrot.slane %v4317_v41, 7  ;;  %v7419_v50 = vmov %v7417_v28  ;;  %v7420_v36 = vrot.slane %v4323_v55, 7  ;;  %v7423_v28 = vld [vmem:[#allocation35_spill] sm:$0xff] }
 0x1ab   :  { %v905_v13 = vsel %vm313_vm0, %v7414_v29, %v7413_v3  ;;  %v906_v43 = vsel %vm314_vm1, %v7416_v47, %v7415_v4  ;;  %v909_v24 = vsel %vm313_vm0, %v845_v45, %v7419_v50  ;;  %v7421_v29 = vrot.slane %v4075_v17, 7  ;;  %v7422_v3 = vld [vmem:[#allocation34_spill] sm:$0xff] }
 0x1ac   :  { %v878_v16 = vsel %vm314_vm1, %v7418_v31, %v846_v1  ;;  %v4634_v47 = vmul.f32 %v877_v38, %v7422_v3  ;;  %v910_v9 = vsel %vm314_vm1, %v846_v1, %v7418_v31  ;;  %v7424_v45 = vrot.slane %v4319_v33, 7 }
 0x1ad   :  { %v913_v4 = vsel %vm313_vm0, %v7421_v29, %v7420_v36  ;;  %v4637_v5 = vmul.f32 %v878_v16, %v7423_v28  ;;  %v7425_v55 = vrot.slane %v4548_v39, 7  ;;  %v7426_v50 = vrot.slane %v4321_v34, 7 }
 0x1ae   :  { %v7427_v38 = vrot.slane %v4551_v40, 7  ;;  %v7428_v36 = vrot.slane %v4325_v10, 7  ;;  %v7429_v41 = vrot.slane %v4077_v6, 7  ;;  %v7430_v29 = vrot.slane %v4327_v12, 7 }
 0x1af   :  { %v911_v17 = vsel %vm313_vm0, %v7425_v55, %v7424_v45  ;;  %v7431_v3 = vrot.slane %v4079_v54, 7  ;;  %v7432_v31 = vrot.slane %v4329_v51, 7  ;;  %v7433_v45 = vrot.slane %v4081_v37, 7  ;;  %v7439_v37 = vld [vmem:[#allocation58_spill] sm:$0xff] }
 0x1b0   :  { %v912_v16 = vsel %vm314_vm1, %v7427_v38, %v7426_v50  ;;  %v914_v1 = vsel %vm314_vm1, %v7429_v41, %v7428_v36  ;;  %v7434_v10 = vrot.slane %v4331_v53, 7  ;;  %v7435_v6 = vrot.slane %v4083_v23, 7 }
 0x1b1   :  { %v915_v28 = vsel %vm313_vm0, %v7431_v3, %v7430_v29  ;;  %v916_v55 = vsel %vm314_vm1, %v7433_v45, %v7432_v31  ;;  %v7436_v12 = vrot.slane %v4333_v52, 7  ;;  %v7437_v54 = vrot.slane %v4085_v15, 7 }
 0x1b2   :  { %v917_v50 = vsel %vm313_vm0, %v7435_v6, %v7434_v10  ;;  %v7438_v51 = vrot.slane %v4335_v2, 7  ;;  %v7440_v36 = vrot.slane %v7439_v37, 7  ;;  %v7441_v53 = vrot.slane %v4337_v59, 7 }
 0x1b3   :  { %v918_v38 = vsel %vm314_vm1, %v7437_v54, %v7436_v12  ;;  %v7442_v23 = vrot.slane %v4097_v49, 7  ;;  %v4697_v52 = vmul.f32 %v905_v13, %v761_v63  ;;  %v4699_v15 = vmul.f32 %v906_v43, %v762_v18 }
 0x1b4   :  { %v919_v41 = vsel %vm313_vm0, %v7440_v36, %v7438_v51  ;;  %v4702_v3 = vmul.f32 %v4482_v22, %v763_v58  ;;  %v4705_v2 = vmul.f32 %v4486_v62, %v764_v46  ;;  %v925_v31 = vmul.f32 %v909_v24, %v765_v7  ;;  %v7445_v46 = vld [vmem:[#allocation37_spill] sm:$0xff]  ;;  %v7446_v7 = vld [vmem:[#allocation22_spill] sm:$0xff] }
 0x1b5   :  { %v920_v29 = vsel %vm314_vm1, %v7442_v23, %v7441_v53  ;;  %v926_v45 = vmul.f32 %v910_v9, %v766_v48  ;;  %v4707_v10 = vmul.f32 %v911_v17, %v767_v61  ;;  %v4709_v59 = vmul.f32 %v912_v16, %v768_v42 }
 0x1b6   :  { %v4711_v49 = vmul.f32 %v913_v4, %v769_v19  ;;  %v4713_v6 = vmul.f32 %v914_v1, %v770_v30  ;;  %v4715_v63 = vmul.f32 %v915_v28, %v771_v44  ;;  %v4717_v18 = vmul.f32 %v916_v55, %v772_v20  ;;  %v7449_v30 = vld [vmem:[#allocation38_spill] sm:$0xff] }
 0x1b7   :  { %v4719_v13 = vmul.f32 %v917_v50, %v773_v14  ;;  %v4721_v22 = vmul.f32 %v918_v38, %v774_v26  ;;  %v4723_v62 = vmul.f32 %v919_v41, %v775_v32  ;;  %v4725_v58 = vmul.f32 %v920_v29, %v776_v25  ;;  %v7452_v32 = vld [vmem:[#allocation39_spill] sm:$0xff] }
 0x1b8   :  { %v7447_v48 = vrot.slane %v7446_v7, 5  ;;  %v7450_v44 = vrot.slane %v7446_v7, 6  ;;  %v7453_v25 = vrot.slane %v7446_v7, 7  ;;  %v7082_v9 = vrot.slane %v4697_v52, 7 }
 0x1b9   :  { %7443 = vst [vmem:[#allocation26_spill] sm:$0xff] %v4723_v62  ;;  %7444 = vst [vmem:[#allocation27_spill] sm:$0xff] %v4725_v58  ;;  %v7081_v17 = vrot.slane %v4699_v15, 7  ;;  %v7080_v16 = vrot.slane %v4702_v3, 7  ;;  %v7076_v1 = vrot.slane %v4705_v2, 7  ;;  %v1043_v28 = vrot.slane %v925_v31, 7 }
 0x1ba   :  { %v973_v61 = vsel %vm313_vm0, %v7447_v48, %v7445_v46  ;;  %v7448_v42 = vmov %v7447_v48  ;;  %v975_v20 = vsel %vm313_vm0, %v7450_v44, %v7449_v30  ;;  %v7451_v14 = vmov %v7450_v44 }
 0x1bb   :  { %v974_v19 = vsel %vm314_vm1, %v7448_v42, %v7445_v46  ;;  %v976_v26 = vsel %vm314_vm1, %v7451_v14, %v7449_v30  ;;  %v977_v43 = vsel %vm313_vm0, %v7453_v25, %v7452_v32  ;;  %v7454_v24 = vmov %v7453_v25 }
 0x1bc   :  { %v978_v4 = vsel %vm314_vm1, %v7454_v24, %v7452_v32  ;;  %v1044_v55 = vrot.slane %v926_v45, 7  ;;  %v7077_v38 = vrot.slane %v4715_v63, 7  ;;  %v7079_v37 = vrot.slane %v4717_v18, 7 }
 0x1bd   :  { %v7078_v36 = vrot.slane %v4719_v13, 7  ;;  %v1091_v23 = vrot.slane %v4634_v47, 7  ;;  %v1092_v29 = vrot.slane %v4637_v5, 7  ;;  %v7455_v31 = vrot.slane %v4456_v8, 7 }
 0x1be   :  { %v7456_v42 = vrot.slane %v4458_v0, 7  ;;  %v7457_v47 = vrot.slane %v4462_v60, 7  ;;  %v7458_v14 = vrot.slane %v4464_v21, 7  ;;  %v7461_v48 = vrot.slane %v4468_v11, 7 }
 0x1bf   :  { %v1119_v45 = vsel %vm313_vm0, %v7082_v9, %v7455_v31  ;;  %v1123_v24 = vsel %vm313_vm0, %v1043_v28, %v1091_v23  ;;  %v1124_v31 = vsel %vm314_vm1, %v1044_v55, %v1092_v29  ;;  %v7493_v7 = vrot.slane %v4456_v8, 7 }
 0x1c0   :  { %v1120_v44 = vsel %vm314_vm1, %v7081_v17, %v7456_v42  ;;  %v1121_v5 = vsel %vm313_vm0, %v7080_v16, %v7457_v47  ;;  %v1122_v25 = vsel %vm314_vm1, %v7076_v1, %v7458_v14  ;;  %v7459_v42 = vrot.slane %v4466_v27, 7 }
 0x1c1   :  { %v4815_v14 = vsel %vm314_vm1, %v7079_v37, %v7461_v48  ;;  %v4817_v53 = vmul.f32 %v1119_v45, %v973_v61  ;;  %v4819_v41 = vmul.f32 %v1120_v44, %v974_v19  ;;  %v4821_v51 = vmul.f32 %v1121_v5, %v975_v20  ;;  %v7465_v44 = vld [vmem:[#allocation28_spill] sm:$0xff]  ;;  %v7466_v5 = vld [vmem:[#allocation21_spill] sm:$0xff] }
 0x1c2   :  { %v4807_v47 = vsel %vm313_vm0, %v7077_v38, %v7459_v42  ;;  %7462 = vst [vmem:[#allocation20_spill] sm:$0xff] %v4815_v14  ;;  %v4823_v54 = vmul.f32 %v1122_v25, %v976_v26  ;;  %v7463_v1 = vrot.slane %v4478_v35, 7  ;;  %v4833_v38 = vmul.f32 %v1123_v24, %v977_v43  ;;  %v7469_v24 = vld [vmem:[#allocation30_spill] sm:$0xff]  ;;  %v7474_v20 = vld [vmem:[#allocation33_spill] sm:$0xff] }
 0x1c3   :  { %7460 = vst [vmem:[#allocation31_spill] sm:$0xff] %v4807_v47  ;;  %v4835_v48 = vmul.f32 %v1124_v31, %v978_v4  ;;  %v4839_v61 = vsel %vm313_vm0, %v1091_v23, %v1043_v28  ;;  %v4843_v19 = vsel %vm314_vm1, %v1092_v29, %v1044_v55  ;;  %v7467_v28 = vrot.slane %v7466_v5, 1  ;;  %v991_v55 = vpop.permute.xlu1 %990  ;;  %v7495_v47 = vld [vmem:[#allocation44_spill] sm:$0xff] }
 0x1c4   :  { %v4831_v42 = vsel %vm313_vm0, %v7078_v36, %v7463_v1  ;;  %v7470_v31 = vrot.slane %v7466_v5, 2  ;;  %v7473_v45 = vrot.slane %v7466_v5, 4  ;;  %v7477_v36 = vrot.slane %v4319_v33, 7 }
 0x1c5   :  { %7464 = vst [vmem:[#allocation54_spill] sm:$0xff] %v4831_v42  ;;  %v733_v23 = vsel %vm313_vm0, %v7467_v28, %v7465_v44  ;;  %v7468_v29 = vmov %v7467_v28  ;;  %v7472_v28 = vld [vmem:[#allocation32_spill] sm:$0xff]  ;;  %v992_v50 = vrot.slane %v991_v55, 5  ;;  %v7483_v42 = vld [vmem:[#allocation46_spill] sm:$0xff]  ;;  %v996_v58 = vrot.slane %v991_v55, 2 }
 0x1c6   :  { %v734_v25 = vsel %vm314_vm1, %v7468_v29, %v7465_v44  ;;  %v735_v43 = vsel %vm313_vm0, %v7470_v31, %v7469_v24  ;;  %v7471_v4 = vmov %v7470_v31  ;;  %v740_v26 = vsel %vm314_vm1, %v7473_v45, %v7472_v28  ;;  %v7480_v28 = vld [vmem:[#allocation23_spill] sm:$0xff] }
 0x1c7   :  { %v736_v1 = vsel %vm314_vm1, %v7471_v4, %v7469_v24  ;;  %v7475_v44 = vrot.slane %v7466_v5, 5  ;;  %v7476_v31 = vrot.slane %v4548_v39, 7  ;;  %v7478_v4 = vrot.slane %v4551_v40, 7  ;;  %v7482_v39 = vld [vmem:[#allocation53_spill] sm:$0xff] }
 0x1c8   :  { %v7479_v24 = vrot.slane %v4321_v34, 7  ;;  %v4894_v16 = vmul.f32 %v7480_v28, %v735_v43  ;;  %v4900_v33 = vmul.f32 %v7482_v39, %v740_v26  ;;  %v995_v40 = vrot.slane %v991_v55, 1  ;;  %v7485_v43 = vld [vmem:[#allocation36_spill] sm:$0xff]  ;;  %v7487_v28 = vld [vmem:[#allocation41_spill] sm:$0xff]  ;;  %v7488_v39 = vld [vmem:[#allocation42_spill] sm:$0xff] }
 0x1c9   :  { %v741_v29 = vsel %vm313_vm0, %v7475_v44, %v7474_v20  ;;  %v879_v37 = vsel %vm313_vm0, %v7477_v36, %v7476_v31  ;;  %v7481_v44 = vld [vmem:[#allocation24_spill] sm:$0xff]  ;;  %v993_v36 = vrot.slane %v991_v55, 6  ;;  %v994_v31 = vrot.slane %v991_v55, 7 }
 0x1ca   :  { %v880_v45 = vsel %vm314_vm1, %v7479_v24, %v7478_v4  ;;  %v895_v17 = vmul.f32 %v879_v37, %v733_v23  ;;  %v4897_v9 = vmul.f32 %v7481_v44, %v736_v1  ;;  %v4903_v34 = vmul.f32 %v7483_v42, %v741_v29  ;;  %v7486_v29 = vld [vmem:[#allocation40_spill] sm:$0xff] }
 0x1cb   :  { %v896_v12 = vmul.f32 %v880_v45, %v734_v25  ;;  %v997_v4 = vrot.slane %v991_v55, 3  ;;  %v998_v24 = vrot.slane %v991_v55, 4  ;;  %v1007_v37 = vsel %vm313_vm0, %v992_v50, %v7445_v46 }
 0x1cc   :  { %7484 = vst [vmem:[#allocation56_spill] sm:$0xff] %v4903_v34  ;;  %v1008_v1 = vsel %vm314_vm1, %v992_v50, %v7445_v46  ;;  %v1009_v26 = vsel %vm313_vm0, %v993_v36, %v7449_v30  ;;  %v1013_v42 = vsel %vm313_vm0, %v991_v55, %v7485_v43  ;;  %v1010_v23 = vsel %vm314_vm1, %v993_v36, %v7449_v30 }
 0x1cd   :  { %v1011_v25 = vsel %vm313_vm0, %v994_v31, %v7452_v32  ;;  %v1012_v46 = vsel %vm314_vm1, %v994_v31, %v7452_v32  ;;  %v1014_v50 = vsel %vm314_vm1, %v991_v55, %v7485_v43  ;;  %v1015_v45 = vsel %vm313_vm0, %v995_v40, %v7486_v29  ;;  %v7489_v31 = vld [vmem:[#allocation43_spill] sm:$0xff] }
 0x1ce   :  { %v1016_v30 = vsel %vm314_vm1, %v995_v40, %v7486_v29  ;;  %v1017_v44 = vsel %vm313_vm0, %v996_v58, %v7487_v28  ;;  %v1018_v32 = vsel %vm314_vm1, %v996_v58, %v7487_v28  ;;  %v1019_v55 = vsel %vm313_vm0, %v997_v4, %v7488_v39 }
 0x1cf   :  { %v1020_v36 = vsel %vm314_vm1, %v997_v4, %v7488_v39  ;;  %v1021_v40 = vsel %vm313_vm0, %v998_v24, %v7489_v31  ;;  %v1093_v43 = vrot.slane %v895_v17, 7  ;;  %v4953_v14 = vsel %vm314_vm1, %v998_v24, %v7489_v31 }
 0x1d0   :  { %7490 = vst [vmem:[#allocation57_spill] sm:$0xff] %v4953_v14  ;;  %v1094_v5 = vrot.slane %v896_v12, 7  ;;  %v7491_v4 = vrot.slane %v4707_v10, 7  ;;  %v7492_v17 = vrot.slane %v4697_v52, 7  ;;  %v7494_v24 = vrot.slane %v4709_v59, 7 }
 0x1d1   :  { %v7496_v28 = vrot.slane %v4699_v15, 7  ;;  %v7497_v14 = vrot.slane %v4458_v0, 7  ;;  %v7498_v8 = vrot.slane %v4702_v3, 7  ;;  %v7503_v15 = vrot.slane %v4707_v10, 7 }
 0x1d2   :  { %v1125_v39 = vsel %vm313_vm0, %v7491_v4, %v1093_v43  ;;  %v1151_v12 = vsel %vm313_vm0, %v7493_v7, %v7492_v17  ;;  %v1126_v20 = vsel %vm314_vm1, %v7494_v24, %v1094_v5  ;;  %v7499_v4 = vrot.slane %v4462_v60, 7  ;;  %v7500_v17 = vld [vmem:[#allocation45_spill] sm:$0xff] }
 0x1d3   :  { %v4974_v58 = vmul.f32 %v1125_v39, %v7495_v47  ;;  %v1152_v52 = vsel %vm314_vm1, %v7497_v14, %v7496_v28  ;;  %v4989_v31 = vmul.f32 %v1126_v20, %v7500_v17  ;;  %v7501_v47 = vrot.slane %v4705_v2, 7 }
 0x1d4   :  { %v1153_v7 = vsel %vm313_vm0, %v7499_v4, %v7498_v8  ;;  %v7502_v39 = vrot.slane %v4464_v21, 7  ;;  %v1157_v3 = vsel %vm313_vm0, %v1093_v43, %v7503_v15  ;;  %v7504_v60 = vmov %v7494_v24 }
 0x1d5   :  { %v1158_v14 = vsel %vm314_vm1, %v1094_v5, %v7504_v60  ;;  %v7505_v20 = vrot.slane %v4711_v49, 7  ;;  %v7506_v28 = vrot.slane %v4894_v16, 7  ;;  %v7507_v2 = vrot.slane %v4713_v6, 7 }
 0x1d6   :  { %v1154_v0 = vsel %vm314_vm1, %v7502_v39, %v7501_v47  ;;  %v7508_v24 = vrot.slane %v4897_v9, 7  ;;  %v7509_v43 = vrot.slane %v4715_v63, 7  ;;  %v7510_v59 = vrot.slane %v4466_v27, 7 }
 0x1d7   :  { %v1159_v21 = vsel %vm313_vm0, %v7506_v28, %v7505_v20  ;;  %v7511_v8 = vrot.slane %v4717_v18, 7  ;;  %v7512_v4 = vrot.slane %v4468_v11, 7  ;;  %v7513_v47 = vrot.slane %v4719_v13, 7 }
 0x1d8   :  { %v1160_v10 = vsel %vm314_vm1, %v7508_v24, %v7507_v2  ;;  %v1161_v5 = vsel %vm313_vm0, %v7510_v59, %v7509_v43  ;;  %v7514_v39 = vrot.slane %v4478_v35, 7  ;;  %v7515_v63 = vrot.slane %v4721_v22, 7 }
 0x1d9   :  { %v1162_v17 = vsel %vm314_vm1, %v7512_v4, %v7511_v8  ;;  %v7516_v27 = vrot.slane %v4900_v33, 7  ;;  %v7517_v18 = vrot.slane %v4723_v62, 7  ;;  %v7518_v11 = vrot.slane %v4903_v34, 7  ;;  %v2389_v34 = vld [vmem:[#allocation8 + $0x110] sm:$0xff] }
 0x1da   :  { %v1163_v15 = vsel %vm313_vm0, %v7514_v39, %v7513_v47  ;;  %v5047_v13 = vmul.f32 %v1151_v12, %v1007_v37  ;;  %v5049_v35 = vmul.f32 %v1152_v52, %v1008_v1  ;;  %v5051_v28 = vmul.f32 %v1153_v7, %v1009_v26  ;;  %v2375_v7 = vld [vmem:[#allocation8 + $0xa0] sm:$0xff] }
 0x1db   :  { %v1164_v60 = vsel %vm314_vm1, %v7516_v27, %v7515_v63  ;;  %v1165_v20 = vsel %vm313_vm0, %v7518_v11, %v7517_v18  ;;  %v5053_v2 = vmul.f32 %v1154_v0, %v1010_v23  ;;  %v5056_v24 = vmul.f32 %v4839_v61, %v1011_v25  ;;  %v7523_v61 = vld [vmem:[#allocation63_spill] sm:$0xff]  ;;  %v7524_v25 = vld [vmem:[#allocation29_spill] sm:$0xff]  ;;  %v2381_v0 = vld [vmem:[#allocation8 + $0xd0] sm:$0xff] }
 0x1dc   :  { %v5059_v43 = vmul.f32 %v4843_v19, %v1012_v46  ;;  %v1173_v59 = vmul.f32 %v1157_v3, %v1013_v42  ;;  %v1174_v8 = vmul.f32 %v1158_v14, %v1014_v50  ;;  %v5061_v4 = vmul.f32 %v1159_v21, %v1015_v45  ;;  %v2198_v27 = vld [vmem:[#allocation7 + $0xf8] sm:$0xff]  ;;  %v2379_v3 = vld [vmem:[#allocation8 + $0xc0] sm:$0xff] }
 0x1dd   :  { %v5063_v47 = vmul.f32 %v1160_v10, %v1016_v30  ;;  %v5065_v37 = vmul.f32 %v1161_v5, %v1017_v44  ;;  %v5067_v1 = vmul.f32 %v1162_v17, %v1018_v32  ;;  %v5069_v26 = vmul.f32 %v1163_v15, %v1019_v55  ;;  %v2377_v10 = vld [vmem:[#allocation8 + $0xb0] sm:$0xff]  ;;  %v2196_v5 = vld [vmem:[#allocation7 + $0xe8] sm:$0xff] }
 0x1de   :  { %7519 = vst [vmem:[#allocation25_spill] sm:$0xff] %v5061_v4  ;;  %v5071_v23 = vmul.f32 %v1164_v60, %v1020_v36  ;;  %v5073_v12 = vmul.f32 %v1165_v20, %v1021_v40  ;;  %v7525_v19 = vrot.slane %v7524_v25, 7  ;;  %v7095_v45 = vrot.slane %v5047_v13, 7  ;;  %v2195_v60 = vld [vmem:[#allocation7 + $0xe0] sm:$0xff] }
 0x1df   :  { %7520 = vst [vmem:[#allocation34_spill] sm:$0xff] %v5065_v37  ;;  %7521 = vst [vmem:[#allocation35_spill] sm:$0xff] %v5069_v26  ;;  %v7093_v30 = vrot.slane %v5049_v35, 7  ;;  %v7092_v44 = vrot.slane %v5051_v28, 7  ;;  %v7090_v32 = vrot.slane %v5053_v2, 7  ;;  %v7091_v55 = vrot.slane %v5056_v24, 7 }
 0x1e0   :  { %7522 = vst [vmem:[#allocation58_spill] sm:$0xff] %v5073_v12  ;;  %v1225_v42 = vsel %vm313_vm0, %v7525_v19, %v7523_v61  ;;  %v7526_v46 = vmov %v7525_v19  ;;  %v7094_v36 = vrot.slane %v5059_v43, 7  ;;  %v1291_v40 = vrot.slane %v1173_v59, 7 }
 0x1e1   :  { %v1226_v50 = vsel %vm314_vm1, %v7526_v46, %v7523_v61  ;;  %v1292_v52 = vrot.slane %v1174_v8, 7  ;;  %v1339_v15 = vrot.slane %v4974_v58, 7  ;;  %v1340_v63 = vrot.slane %v4989_v31, 7  ;;  %v2197_v46 = vld [vmem:[#allocation7 + $0xf0] sm:$0xff] }
 0x1e2   :  { %v7527_v18 = vrot.slane %v4817_v53, 7  ;;  %v7528_v20 = vrot.slane %v4819_v41, 7  ;;  %v7529_v31 = vrot.slane %v4821_v51, 7  ;;  %v7530_v8 = vrot.slane %v4823_v54, 7 }
 0x1e3   :  { %v7531_v17 = vrot.slane %v4833_v38, 7  ;;  %v1372_v14 = vsel %vm314_vm1, %v1292_v52, %v1340_v63  ;;  %v7555_v62 = vrot.slane %v4819_v41, 7  ;;  %v7561_v41 = vrot.slane %v5056_v24, 7 }
 0x1e4   :  { %v5105_v11 = vsel %vm313_vm0, %v7095_v45, %v7527_v18  ;;  %v5113_v59 = vsel %vm314_vm1, %v7093_v30, %v7528_v20  ;;  %v5121_v58 = vsel %vm313_vm0, %v7092_v44, %v7529_v31  ;;  %v5129_v19 = vsel %vm314_vm1, %v7090_v32, %v7530_v8  ;;  %v2380_v18 = vld [vmem:[#allocation8 + $0xc8] sm:$0xff]  ;;  %v2382_v20 = vld [vmem:[#allocation8 + $0xd8] sm:$0xff]  ;;  %v5159_v30 = vpop.permute.xlu1 %1236 }
 0x1e5   :  { %v5137_v39 = vsel %vm313_vm0, %v7091_v55, %v7531_v17  ;;  %v7532_v31 = vrot.slane %v4835_v48, 7  ;;  %v1371_v8 = vsel %vm313_vm0, %v1291_v40, %v1339_v15  ;;  %v5153_v17 = vmul.f32 %v1372_v14, %v1226_v50  ;;  %v7535_v14 = vld [vmem:[#allocation22_spill] sm:$0xff] }
 0x1e6   :  { %v5151_v32 = vmul.f32 %v1371_v8, %v1225_v42  ;;  %v5157_v55 = vsel %vm313_vm0, %v1339_v15, %v1291_v40  ;;  %v2995_v44 = vpack.c.bf16 %v2377_v10, %v2375_v7  ;;  %v2939_v45 = vpack.c.bf16 %v2197_v46, %v2195_v60  ;;  %v7542_v15 = vld [vmem:[#allocation41_spill] sm:$0xff] }
 0x1e7   :  { %v5145_v21 = vsel %vm314_vm1, %v7094_v36, %v7532_v31  ;;  %7534 = vst [vmem:[#allocation38_spill] sm:$0xff] %v5153_v17  ;;  %v1404_v31 = vsel %vm314_vm1, %v1340_v63, %v1292_v52  ;;  %v2937_v36 = vpack.c.bf16 %v2198_v27, %v2196_v5  ;;  %v2997_v26 = vpack.c.bf16 %v2382_v20, %v2380_v18  ;;  %v7545_v27 = vld [vmem:[#allocation31_spill] sm:$0xff]  ;;  %v5525_v17 = vld [vmem:[#allocation7 + $0x1a0] sm:$0xff] }
 0x1e8   :  { %7533 = vst [vmem:[#allocation37_spill] sm:$0xff] %v5151_v32  ;;  %2996 = vmatpush1.bf16.msra.mxu1 %v2995_v44  ;;  %v2999_v50 = vpack.c.bf16 %v2381_v0, %v2379_v3  ;;  %v7536_v8 = vrot.slane %v7535_v14, 1  ;;  %v7538_v10 = vrot.slane %v4894_v16, 7  ;;  %v7539_v5 = vrot.slane %v4711_v49, 7 }
 0x1e9   :  { %2938 = vmatprep.subr.bf16.mxu0 %v2937_v36  ;;  %2998 = vmatprep.subr.bf16.mxu1 %v2997_v26  ;;  %v7540_v0 = vrot.slane %v4897_v9, 7  ;;  %v7541_v3 = vrot.slane %v4713_v6, 7  ;;  %v1238_v36 = vrot.slane %v5159_v30, 4  ;;  %v1239_v9 = vrot.slane %v5159_v30, 5 }
 0x1ea   :  { %v981_v40 = vsel %vm313_vm0, %v7536_v8, %v7486_v29  ;;  %v7537_v52 = vmov %v7536_v8  ;;  %v1127_v44 = vsel %vm313_vm0, %v7539_v5, %v7538_v10  ;;  %2940 = vmatpush1.bf16.msra.mxu0 %v2939_v45  ;;  %v1240_v60 = vrot.slane %v5159_v30, 6  ;;  %v7547_v8 = vld [vmem:[#allocation60_spill] sm:$0xff]  ;;  %v7549_v5 = vld [vmem:[#allocation62_spill] sm:$0xff] }
 0x1eb   :  { %v982_v7 = vsel %vm314_vm1, %v7537_v52, %v7486_v29  ;;  %v1128_v26 = vsel %vm314_vm1, %v7541_v3, %v7540_v0  ;;  %v7543_v29 = vrot.slane %v7535_v14, 2  ;;  %v5193_v49 = vmul.f32 %v1127_v44, %v981_v40 }
 0x1ec   :  { %v5195_v63 = vmul.f32 %v1128_v26, %v982_v7  ;;  %v1241_v46 = vrot.slane %v5159_v30, 7  ;;  %v1242_v45 = vrot.slane %v5159_v30, 1  ;;  %3000 = vmatpush1.bf16.msra.mxu1 %v2999_v50  ;;  %v1253_v40 = vsel %vm313_vm0, %v1238_v36, %v7547_v8  ;;  %v7548_v7 = vld [vmem:[#allocation61_spill] sm:$0xff] }
 0x1ed   :  { %v983_v16 = vsel %vm313_vm0, %v7543_v29, %v7542_v15  ;;  %7544 = vst [vmem:[#allocation39_spill] sm:$0xff] %v5193_v49  ;;  %v1254_v52 = vsel %vm314_vm1, %v1238_v36, %v7547_v8  ;;  %v1255_v10 = vsel %vm313_vm0, %v1239_v9, %v7548_v7  ;;  %v1256_v50 = vsel %vm314_vm1, %v1239_v9, %v7548_v7  ;;  %v7550_v36 = vld [vmem:[#allocation59_spill] sm:$0xff]  ;;  %v7551_v9 = vld [vmem:[#allocation64_spill] sm:$0xff] }
 0x1ee   :  { %v5199_v6 = vmul.f32 %v7545_v27, %v983_v16  ;;  %v1257_v44 = vsel %vm313_vm0, %v1240_v60, %v7549_v5  ;;  %v1258_v0 = vsel %vm314_vm1, %v1240_v60, %v7549_v5  ;;  %v1259_v3 = vsel %vm313_vm0, %v1241_v46, %v7523_v61 }
 0x1ef   :  { %v1260_v26 = vsel %vm314_vm1, %v1241_v46, %v7523_v61  ;;  %v1261_v29 = vsel %vm313_vm0, %v5159_v30, %v7550_v36  ;;  %v1262_v16 = vsel %vm314_vm1, %v5159_v30, %v7550_v36  ;;  %v1263_v27 = vsel %vm313_vm0, %v1242_v45, %v7551_v9 }
 0x1f0   :  { %7546 = vst [vmem:[#allocation28_spill] sm:$0xff] %v5199_v6  ;;  %v5244_v60 = vsel %vm314_vm1, %v1242_v45, %v7551_v9  ;;  %v7552_v42 = vrot.slane %v5047_v13, 7  ;;  %v7553_v20 = vrot.slane %v4817_v53, 7  ;;  %v7554_v32 = vrot.slane %v5049_v35, 7  ;;  %v5267_v13 = vpop.permute.xlu1 %1482 }
 0x1f1   :  { %v7556_v61 = vrot.slane %v5051_v28, 7  ;;  %v7557_v46 = vrot.slane %v4821_v51, 7  ;;  %7558 = vst [vmem:[#allocation30_spill] sm:$0xff] %v5267_v13  ;;  %v7559_v53 = vrot.slane %v5053_v2, 7  ;;  %v7563_v51 = vrot.slane %v5059_v43, 7 }
 0x1f2   :  { %v1397_v18 = vsel %vm313_vm0, %v7553_v20, %v7552_v42  ;;  %v1398_v45 = vsel %vm314_vm1, %v7555_v62, %v7554_v32  ;;  %v7560_v42 = vrot.slane %v4823_v54, 7  ;;  %v7562_v62 = vrot.slane %v4833_v38, 7 }
 0x1f3   :  { %v1399_v12 = vsel %vm313_vm0, %v7557_v46, %v7556_v61  ;;  %v7564_v32 = vrot.slane %v4835_v48, 7  ;;  %v7565_v2 = vrot.slane %v5061_v4, 7  ;;  %v7566_v54 = vrot.slane %v5193_v49, 7 }
 0x1f4   :  { %v1400_v35 = vsel %vm314_vm1, %v7560_v42, %v7559_v53  ;;  %v1401_v28 = vsel %vm313_vm0, %v7562_v62, %v7561_v41  ;;  %v7567_v24 = vrot.slane %v5063_v47, 7  ;;  %v7568_v38 = vrot.slane %v5195_v63, 7 }
 0x1f5   :  { %v1402_v20 = vsel %vm314_vm1, %v7564_v32, %v7563_v51  ;;  %v1405_v61 = vsel %vm313_vm0, %v7566_v54, %v7565_v2  ;;  %v7569_v43 = vrot.slane %v5065_v37, 7  ;;  %v7570_v48 = vrot.slane %v5199_v6, 7  ;;  %v2200_v54 = vld [vmem:[#allocation7 + $0x108] sm:$0xff]  ;;  %v2387_v6 = vld [vmem:[#allocation8 + $0x100] sm:$0xff] }
 0x1f6   :  { %v1406_v46 = vsel %vm314_vm1, %v7568_v38, %v7567_v24  ;;  %v5305_v42 = vmul.f32 %v1397_v18, %v1253_v40  ;;  %v5307_v41 = vmul.f32 %v1398_v45, %v1254_v52  ;;  %v5309_v62 = vmul.f32 %v1399_v12, %v1255_v10  ;;  %v2202_v24 = vld [vmem:[#allocation7 + $0x118] sm:$0xff]  ;;  %v2199_v52 = vld [vmem:[#allocation7 + $0x100] sm:$0xff]  ;;  %v2201_v10 = vld [vmem:[#allocation7 + $0x110] sm:$0xff] }
 0x1f7   :  { %v1407_v53 = vsel %vm313_vm0, %v7570_v48, %v7569_v43  ;;  %v5311_v51 = vmul.f32 %v1400_v35, %v1256_v50  ;;  %v5313_v32 = vmul.f32 %v1401_v28, %v1257_v44  ;;  %v5315_v2 = vmul.f32 %v1402_v20, %v1258_v0  ;;  %v7577_v38 = vld [vmem:[#allocation65_spill] sm:$0xff]  ;;  %v2384_v50 = vld [vmem:[#allocation8 + $0xe8] sm:$0xff]  ;;  %v2383_v28 = vld [vmem:[#allocation8 + $0xe0] sm:$0xff] }
 0x1f8   :  { %7571 = vst [vmem:[#allocation32_spill] sm:$0xff] %v5305_v42  ;;  %7572 = vst [vmem:[#allocation23_spill] sm:$0xff] %v5307_v41  ;;  %v7578_v37 = vrot.slane %v5159_v30, 2  ;;  %v5325_v18 = vmul.f32 %v5157_v55, %v1259_v3  ;;  %v5327_v12 = vmul.f32 %v1404_v31, %v1260_v26  ;;  %v5329_v40 = vmul.f32 %v1405_v61, %v1261_v29  ;;  %v2385_v20 = vld [vmem:[#allocation8 + $0xf0] sm:$0xff]  ;;  %v5341_v29 = vpop.permute.xlu1 %1676 }
 0x1f9   :  { %7573 = vst [vmem:[#allocation24_spill] sm:$0xff] %v5309_v62  ;;  %7574 = vst [vmem:[#allocation53_spill] sm:$0xff] %v5311_v51  ;;  %v5331_v44 = vmul.f32 %v1406_v46, %v1262_v16  ;;  %v5333_v0 = vmul.f32 %v1407_v53, %v1263_v27  ;;  %v2941_v46 = vpack.c.bf16 %v2202_v24, %v2200_v54  ;;  %v7586_v55 = vrot.slane %v7524_v25, 4  ;;  %v2390_v27 = vld [vmem:[#allocation8 + $0x118] sm:$0xff] }
 0x1fa   :  { %7575 = vst [vmem:[#allocation46_spill] sm:$0xff] %v5313_v32  ;;  %7576 = vst [vmem:[#allocation36_spill] sm:$0xff] %v5315_v2  ;;  %v5322_v43 = vsel %vm313_vm0, %v7578_v37, %v7577_v38  ;;  %v2386_v37 = vld [vmem:[#allocation8 + $0xf8] sm:$0xff]  ;;  %v2943_v48 = vpack.c.bf16 %v2201_v10, %v2199_v52  ;;  %v3003_v35 = vpack.c.bf16 %v2385_v20, %v2383_v28  ;;  %v7588_v61 = vrot.slane %v7524_v25, 5 }
 0x1fb   :  { %7579 = vst [vmem:[#allocation40_spill] sm:$0xff] %v5322_v43  ;;  %7580 = vst [vmem:[#allocation44_spill] sm:$0xff] %v5325_v18  ;;  %v3001_v53 = vpack.c.bf16 %v2386_v37, %v2384_v50  ;;  %v1219_v3 = vsel %vm313_vm0, %v7586_v55, %v7547_v8  ;;  %2942 = vmatprep.subr.bf16.mxu0 %v2941_v46  ;;  %v7587_v26 = vmov %v7586_v55  ;;  %v7590_v10 = vrot.slane %v7524_v25, 6  ;;  %v2203_v46 = vld [vmem:[#allocation7 + $0x120] sm:$0xff]  ;;  %v2210_v18 = vld [vmem:[#allocation7 + $0x158] sm:$0xff] }
 0x1fc   :  { %7581 = vst [vmem:[#allocation45_spill] sm:$0xff] %v5327_v12  ;;  %7582 = vst [vmem:[#allocation63_spill] sm:$0xff] %v5329_v40  ;;  %v1220_v16 = vsel %vm314_vm1, %v7587_v26, %v7547_v8  ;;  %v1221_v54 = vsel %vm313_vm0, %v7588_v61, %v7548_v7  ;;  %v7589_v24 = vmov %v7588_v61  ;;  %2944 = vmatpush1.bf16.msra.mxu0 %v2943_v48  ;;  %v1484_v20 = vrot.slane %v5267_v13, 3  ;;  %v2204_v61 = vld [vmem:[#allocation7 + $0x128] sm:$0xff]  ;;  %v5395_v48 = vpop.permute.xlu1 %1728  ;;  %v5523_v12 = vld [vmem:[#allocation7 + $0x1b8] sm:$0xff] }
 0x1fd   :  { %7583 = vst [vmem:[#allocation29_spill] sm:$0xff] %v5331_v44  ;;  %7584 = vst [vmem:[#allocation22_spill] sm:$0xff] %v5333_v0  ;;  %v1222_v52 = vsel %vm314_vm1, %v7589_v24, %v7548_v7  ;;  %v1223_v50 = vsel %vm313_vm0, %v7590_v10, %v7549_v5  ;;  %3002 = vmatprep.subr.bf16.mxu1 %v3001_v53  ;;  %v5372_v8 = vmul.f32 %v5105_v11, %v1219_v3  ;;  %v7597_v53 = vld [vmem:[#allocation50_spill] sm:$0xff]  ;;  %v2388_v3 = vld [vmem:[#allocation8 + $0x108] sm:$0xff] }
 0x1fe   :  { %7585 = vst [vmem:[#allocation41_spill] sm:$0xff] %v5341_v29  ;;  %v5375_v37 = vmul.f32 %v5113_v59, %v1220_v16  ;;  %v5378_v28 = vmul.f32 %v5121_v58, %v1221_v54  ;;  %3004 = vmatpush1.bf16.msra.mxu1 %v3003_v35  ;;  %v5382_v7 = vmul.f32 %v5129_v19, %v1222_v52  ;;  %v1485_v26 = vrot.slane %v5267_v13, 4  ;;  %v7595_v16 = vld [vmem:[#allocation55_spill] sm:$0xff]  ;;  %v2206_v19 = vld [vmem:[#allocation7 + $0x138] sm:$0xff] }
 0x1ff   :  { %7591 = vst [vmem:[#allocation31_spill] sm:$0xff] %v5372_v8  ;;  %v5385_v55 = vmul.f32 %v5137_v39, %v1223_v50  ;;  %v1486_v11 = vrot.slane %v5267_v13, 5  ;;  %v7107_v59 = vrot.slane %v5267_v13, 6  ;;  %v1499_v35 = vsel %vm313_vm0, %v1484_v20, %v7595_v16  ;;  %7596 = vst [vmem:[#allocation59_spill] sm:$0xff] %v5395_v48  ;;  %v7598_v52 = vld [vmem:[#allocation51_spill] sm:$0xff]  ;;  %v2205_v50 = vld [vmem:[#allocation7 + $0x130] sm:$0xff] }
 0x200   :  { %7592 = vst [vmem:[#allocation60_spill] sm:$0xff] %v5378_v28  ;;  %7593 = vst [vmem:[#allocation61_spill] sm:$0xff] %v5382_v7  ;;  %v1500_v39 = vsel %vm314_vm1, %v1484_v20, %v7595_v16  ;;  %v1501_v54 = vsel %vm313_vm0, %v1485_v26, %v7597_v53  ;;  %v1502_v24 = vsel %vm314_vm1, %v1485_v26, %v7597_v53  ;;  %v7600_v20 = vld [vmem:[#allocation52_spill] sm:$0xff]  ;;  %v7602_v26 = vld [vmem:[#allocation49_spill] sm:$0xff]  ;;  %v7113_v40 = vrot.slane %v5372_v8, 7 }
 0x201   :  { %7594 = vst [vmem:[#allocation62_spill] sm:$0xff] %v5385_v55  ;;  %v1503_v10 = vsel %vm313_vm0, %v1486_v11, %v7598_v52  ;;  %v5412_v58 = vsel %vm314_vm1, %v1486_v11, %v7598_v52  ;;  %v5419_v31 = vsel %vm313_vm0, %v7107_v59, %v7600_v20  ;;  %v5425_v45 = vsel %vm313_vm0, %v5267_v13, %v7602_v26 }
 0x202   :  { %7599 = vst [vmem:[#allocation64_spill] sm:$0xff] %v5412_v58  ;;  %7601 = vst [vmem:[#allocation65_spill] sm:$0xff] %v5419_v31  ;;  %v7604_v59 = vrot.slane %v5305_v42, 7  ;;  %v2945_v4 = vpack.c.bf16 %v2206_v19, %v2204_v61  ;;  %v3005_v49 = vpack.c.bf16 %v2390_v27, %v2388_v3  ;;  %v2208_v58 = vld [vmem:[#allocation7 + $0x148] sm:$0xff]  ;;  %v7605_v11 = vrot.slane %v5307_v41, 7  ;;  %v5567_v41 = vld [vmem:[#allocation8 + $0x1a0] sm:$0xff] }
 0x203   :  { %7603 = vst [vmem:[#allocation55_spill] sm:$0xff] %v5425_v45  ;;  %v2947_v45 = vpack.c.bf16 %v2205_v50, %v2203_v46  ;;  %v7606_v0 = vrot.slane %v5375_v37, 7  ;;  %v7607_v42 = vrot.slane %v5309_v62, 7  ;;  %v7608_v8 = vrot.slane %v5378_v28, 7  ;;  %v5462_v50 = vld [vmem:[#allocation7 + $0x140] sm:$0xff] }
 0x204   :  { %v1643_v31 = vsel %vm313_vm0, %v7113_v40, %v7604_v59  ;;  %v7609_v61 = vrot.slane %v5311_v51, 7  ;;  %v7610_v27 = vrot.slane %v5382_v7, 7  ;;  %v7611_v19 = vrot.slane %v5313_v32, 7  ;;  %v5466_v40 = vld [vmem:[#allocation8 + $0x128] sm:$0xff]  ;;  %2946 = vmatprep.subr.bf16.mxu0 %v2945_v4  ;;  %v5478_v32 = vld [vmem:[#allocation8 + $0x130] sm:$0xff]  ;;  %3006 = vmatprep.subr.bf16.mxu1 %v3005_v49  ;;  %v5565_v7 = vld [vmem:[#allocation8 + $0x1b8] sm:$0xff] }
 0x205   :  { %v1644_v43 = vsel %vm314_vm1, %v7606_v0, %v7605_v11  ;;  %v1645_v59 = vsel %vm313_vm0, %v7608_v8, %v7607_v42  ;;  %v7612_v46 = vrot.slane %v5385_v55, 7  ;;  %v5464_v11 = vld [vmem:[#allocation7 + $0x150] sm:$0xff]  ;;  %v2394_v42 = vld [vmem:[#allocation8 + $0x138] sm:$0xff]  ;;  %v5468_v8 = vld [vmem:[#allocation8 + $0x120] sm:$0xff]  ;;  %v5470_v62 = vmul.f32 %v1643_v31, %v1499_v35  ;;  %v5484_v55 = vpop.permute.xlu1 %1922  ;;  %2948 = vmatpush1.bf16.msra.mxu0 %v2947_v45 }
 0x206   :  { %v1646_v3 = vsel %vm314_vm1, %v7610_v27, %v7609_v61  ;;  %v5472_v28 = vmul.f32 %v1644_v43, %v1500_v39  ;;  %v5474_v61 = vmul.f32 %v1645_v59, %v1501_v54  ;;  %v3007_v43 = vpack.c.bf16 %v2389_v34, %v2387_v6  ;;  %v5489_v35 = vld [vmem:[#allocation7 + $0x160] sm:$0xff]  ;;  %v5491_v39 = vld [vmem:[#allocation7 + $0x170] sm:$0xff]  ;;  %v2396_v4 = vld [vmem:[#allocation8 + $0x148] sm:$0xff] }
 0x207   :  { %v1647_v0 = vsel %vm313_vm0, %v7612_v46, %v7611_v19  ;;  %7613 = vst [vmem:[#allocation50_spill] sm:$0xff] %v5470_v62  ;;  %v5476_v27 = vmul.f32 %v1646_v3, %v1502_v24  ;;  %v5480_v19 = vld [vmem:[#allocation7 + $0x168] sm:$0xff]  ;;  %v5482_v46 = vld [vmem:[#allocation7 + $0x178] sm:$0xff]  ;;  %v2949_v31 = vpack.c.bf16 %v2210_v18, %v2208_v58  ;;  %v5493_v24 = vld [vmem:[#allocation8 + $0x140] sm:$0xff]  ;;  %v2951_v3 = vpack.c.bf16 %v5464_v11, %v5462_v50 }
 0x208   :  { %7614 = vst [vmem:[#allocation66_spill] sm:$0xff] %v5472_v28  ;;  %7615 = vst [vmem:[#allocation67_spill] sm:$0xff] %v5474_v61  ;;  %v5487_v44 = vmul.f32 %v1647_v0, %v1503_v10  ;;  %v2398_v54 = vld [vmem:[#allocation8 + $0x158] sm:$0xff]  ;;  %v5495_v59 = vld [vmem:[#allocation8 + $0x150] sm:$0xff]  ;;  %3008 = vmatpush1.bf16.msra.mxu1 %v3007_v43  ;;  %v3009_v43 = vpack.c.bf16 %v2394_v42, %v5466_v40  ;;  %v2953_v56 = vpack.c.bf16 %v5482_v46, %v5480_v19 }
 0x209   :  { %7616 = vst [vmem:[#allocation68_spill] sm:$0xff] %v5476_v27  ;;  %v5501_v34 = vld [vmem:[#allocation7 + $0x188] sm:$0xff]  ;;  %v5503_v6 = vld [vmem:[#allocation7 + $0x198] sm:$0xff]  ;;  %v5505_v18 = vld [vmem:[#allocation7 + $0x180] sm:$0xff]  ;;  %2950 = vmatprep.subr.bf16.mxu0 %v2949_v31  ;;  %v3011_v31 = vpack.c.bf16 %v5478_v32, %v5468_v8  ;;  %v2955_v50 = vpack.c.bf16 %v5491_v39, %v5489_v35  ;;  %v3013_v40 = vpack.c.bf16 %v2398_v54, %v2396_v4  ;;  %v5561_v29 = vpop.permute.xlu1 %1974 }
 0x20a   :  { %7617 = vst [vmem:[#allocation69_spill] sm:$0xff] %v5487_v44  ;;  %v5507_v45 = vld [vmem:[#allocation7 + $0x190] sm:$0xff]  ;;  %v5509_v58 = vld [vmem:[#allocation8 + $0x168] sm:$0xff]  ;;  %v5511_v0 = vld [vmem:[#allocation8 + $0x178] sm:$0xff]  ;;  %2952 = vmatpush1.bf16.msra.mxu0 %v2951_v3  ;;  %3010 = vmatprep.subr.bf16.mxu1 %v3009_v43  ;;  %v3015_v27 = vpack.c.bf16 %v5495_v59, %v5493_v24  ;;  %v2957_v3 = vpack.c.bf16 %v5503_v6, %v5501_v34  ;;  %v7872_v57 = vrot.slane %v5561_v29, 1 }
 0x20b   :  { %v5517_v61 = vld [vmem:[#allocation8 + $0x160] sm:$0xff]  ;;  %v5519_v62 = vld [vmem:[#allocation8 + $0x170] sm:$0xff]  ;;  %v5521_v28 = vld [vmem:[#allocation7 + $0x1a8] sm:$0xff]  ;;  %2954 = vmatprep.subr.bf16.mxu0 %v2953_v56  ;;  %v2959_v35 = vpack.c.bf16 %v5507_v45, %v5505_v18  ;;  %v3017_v39 = vpack.c.bf16 %v5511_v0, %v5509_v58 }
 0x20c   :  { %v5534_v49 = vld [vmem:[#allocation7 + $0x1b0] sm:$0xff]  ;;  %v5536_v10 = vld [vmem:[#allocation8 + $0x188] sm:$0xff]  ;;  %v5538_v44 = vld [vmem:[#allocation8 + $0x198] sm:$0xff]  ;;  %3012 = vmatpush1.bf16.msra.mxu1 %v3011_v31  ;;  %v3019_v34 = vpack.c.bf16 %v5519_v62, %v5517_v61  ;;  %v2961_v6 = vpack.c.bf16 %v5523_v12, %v5521_v28  ;;  %v7640_v31 = vrot.slane %v5063_v47, 7 }
 0x20d   :  { %v5544_v11 = vld [vmem:[#allocation8 + $0x180] sm:$0xff]  ;;  %v5546_v32 = vld [vmem:[#allocation8 + $0x190] sm:$0xff]  ;;  %v5548_v42 = vld [vmem:[#allocation7 + $0x1c8] sm:$0xff]  ;;  %3014 = vmatprep.subr.bf16.mxu1 %v3013_v40  ;;  %v2963_v18 = vpack.c.bf16 %v5534_v49, %v5525_v17  ;;  %v3021_v43 = vpack.c.bf16 %v5538_v44, %v5536_v10 }
 0x20e   :  { %v5550_v8 = vld [vmem:[#allocation7 + $0x1d8] sm:$0xff]  ;;  %v5552_v19 = vld [vmem:[#allocation7 + $0x1c0] sm:$0xff]  ;;  %v5554_v46 = vld [vmem:[#allocation7 + $0x1d0] sm:$0xff]  ;;  %2956 = vmatpush1.bf16.msra.mxu0 %v2955_v50  ;;  %v3023_v28 = vpack.c.bf16 %v5546_v32, %v5544_v11  ;;  %v5621_v32 = vrot.slane %v7550_v36, 3 }
 0x20f   :  { %v5563_v51 = vld [vmem:[#allocation8 + $0x1a8] sm:$0xff]  ;;  %v5576_v54 = vld [vmem:[#allocation8 + $0x1b0] sm:$0xff]  ;;  %v5580_v59 = vld [vmem:[#allocation7 + $0x1f8] sm:$0xff]  ;;  %v2965_v49 = vpack.c.bf16 %v5550_v8, %v5548_v42  ;;  %v2967_v44 = vpack.c.bf16 %v5554_v46, %v5552_v19  ;;  %2958 = vmatprep.subr.bf16.mxu0 %v2957_v3  ;;  %v7621_v19 = vrot.slane %v7535_v14, 2 }
 0x210   :  { %v5578_v24 = vld [vmem:[#allocation7 + $0x1e8] sm:$0xff]  ;;  %v5589_v45 = vld [vmem:[#allocation7 + $0x1e0] sm:$0xff]  ;;  %v5591_v58 = vld [vmem:[#allocation7 + $0x1f0] sm:$0xff]  ;;  %v3025_v10 = vpack.c.bf16 %v5565_v7, %v5563_v51  ;;  %3016 = vmatpush1.bf16.msra.mxu1 %v3015_v27  ;;  %v3027_v62 = vpack.c.bf16 %v5576_v54, %v5567_v41 }
 0x211   :  { %v5593_v0 = vld [vmem:[#allocation8 + $0x1c8] sm:$0xff]  ;;  %v5600_v61 = vld [vmem:[#allocation8 + $0x1d8] sm:$0xff]  ;;  %v5602_v12 = vld [vmem:[#allocation8 + $0x1c0] sm:$0xff]  ;;  %v2969_v50 = vpack.c.bf16 %v5580_v59, %v5578_v24  ;;  %v2971_v11 = vpack.c.bf16 %v5591_v58, %v5589_v45  ;;  %3018 = vmatprep.subr.bf16.mxu1 %v3017_v39  ;;  %v984_v46 = vsel %vm314_vm1, %v7621_v19, %v7542_v15  ;;  %v7624_v24 = vrot.slane %v7535_v14, 3 }
 0x212   :  { %v5604_v17 = vld [vmem:[#allocation8 + $0x1d0] sm:$0xff]  ;;  %v3029_v42 = vpack.c.bf16 %v5600_v61, %v5593_v0  ;;  %v7618_v7 = vld [vmem:[#allocation33_spill] sm:$0xff]  ;;  %v7623_v54 = vld [vmem:[#allocation42_spill] sm:$0xff]  ;;  %v7626_v61 = vrot.slane %v7535_v14, 4  ;;  %2960 = vmatpush1.bf16.msra.mxu0 %v2959_v35  ;;  %v7631_v35 = vrot.slane %v7524_v25, 1 }
 0x213   :  { %v3031_v51 = vpack.c.bf16 %v5604_v17, %v5602_v12  ;;  %v7619_v27 = vld [vmem:[#allocation21_spill] sm:$0xff]  ;;  %v7622_v3 = vld [vmem:[#allocation48_spill] sm:$0xff]  ;;  %v986_v59 = vsel %vm314_vm1, %v7624_v24, %v7623_v54  ;;  %v7625_v0 = vld [vmem:[#allocation43_spill] sm:$0xff]  ;;  %v7630_v24 = vrot.slane %v7524_v25, 6  ;;  %2962 = vmatprep.subr.bf16.mxu0 %v2961_v6  ;;  %v7634_v6 = vrot.slane %v5159_v30, 2 }
 0x214   :  { %v7620_v8 = vrot.slane %v7619_v27, 5  ;;  %v7627_v27 = vrot.slane %v4900_v33, 7  ;;  %v1228_v33 = vsel %vm314_vm1, %v7524_v25, %v7550_v36  ;;  %3020 = vmatpush1.bf16.msra.mxu1 %v3019_v34  ;;  %v7662_v12 = vld [vmem:[#allocation61_spill] sm:$0xff] }
 0x215   :  { %v1224_v40 = vsel %vm314_vm1, %v7630_v24, %v7549_v5  ;;  %3022 = vmatprep.subr.bf16.mxu1 %v3021_v43  ;;  %v7636_v24 = vld [vmem:[#allocation27_spill] sm:$0xff]  ;;  %v7663_v17 = vrot.slane %v7662_v12, 7 }
 0x216   :  { %v742_v41 = vsel %vm314_vm1, %v7620_v8, %v7618_v7  ;;  %v988_v7 = vsel %vm314_vm1, %v7626_v61, %v7625_v0  ;;  %v7628_v8 = vrot.slane %v4721_v22, 7  ;;  %v7633_v61 = vrot.slane %v7524_v25, 3  ;;  %2964 = vmatpush1.bf16.msra.mxu0 %v2963_v18 }
 0x217   :  { %v904_v39 = vmul.f32 %v7622_v3, %v742_v41  ;;  %v7629_v41 = vld [vmem:[#allocation20_spill] sm:$0xff]  ;;  %2966 = vmatprep.subr.bf16.mxu0 %v2965_v49 }
 0x218   :  { %v1132_v15 = vsel %vm314_vm1, %v7628_v8, %v7627_v27  ;;  %v1146_v19 = vmul.f32 %v7629_v41, %v984_v46  ;;  %v1230_v46 = vsel %vm314_vm1, %v7631_v35, %v7551_v9  ;;  %v1234_v34 = vsel %vm314_vm1, %v7633_v61, %v5621_v32  ;;  %3024 = vmatpush1.bf16.msra.mxu1 %v3023_v28 }
 0x219   :  { %v1148_v3 = vmul.f32 %v1132_v15, %v986_v59  ;;  %v1102_v22 = vrot.slane %v904_v39, 7  ;;  %v7632_v59 = vrot.slane %v7524_v25, 2  ;;  %v1266_v39 = vsel %vm314_vm1, %v7634_v6, %v7577_v38  ;;  %3026 = vmatprep.subr.bf16.mxu1 %v3025_v10 }
 0x21a   :  { %v7635_v27 = vrot.slane %v5159_v30, 3  ;;  %v1344_v15 = vrot.slane %v1146_v19, 7  ;;  %v7637_v35 = vrot.slane %v7636_v24, 7  ;;  %v7639_v6 = vrot.slane %v5195_v63, 7  ;;  %2968 = vmatpush1.bf16.msra.mxu0 %v2967_v44 }
 0x21b   :  { %v1232_v5 = vsel %vm314_vm1, %v7632_v59, %v7577_v38  ;;  %v1346_v41 = vrot.slane %v1148_v3, 7  ;;  %v5704_v19 = vmul.f32 %v5145_v21, %v1224_v40  ;;  %v5735_v10 = vrot.slane %v7602_v26, 1  ;;  %2970 = vmatprep.subr.bf16.mxu0 %v2969_v50 }
 0x21c   :  { %v1268_v8 = vsel %vm314_vm1, %v7635_v27, %v5621_v32  ;;  %v1134_v59 = vsel %vm314_vm1, %v7637_v35, %v1102_v22  ;;  %v7638_v43 = vmov %v7637_v35  ;;  %v1374_v56 = vsel %vm314_vm1, %v7640_v31, %v7639_v6  ;;  %v7641_v27 = vld [vmem:[#allocation57_spill] sm:$0xff]  ;;  %v7644_v31 = vld [vmem:[#allocation47_spill] sm:$0xff]  ;;  %3028 = vmatpush1.bf16.msra.mxu1 %v3027_v62 }
 0x21d   :  { %v1166_v61 = vsel %vm314_vm1, %v1102_v22, %v7638_v43  ;;  %v1150_v3 = vmul.f32 %v1134_v59, %v988_v7  ;;  %v7642_v35 = vrot.slane %v5067_v1, 7  ;;  %v7643_v22 = vrot.slane %v5071_v23, 7  ;;  %7648 = vst [vmem:[#allocation21_spill] sm:$0xff] %v5735_v10  ;;  %3030 = vmatprep.subr.bf16.mxu1 %v3029_v42 }
 0x21e   :  { %v1182_v4 = vmul.f32 %v1166_v61, %v7641_v27  ;;  %v5715_v63 = vmul.f32 %v1374_v56, %v1228_v33  ;;  %v7144_v40 = vrot.slane %v7644_v31, 2  ;;  %v5732_v33 = vrot.slane %v7602_v26, 7  ;;  %2972 = vmatpush1.bf16.msra.mxu0 %v2971_v11 }
 0x21f   :  { %v1376_v24 = vsel %vm314_vm1, %v7642_v35, %v1344_v15  ;;  %v1378_v47 = vsel %vm314_vm1, %v7643_v22, %v1346_v41  ;;  %v1348_v59 = vrot.slane %v1150_v3, 7  ;;  %v7645_v43 = vmov %v7642_v35 }
 0x220   :  { %v5717_v21 = vmul.f32 %v1376_v24, %v1230_v46  ;;  %v5719_v18 = vmul.f32 %v1378_v47, %v1232_v5  ;;  %v1300_v7 = vrot.slane %v1182_v4, 7  ;;  %v1408_v61 = vsel %vm314_vm1, %v1344_v15, %v7645_v43  ;;  %7647 = vst [vmem:[#allocation33_spill] sm:$0xff] %v5732_v33  ;;  %3032 = vmatpush1.bf16.msra.mxu1 %v3031_v51  ;;  %v7664_v51 = vld [vmem:[#allocation53_spill] sm:$0xff] }
 0x221   :  { %v7646_v6 = vmov %v7643_v22  ;;  %v1424_v28 = vmul.f32 %v1408_v61, %v5244_v60  ;;  %v5742_v23 = vrot.slane %v7602_v26, 2  ;;  %v7650_v60 = vrot.slane %v7644_v31, 3 }
 0x222   :  { %v1410_v56 = vsel %vm314_vm1, %v1346_v41, %v7646_v6  ;;  %v1380_v1 = vsel %vm314_vm1, %v1300_v7, %v1348_v59  ;;  %v1412_v4 = vsel %vm314_vm1, %v1348_v59, %v1300_v7  ;;  %v7651_v44 = vrot.slane %v7644_v31, 4 }
 0x223   :  { %v1426_v49 = vmul.f32 %v1410_v56, %v1266_v39  ;;  %7649 = vst [vmem:[#allocation48_spill] sm:$0xff] %v5742_v23  ;;  %v1466_v46 = vsel %vm314_vm1, %v7650_v60, %v7595_v16  ;;  %v1396_v5 = vmul.f32 %v1380_v1, %v1234_v34  ;;  %v1428_v39 = vmul.f32 %v1412_v4, %v1268_v8 }
 0x224   :  { %v1468_v15 = vsel %vm314_vm1, %v7651_v44, %v7597_v53  ;;  %v7143_v41 = vrot.slane %v5267_v13, 2  ;;  %v7652_v3 = vrot.slane %v7644_v31, 5  ;;  %v7653_v62 = vrot.slane %v7644_v31, 6 }
 0x225   :  { %v7654_v34 = vrot.slane %v7644_v31, 7  ;;  %v1476_v42 = vsel %vm314_vm1, %v7644_v31, %v7602_v26  ;;  %v7655_v35 = vrot.slane %v7644_v31, 1  ;;  %v1480_v22 = vsel %vm314_vm1, %v7144_v40, %v5742_v23 }
 0x226   :  { %v1470_v27 = vsel %vm314_vm1, %v7652_v3, %v7598_v52  ;;  %v1472_v50 = vsel %vm314_vm1, %v7653_v62, %v7600_v20  ;;  %v7656_v47 = vrot.slane %v5267_v13, 6  ;;  %v7657_v59 = vrot.slane %v5267_v13, 7 }
 0x227   :  { %v1474_v8 = vsel %vm314_vm1, %v7654_v34, %v5732_v33  ;;  %v1478_v24 = vsel %vm314_vm1, %v7655_v35, %v5735_v10  ;;  %v1510_v61 = vsel %vm314_vm1, %v5267_v13, %v7602_v26  ;;  %v7658_v6 = vrot.slane %v5267_v13, 1  ;;  %v7660_v35 = vld [vmem:[#allocation23_spill] sm:$0xff] }
 0x228   :  { %v1506_v7 = vsel %vm314_vm1, %v7656_v47, %v7600_v20  ;;  %v1508_v43 = vsel %vm314_vm1, %v7657_v59, %v5732_v33  ;;  %v1514_v1 = vsel %vm314_vm1, %v7143_v41, %v5742_v23  ;;  %v1542_v4 = vrot.slane %v1424_v28, 7 }
 0x229   :  { %v1512_v56 = vsel %vm314_vm1, %v7658_v6, %v5735_v10  ;;  %v1544_v45 = vrot.slane %v1426_v49, 7  ;;  %v1546_v58 = vrot.slane %v1428_v39, 7  ;;  %v1584_v11 = vrot.slane %v5704_v19, 7 }
 0x22a   :  { %v1588_v60 = vrot.slane %v5715_v63, 7  ;;  %v1590_v44 = vrot.slane %v5717_v21, 7  ;;  %v1592_v3 = vrot.slane %v5719_v18, 7  ;;  %v1594_v62 = vrot.slane %v1396_v5, 7  ;;  %v7668_v18 = vld [vmem:[#allocation38_spill] sm:$0xff] }
 0x22b   :  { %v7659_v34 = vrot.slane %v5375_v37, 7  ;;  %v7661_v47 = vrot.slane %v7660_v35, 7  ;;  %v7665_v49 = vrot.slane %v7664_v51, 7  ;;  %v7666_v63 = vmov %v5315_v2  ;;  %v7670_v37 = vld [vmem:[#allocation45_spill] sm:$0xff] }
 0x22c   :  { %v7667_v39 = vrot.slane %v7666_v63, 7  ;;  %v7669_v5 = vrot.slane %v7668_v18, 7  ;;  %v7671_v59 = vrot.slane %v7670_v37, 7  ;;  %v1622_v12 = vsel %vm314_vm1, %v1542_v4, %v1590_v44 }
 0x22d   :  { %v1612_v28 = vsel %vm314_vm1, %v7661_v47, %v7659_v34  ;;  %v1614_v19 = vsel %vm314_vm1, %v7665_v49, %v7663_v17  ;;  %v7672_v34 = vld [vmem:[#allocation29_spill] sm:$0xff]  ;;  %v1624_v17 = vsel %vm314_vm1, %v1544_v45, %v1592_v3  ;;  %v1626_v51 = vsel %vm314_vm1, %v1546_v58, %v1594_v62 }
 0x22e   :  { %v1616_v21 = vsel %vm314_vm1, %v7667_v39, %v1584_v11  ;;  %v1618_v6 = vsel %vm314_vm1, %v7671_v59, %v7669_v5  ;;  %v7673_v35 = vrot.slane %v7672_v34, 7  ;;  %v5850_v49 = vmul.f32 %v1612_v28, %v1466_v46  ;;  %v5870_v28 = vpop.permute.xlu0 %1679 }
 0x22f   :  { %v5852_v39 = vmul.f32 %v1614_v19, %v1468_v15  ;;  %v5854_v41 = vmul.f32 %v1616_v21, %v1470_v27  ;;  %v5856_v5 = vmul.f32 %v1618_v6, %v1472_v50  ;;  %v5862_v40 = vmul.f32 %v1624_v17, %v1478_v24  ;;  %7675 = vst [vmem:[#allocation42_spill] sm:$0xff] %v5870_v28 }
 0x230   :  { %v1620_v47 = vsel %vm314_vm1, %v7673_v35, %v1588_v60  ;;  %v5860_v35 = vmul.f32 %v1622_v12, %v1476_v42  ;;  %v5864_v2 = vmul.f32 %v1626_v51, %v1480_v22  ;;  %v7674_v13 = vrot.slane %v7666_v63, 7 }
 0x231   :  { %v5858_v59 = vmul.f32 %v1620_v47, %v1474_v8  ;;  %v7676_v15 = vrot.slane %v7670_v37, 7  ;;  %v7677_v27 = vrot.slane %v7668_v18, 7  ;;  %v7678_v8 = vrot.slane %v7672_v34, 7 }
 0x232   :  { %v1648_v46 = vsel %vm314_vm1, %v1584_v11, %v7674_v13  ;;  %v1654_v24 = vsel %vm314_vm1, %v1590_v44, %v1542_v4  ;;  %v1656_v13 = vsel %vm314_vm1, %v1592_v3, %v1544_v45  ;;  %v1658_v22 = vsel %vm314_vm1, %v1594_v62, %v1546_v58  ;;  %v7679_v11 = vld [vmem:[#allocation64_spill] sm:$0xff]  ;;  %v7680_v4 = vld [vmem:[#allocation41_spill] sm:$0xff] }
 0x233   :  { %v1650_v50 = vsel %vm314_vm1, %v7677_v27, %v7676_v15  ;;  %v1652_v42 = vsel %vm314_vm1, %v1588_v60, %v7678_v8  ;;  %v5889_v19 = vmul.f32 %v1648_v46, %v7679_v11  ;;  %v5895_v18 = vmul.f32 %v1654_v24, %v1510_v61 }
 0x234   :  { %v5891_v63 = vmul.f32 %v1650_v50, %v1506_v7  ;;  %v5893_v21 = vmul.f32 %v1652_v42, %v1508_v43  ;;  %v5897_v37 = vmul.f32 %v1656_v13, %v1512_v56  ;;  %v5899_v60 = vmul.f32 %v1658_v22, %v1514_v1 }
 0x235   :  { %v7149_v44 = vrot.slane %v7680_v4, 6  ;;  %v7148_v45 = vrot.slane %v7680_v4, 7  ;;  %v7147_v3 = vrot.slane %v7680_v4, 1  ;;  %v5905_v58 = vrot.slane %v5870_v28, 2 }
 0x236   :  { %v5908_v7 = vrot.slane %v5870_v28, 3  ;;  %v5911_v43 = vrot.slane %v5870_v28, 4  ;;  %v5914_v61 = vrot.slane %v5870_v28, 5  ;;  %v5917_v56 = vrot.slane %v5870_v28, 6 }
 0x237   :  { %7681 = vst [vmem:[#allocation43_spill] sm:$0xff] %v5905_v58  ;;  %v5920_v1 = vrot.slane %v5870_v28, 7  ;;  %v5923_v62 = vrot.slane %v5870_v28, 1  ;;  %v7688_v6 = vrot.slane %v7680_v4, 2  ;;  %v7689_v47 = vrot.slane %v7680_v4, 3 }
 0x238   :  { %7682 = vst [vmem:[#allocation20_spill] sm:$0xff] %v5908_v7  ;;  %7683 = vst [vmem:[#allocation27_spill] sm:$0xff] %v5911_v43  ;;  %v1724_v17 = vsel %vm314_vm1, %v7680_v4, %v5870_v28  ;;  %v7690_v51 = vrot.slane %v7680_v4, 4  ;;  %v7691_v15 = vrot.slane %v7680_v4, 5  ;;  %v1720_v50 = vsel %vm314_vm1, %v7149_v44, %v5917_v56 }
 0x239   :  { %7684 = vst [vmem:[#allocation57_spill] sm:$0xff] %v5914_v61  ;;  %7685 = vst [vmem:[#allocation47_spill] sm:$0xff] %v5917_v56  ;;  %v1712_v34 = vsel %vm314_vm1, %v7688_v6, %v5905_v58  ;;  %v1714_v12 = vsel %vm314_vm1, %v7689_v47, %v5908_v7  ;;  %v1722_v8 = vsel %vm314_vm1, %v7148_v45, %v5920_v1  ;;  %v7152_v24 = vrot.slane %v5395_v48, 6 }
 0x23a   :  { %7686 = vst [vmem:[#allocation23_spill] sm:$0xff] %v5920_v1  ;;  %7687 = vst [vmem:[#allocation61_spill] sm:$0xff] %v5923_v62  ;;  %v1716_v46 = vsel %vm314_vm1, %v7690_v51, %v5911_v43  ;;  %v1718_v27 = vsel %vm314_vm1, %v7691_v15, %v5914_v61  ;;  %v1726_v42 = vsel %vm314_vm1, %v7147_v3, %v5923_v62  ;;  %v7157_v13 = vrot.slane %v5395_v48, 7 }
 0x23b   :  { %v7166_v22 = vrot.slane %v5395_v48, 1  ;;  %v7692_v11 = vrot.slane %v5395_v48, 2  ;;  %v7693_v47 = vrot.slane %v5395_v48, 3  ;;  %v7694_v15 = vrot.slane %v5395_v48, 4 }
 0x23c   :  { %v7695_v45 = vrot.slane %v5395_v48, 5 }
 0x23d   :  { %v1746_v6 = vsel %vm314_vm1, %v7692_v11, %v5905_v58  ;;  %v1748_v51 = vsel %vm314_vm1, %v7693_v47, %v5908_v7  ;;  %v1750_v3 = vsel %vm314_vm1, %v7694_v15, %v5911_v43  ;;  %v1754_v11 = vsel %vm314_vm1, %v7152_v24, %v5917_v56 }
 0x23e   :  { %v1752_v44 = vsel %vm314_vm1, %v7695_v45, %v5914_v61  ;;  %v1756_v47 = vsel %vm314_vm1, %v7157_v13, %v5920_v1  ;;  %v1758_v15 = vsel %vm314_vm1, %v5395_v48, %v5870_v28  ;;  %v1760_v45 = vsel %vm314_vm1, %v7166_v22, %v5923_v62  ;;  %v7696_v62 = vld [vmem:[#allocation66_spill] sm:$0xff] }
 0x23f   :  { %v1782_v61 = vrot.slane %v5889_v19, 7  ;;  %v1784_v24 = vrot.slane %v5891_v63, 7  ;;  %v1786_v56 = vrot.slane %v5893_v21, 7  ;;  %v1788_v43 = vrot.slane %v5895_v18, 7 }
 0x240   :  { %v1790_v13 = vrot.slane %v5897_v37, 7  ;;  %v1792_v1 = vrot.slane %v5899_v60, 7  ;;  %v1826_v28 = vrot.slane %v5850_v49, 7  ;;  %v1828_v7 = vrot.slane %v5852_v39, 7  ;;  %v7698_v49 = vld [vmem:[#allocation68_spill] sm:$0xff] }
 0x241   :  { %v1830_v48 = vrot.slane %v5854_v41, 7  ;;  %v1832_v22 = vrot.slane %v5856_v5, 7  ;;  %v1834_v19 = vrot.slane %v5858_v59, 7  ;;  %v1836_v63 = vrot.slane %v5860_v35, 7 }
 0x242   :  { %v1838_v21 = vrot.slane %v5862_v40, 7  ;;  %v1840_v18 = vrot.slane %v5864_v2, 7  ;;  %v7697_v37 = vrot.slane %v7696_v62, 7  ;;  %v7699_v4 = vrot.slane %v7698_v49, 7 }
 0x243   :  { %v1862_v39 = vsel %vm314_vm1, %v1782_v61, %v1830_v48  ;;  %v1864_v5 = vsel %vm314_vm1, %v1784_v24, %v1832_v22  ;;  %v1866_v40 = vsel %vm314_vm1, %v1786_v56, %v1834_v19  ;;  %v1868_v2 = vsel %vm314_vm1, %v1788_v43, %v1836_v63 }
 0x244   :  { %v1858_v60 = vsel %vm314_vm1, %v7697_v37, %v1826_v28  ;;  %v1860_v41 = vsel %vm314_vm1, %v7699_v4, %v1828_v7  ;;  %v1870_v59 = vsel %vm314_vm1, %v1790_v13, %v1838_v21  ;;  %v1872_v35 = vsel %vm314_vm1, %v1792_v1, %v1840_v18 }
 0x245   :  { %v6040_v37 = vmul.f32 %v1858_v60, %v1712_v34  ;;  %v6042_v4 = vmul.f32 %v1860_v41, %v1714_v12  ;;  %v6044_v58 = vmul.f32 %v1862_v39, %v1716_v46  ;;  %v6046_v23 = vmul.f32 %v1864_v5, %v1718_v27 }
 0x246   :  { %v6048_v10 = vmul.f32 %v1866_v40, %v1720_v50  ;;  %v6050_v26 = vmul.f32 %v1868_v2, %v1722_v8  ;;  %v6052_v33 = vmul.f32 %v1870_v59, %v1724_v17  ;;  %v6054_v20 = vmul.f32 %v1872_v35, %v1726_v42  ;;  %v6072_v8 = vpop.permute.xlu0 %1925 }
 0x247   :  { %7700 = vst [vmem:[#allocation53_spill] sm:$0xff] %v6042_v4  ;;  %7701 = vst [vmem:[#allocation36_spill] sm:$0xff] %v6044_v58  ;;  %v7707_v52 = vrot.slane %v7696_v62, 7  ;;  %v7708_v12 = vrot.slane %v7698_v49, 7  ;;  %v1894_v27 = vsel %vm314_vm1, %v1830_v48, %v1782_v61  ;;  %v1896_v50 = vsel %vm314_vm1, %v1832_v22, %v1784_v24 }
 0x248   :  { %7702 = vst [vmem:[#allocation38_spill] sm:$0xff] %v6046_v23  ;;  %7703 = vst [vmem:[#allocation45_spill] sm:$0xff] %v6048_v10  ;;  %v1898_v17 = vsel %vm314_vm1, %v1834_v19, %v1786_v56  ;;  %v1900_v62 = vsel %vm314_vm1, %v1836_v63, %v1788_v43  ;;  %v6082_v61 = vmul.f32 %v1894_v27, %v1750_v3  ;;  %v7181_v3 = vrot.slane %v5484_v55, 7 }
 0x249   :  { %7704 = vst [vmem:[#allocation29_spill] sm:$0xff] %v6050_v26  ;;  %7705 = vst [vmem:[#allocation64_spill] sm:$0xff] %v6052_v33  ;;  %v1890_v34 = vsel %vm314_vm1, %v1826_v28, %v7707_v52  ;;  %v1892_v46 = vsel %vm314_vm1, %v1828_v7, %v7708_v12  ;;  %v1902_v52 = vsel %vm314_vm1, %v1838_v21, %v1790_v13  ;;  %v7185_v13 = vrot.slane %v5484_v55, 3 }
 0x24a   :  { %7706 = vst [vmem:[#allocation66_spill] sm:$0xff] %v6054_v20  ;;  %v1904_v28 = vsel %vm314_vm1, %v1840_v18, %v1792_v1  ;;  %v6078_v7 = vmul.f32 %v1890_v34, %v1746_v6  ;;  %v6080_v48 = vmul.f32 %v1892_v46, %v1748_v51  ;;  %7709 = vst [vmem:[#allocation68_spill] sm:$0xff] %v6082_v61  ;;  %v7184_v1 = vrot.slane %v5484_v55, 4 }
 0x24b   :  { %v6084_v42 = vmul.f32 %v1896_v50, %v1752_v44  ;;  %v6086_v56 = vmul.f32 %v1898_v17, %v1754_v11  ;;  %v6088_v24 = vmul.f32 %v1900_v62, %v1756_v47  ;;  %v6090_v43 = vmul.f32 %v1902_v52, %v1758_v15 }
 0x24c   :  { %v6092_v22 = vmul.f32 %v1904_v28, %v1760_v45  ;;  %v7183_v6 = vrot.slane %v5484_v55, 5  ;;  %v7182_v51 = vrot.slane %v5484_v55, 6  ;;  %v6100_v44 = vrot.slane %v6072_v8, 1 }
 0x24d   :  { %7710 = vst [vmem:[#allocation70_spill] sm:$0xff] %v6084_v42  ;;  %7711 = vst [vmem:[#allocation71_spill] sm:$0xff] %v6086_v56  ;;  %v6103_v11 = vrot.slane %v6072_v8, 2  ;;  %v6106_v47 = vrot.slane %v6072_v8, 3  ;;  %v6109_v15 = vrot.slane %v6072_v8, 4  ;;  %v6112_v45 = vrot.slane %v6072_v8, 5 }
 0x24e   :  { %7712 = vst [vmem:[#allocation72_spill] sm:$0xff] %v6088_v24  ;;  %7713 = vst [vmem:[#allocation73_spill] sm:$0xff] %v6090_v43  ;;  %v6115_v19 = vrot.slane %v6072_v8, 6  ;;  %v6118_v63 = vrot.slane %v6072_v8, 7  ;;  %v7715_v21 = vrot.slane %v5484_v55, 1  ;;  %v1972_v60 = vsel %vm314_vm1, %v5484_v55, %v6072_v8 }
 0x24f   :  { %7714 = vst [vmem:[#allocation74_spill] sm:$0xff] %v6092_v22  ;;  %v7716_v49 = vrot.slane %v5484_v55, 2  ;;  %v1962_v39 = vsel %vm314_vm1, %v7185_v13, %v6106_v47  ;;  %v1964_v5 = vsel %vm314_vm1, %v7184_v1, %v6109_v15  ;;  %v1966_v40 = vsel %vm314_vm1, %v7183_v6, %v6112_v45 }
 0x250   :  { %v1958_v18 = vsel %vm314_vm1, %v7715_v21, %v6100_v44  ;;  %v1968_v2 = vsel %vm314_vm1, %v7182_v51, %v6115_v19  ;;  %v1970_v59 = vsel %vm314_vm1, %v7181_v3, %v6118_v63  ;;  %v7195_v35 = vrot.slane %v6078_v7, 7 }
 0x251   :  { %v1960_v41 = vsel %vm314_vm1, %v7716_v49, %v6103_v11  ;;  %v7194_v34 = vrot.slane %v6080_v48, 7  ;;  %v7191_v12 = vrot.slane %v6082_v61, 7  ;;  %v7190_v46 = vrot.slane %v6084_v42, 7 }
 0x252   :  { %v7193_v27 = vrot.slane %v6086_v56, 7  ;;  %v7197_v50 = vrot.slane %v6088_v24, 7  ;;  %v7200_v17 = vrot.slane %v6090_v43, 7  ;;  %v7186_v52 = vrot.slane %v6040_v37, 7 }
 0x253   :  { %v7187_v28 = vrot.slane %v6042_v4, 7  ;;  %v7188_v21 = vrot.slane %v6044_v58, 7  ;;  %v7189_v49 = vrot.slane %v6046_v23, 7  ;;  %v7192_v3 = vrot.slane %v6048_v10, 7 }
 0x254   :  { %v7196_v51 = vrot.slane %v6050_v26, 7  ;;  %v7199_v6 = vrot.slane %v6052_v33, 7  ;;  %v2104_v13 = vsel %vm314_vm1, %v7195_v35, %v7186_v52 }
 0x255   :  { %v2106_v62 = vsel %vm314_vm1, %v7194_v34, %v7187_v28  ;;  %v2108_v1 = vsel %vm314_vm1, %v7191_v12, %v7188_v21  ;;  %v2110_v52 = vsel %vm314_vm1, %v7190_v46, %v7189_v49  ;;  %v2112_v28 = vsel %vm314_vm1, %v7193_v27, %v7192_v3 }
 0x256   :  { %v2114_v21 = vsel %vm314_vm1, %v7197_v50, %v7196_v51  ;;  %v2116_v49 = vsel %vm314_vm1, %v7200_v17, %v7199_v6  ;;  %v7717_v46 = vrot.slane %v6054_v20, 7  ;;  %v7718_v12 = vrot.slane %v6092_v22, 7 }
 0x257   :  { %v6223_v27 = vmul.f32 %v2104_v13, %v1958_v18  ;;  %v6225_v34 = vmul.f32 %v2106_v62, %v1960_v41  ;;  %v6227_v35 = vmul.f32 %v2108_v1, %v1962_v39  ;;  %v6229_v51 = vmul.f32 %v2110_v52, %v1964_v5  ;;  %v2553_v13 = vld [vmem:[#allocation10 + $0x8] sm:$0xff]  ;;  %v2555_v1 = vld [vmem:[#allocation10 + $0x18] sm:$0xff] }
 0x258   :  { %v2118_v3 = vsel %vm314_vm1, %v7718_v12, %v7717_v46  ;;  %v6231_v50 = vmul.f32 %v2112_v28, %v1966_v40  ;;  %v6233_v33 = vmul.f32 %v2114_v21, %v1968_v2  ;;  %v6236_v17 = vmul.f32 %v2116_v49, %v1970_v59  ;;  %v7730_v49 = vld [vmem:[#allocation56_spill] sm:$0xff] }
 0x259   :  { %7719 = vst [vmem:[#allocation75_spill] sm:$0xff] %v6223_v27  ;;  %7720 = vst [vmem:[#allocation76_spill] sm:$0xff] %v6225_v34  ;;  %v6238_v20 = vmul.f32 %v2118_v3, %v1972_v60  ;;  %v2268_v18 = vrot.slane %v6223_v27, 7  ;;  %v2269_v41 = vrot.slane %v6225_v34, 6  ;;  %v2271_v39 = vrot.slane %v6227_v35, 5 }
 0x25a   :  { %7721 = vst [vmem:[#allocation77_spill] sm:$0xff] %v6227_v35  ;;  %7722 = vst [vmem:[#allocation78_spill] sm:$0xff] %v6229_v51  ;;  %v2273_v5 = vrot.slane %v6229_v51, 4  ;;  %v2275_v3 = vrot.slane %v6231_v50, 3  ;;  %v2277_v60 = vrot.slane %v6233_v33, 2  ;;  %v2279_v2 = vrot.slane %v6236_v17, 1 }
 0x25b   :  { %7723 = vst [vmem:[#allocation79_spill] sm:$0xff] %v6231_v50  ;;  %7724 = vst [vmem:[#allocation80_spill] sm:$0xff] %v6233_v33  ;;  %v2270_v40 = vsel %vm2249_vm2, %v2269_v41, %v2268_v18  ;;  %v3037_v59 = vpack.c.bf16 %v2555_v1, %v2553_v13  ;;  %v7727_v12 = vrot.slane %v7535_v14, 3  ;;  %v7729_v28 = vrot.slane %v7535_v14, 4  ;;  %v7732_v18 = vld [vmem:[#allocation26_spill] sm:$0xff]  ;;  %v7775_v35 = vld [vmem:[#allocation24_spill] sm:$0xff] }
 0x25c   :  { %7725 = vst [vmem:[#allocation81_spill] sm:$0xff] %v6236_v17  ;;  %7726 = vst [vmem:[#allocation82_spill] sm:$0xff] %v6238_v20  ;;  %v2272_v52 = vsel %vm2252_vm3, %v2271_v39, %v2270_v40  ;;  %v7731_v6 = vrot.slane %v7730_v49, 7  ;;  %v7733_v41 = vrot.slane %v7732_v18, 7  ;;  %v7734_v1 = vld [vmem:[#allocation54_spill] sm:$0xff]  ;;  %v1227_v14 = vsel %vm313_vm0, %v7524_v25, %v7550_v36 }
 0x25d   :  { %v985_v62 = vsel %vm313_vm0, %v7727_v12, %v7623_v54  ;;  %v987_v21 = vsel %vm313_vm0, %v7729_v28, %v7625_v0  ;;  %v2274_v33 = vsel %vm2255_vm4, %v2273_v5, %v2272_v52  ;;  %3038 = vmatprep.subr.bf16.mxu0 %v3037_v59  ;;  %v7735_v0 = vrot.slane %v7524_v25, 1  ;;  %v7738_v12 = vld [vmem:[#allocation58_spill] sm:$0xff] }
 0x25e   :  { %v1133_v13 = vsel %vm313_vm0, %v7733_v41, %v7731_v6  ;;  %v1147_v17 = vmul.f32 %v7734_v1, %v985_v62  ;;  %v2276_v40 = vsel %vm2258_vm5, %v2275_v3, %v2274_v33  ;;  %v7736_v6 = vrot.slane %v7524_v25, 2  ;;  %v7741_v3 = vld [vmem:[#allocation25_spill] sm:$0xff] }
 0x25f   :  { %v1149_v54 = vmul.f32 %v1133_v13, %v987_v21  ;;  %v1229_v39 = vsel %vm313_vm0, %v7735_v0, %v7551_v9  ;;  %v7737_v59 = vrot.slane %v7524_v25, 3  ;;  %v1299_v62 = vrot.slane %v7738_v12, 7  ;;  %v7739_v21 = vld [vmem:[#allocation39_spill] sm:$0xff]  ;;  %v7744_v13 = vld [vmem:[#allocation28_spill] sm:$0xff] }
 0x260   :  { %v1231_v5 = vsel %vm313_vm0, %v7736_v6, %v7577_v38  ;;  %v2278_v52 = vsel %vm2261_vm6, %v2277_v60, %v2276_v40  ;;  %v1345_v28 = vrot.slane %v1147_v17, 7  ;;  %v7740_v33 = vrot.slane %v7739_v21, 7  ;;  %v7746_v60 = vld [vmem:[#allocation34_spill] sm:$0xff]  ;;  %v7748_v6 = vld [vmem:[#allocation35_spill] sm:$0xff] }
 0x261   :  { %v1233_v36 = vsel %vm313_vm0, %v7737_v59, %v5621_v32  ;;  %v1347_v9 = vrot.slane %v1149_v54, 7  ;;  %v7742_v49 = vrot.slane %v7741_v3, 7  ;;  %v2280_v38 = vsel %vm2264_vm7, %v2279_v2, %v2278_v52 }
 0x262   :  { %v7743_v25 = vrot.slane %v5159_v30, 3  ;;  %v7745_v1 = vrot.slane %v7744_v13, 7  ;;  %v7747_v17 = vrot.slane %v7746_v60, 7  ;;  %v2281_v40 = vsel %vm2266_vm8, %v6238_v20, %v2280_v38  ;;  %v7771_v20 = vld [vmem:[#allocation32_spill] sm:$0xff] }
 0x263   :  { %v1373_v18 = vsel %vm313_vm0, %v7742_v49, %v7740_v33  ;;  %v7749_v59 = vrot.slane %v7748_v6, 7  ;;  %v1379_v30 = vsel %vm313_vm0, %v1299_v62, %v1347_v9  ;;  %2348 = vmatprep.mubr.f32.mxu0 %v2281_v40  ;;  %v1411_v3 = vsel %vm313_vm0, %v1347_v9, %v1299_v62  ;;  %v7758_v62 = vld [vmem:[#allocation33_spill] sm:$0xff] }
 0x264   :  { %v1267_v41 = vsel %vm313_vm0, %v7743_v25, %v5621_v32  ;;  %v1375_v54 = vsel %vm313_vm0, %v7747_v17, %v7745_v1  ;;  %v1389_v0 = vmul.f32 %v1373_v18, %v1227_v14  ;;  %v7750_v32 = vrot.slane %v7644_v31, 3  ;;  %v7752_v18 = vld [vmem:[#allocation40_spill] sm:$0xff]  ;;  %v7760_v17 = vld [vmem:[#allocation49_spill] sm:$0xff] }
 0x265   :  { %v1377_v2 = vsel %vm313_vm0, %v7749_v59, %v1345_v28  ;;  %v1391_v52 = vmul.f32 %v1375_v54, %v1229_v39  ;;  %v7751_v21 = vmov %v7749_v59  ;;  %v1395_v49 = vmul.f32 %v1379_v30, %v1233_v36  ;;  %v7754_v39 = vld [vmem:[#allocation51_spill] sm:$0xff]  ;;  %v7761_v54 = vld [vmem:[#allocation21_spill] sm:$0xff]  ;;  %v7763_v59 = vld [vmem:[#allocation48_spill] sm:$0xff] }
 0x266   :  { %v1465_v12 = vsel %vm313_vm0, %v7750_v32, %v7595_v16  ;;  %v1393_v14 = vmul.f32 %v1377_v2, %v1231_v5  ;;  %v1409_v33 = vsel %vm313_vm0, %v1345_v28, %v7751_v21  ;;  %v1427_v25 = vmul.f32 %v1411_v3, %v1267_v41  ;;  %v7756_v28 = vld [vmem:[#allocation52_spill] sm:$0xff]  ;;  %v7765_v32 = vld [vmem:[#allocation30_spill] sm:$0xff] }
 0x267   :  { %v1425_v38 = vmul.f32 %v1409_v33, %v7752_v18  ;;  %v7753_v13 = vrot.slane %v7644_v31, 4  ;;  %v7755_v5 = vrot.slane %v7644_v31, 5  ;;  %v7757_v60 = vrot.slane %v7644_v31, 6 }
 0x268   :  { %v7759_v9 = vrot.slane %v7644_v31, 7  ;;  %v7762_v40 = vrot.slane %v7644_v31, 1  ;;  %v7764_v2 = vrot.slane %v7644_v31, 2  ;;  %v7766_v21 = vrot.slane %v7765_v32, 7 }
 0x269   :  { %v1467_v16 = vsel %vm313_vm0, %v7753_v13, %v7597_v53  ;;  %v1469_v1 = vsel %vm313_vm0, %v7755_v5, %v7754_v39  ;;  %v1471_v36 = vsel %vm313_vm0, %v7757_v60, %v7756_v28  ;;  %v1475_v53 = vsel %vm313_vm0, %v7644_v31, %v7760_v17  ;;  %v7768_v13 = vld [vmem:[#allocation22_spill] sm:$0xff] }
 0x26a   :  { %v1473_v41 = vsel %vm313_vm0, %v7759_v9, %v7758_v62  ;;  %v1477_v6 = vsel %vm313_vm0, %v7762_v40, %v7761_v54  ;;  %v1479_v30 = vsel %vm313_vm0, %v7764_v2, %v7763_v59  ;;  %v1507_v33 = vsel %vm313_vm0, %v7766_v21, %v7758_v62  ;;  %v7769_v40 = vld [vmem:[#allocation31_spill] sm:$0xff]  ;;  %v7773_v21 = vld [vmem:[#allocation60_spill] sm:$0xff] }
 0x26b   :  { %v7767_v3 = vrot.slane %v7765_v32, 1  ;;  %v1541_v39 = vrot.slane %v7768_v13, 7  ;;  %v1543_v5 = vrot.slane %v1425_v38, 7  ;;  %v1545_v28 = vrot.slane %v1427_v25, 7  ;;  %v7777_v38 = vld [vmem:[#allocation62_spill] sm:$0xff] }
 0x26c   :  { %v1587_v31 = vrot.slane %v1389_v0, 7  ;;  %v1589_v60 = vrot.slane %v1391_v52, 7  ;;  %v1591_v9 = vrot.slane %v1393_v14, 7  ;;  %v1593_v17 = vrot.slane %v1395_v49, 7  ;;  %v7779_v0 = vld [vmem:[#allocation46_spill] sm:$0xff]  ;;  %v7781_v49 = vld [vmem:[#allocation37_spill] sm:$0xff] }
 0x26d   :  { %v1511_v18 = vsel %vm313_vm0, %v7767_v3, %v7761_v54  ;;  %v7770_v2 = vrot.slane %v7769_v40, 7  ;;  %v7772_v50 = vrot.slane %v7771_v20, 7  ;;  %v7774_v51 = vrot.slane %v7773_v21, 7  ;;  %v7783_v20 = vld [vmem:[#allocation44_spill] sm:$0xff]  ;;  %v7785_v40 = vld [vmem:[#allocation63_spill] sm:$0xff] }
 0x26e   :  { %v7776_v34 = vrot.slane %v7775_v35, 7  ;;  %v7778_v25 = vrot.slane %v7777_v38, 7  ;;  %v7780_v52 = vrot.slane %v7779_v0, 7  ;;  %v7782_v3 = vrot.slane %v7781_v49, 7 }
 0x26f   :  { %v1611_v62 = vsel %vm313_vm0, %v7772_v50, %v7770_v2  ;;  %v7784_v13 = vrot.slane %v7783_v20, 7  ;;  %v7786_v2 = vrot.slane %v7785_v40, 7  ;;  %v1621_v21 = vsel %vm313_vm0, %v1541_v39, %v1589_v60 }
 0x270   :  { %v1613_v54 = vsel %vm313_vm0, %v7776_v34, %v7774_v51  ;;  %v1615_v14 = vsel %vm313_vm0, %v7780_v52, %v7778_v25  ;;  %v7787_v51 = vrot.slane %v7765_v32, 2  ;;  %v1623_v38 = vsel %vm313_vm0, %v1543_v5, %v1591_v9 }
 0x271   :  { %v1617_v50 = vsel %vm313_vm0, %v7784_v13, %v7782_v3  ;;  %v1619_v35 = vsel %vm313_vm0, %v7786_v2, %v1587_v31  ;;  %v1625_v25 = vsel %vm313_vm0, %v1545_v28, %v1593_v17  ;;  %v6411_v0 = vmul.f32 %v1611_v62, %v1465_v12  ;;  %v7791_v62 = vld [vmem:[#allocation65_spill] sm:$0xff] }
 0x272   :  { %v1513_v34 = vsel %vm313_vm0, %v7787_v51, %v7763_v59  ;;  %v6413_v52 = vmul.f32 %v1613_v54, %v1467_v16  ;;  %v6415_v3 = vmul.f32 %v1615_v14, %v1469_v1  ;;  %v6417_v13 = vmul.f32 %v1617_v50, %v1471_v36 }
 0x273   :  { %v6419_v32 = vmul.f32 %v1619_v35, %v1473_v41  ;;  %v6421_v59 = vmul.f32 %v1621_v21, %v1475_v53  ;;  %v6423_v2 = vmul.f32 %v1623_v38, %v1477_v6  ;;  %v7788_v51 = vrot.slane %v7783_v20, 7  ;;  %v7794_v35 = vld [vmem:[#allocation41_spill] sm:$0xff]  ;;  %v7802_v21 = vld [vmem:[#allocation47_spill] sm:$0xff] }
 0x274   :  { %v7789_v27 = vrot.slane %v7781_v49, 7  ;;  %v7790_v16 = vrot.slane %v7785_v40, 7  ;;  %v1653_v36 = vsel %vm313_vm0, %v1589_v60, %v1541_v39  ;;  %v1655_v41 = vsel %vm313_vm0, %v1591_v9, %v1543_v5  ;;  %v7792_v49 = vld [vmem:[#allocation55_spill] sm:$0xff]  ;;  %v7796_v60 = vld [vmem:[#allocation20_spill] sm:$0xff] }
 0x275   :  { %v1657_v53 = vsel %vm313_vm0, %v1593_v17, %v1545_v28  ;;  %v1641_v6 = vmul.f32 %v1625_v25, %v1479_v30  ;;  %v1671_v20 = vmul.f32 %v1655_v41, %v1511_v18  ;;  %v7793_v40 = vld [vmem:[#allocation43_spill] sm:$0xff]  ;;  %v7797_v5 = vrot.slane %v7794_v35, 3  ;;  %v7800_v18 = vld [vmem:[#allocation57_spill] sm:$0xff] }
 0x276   :  { %v1649_v12 = vsel %vm313_vm0, %v7789_v27, %v7788_v51  ;;  %v1651_v1 = vsel %vm313_vm0, %v1587_v31, %v7790_v16  ;;  %v1669_v27 = vmul.f32 %v1653_v36, %v7792_v49  ;;  %v1673_v50 = vmul.f32 %v1657_v53, %v1513_v34  ;;  %v7798_v30 = vld [vmem:[#allocation27_spill] sm:$0xff]  ;;  %v7807_v41 = vld [vmem:[#allocation61_spill] sm:$0xff] }
 0x277   :  { %v1665_v54 = vmul.f32 %v1649_v12, %v7791_v62  ;;  %v1667_v14 = vmul.f32 %v1651_v1, %v1507_v33  ;;  %v7795_v31 = vrot.slane %v7794_v35, 2  ;;  %v1713_v28 = vsel %vm313_vm0, %v7797_v5, %v7796_v60  ;;  %v7804_v51 = vld [vmem:[#allocation23_spill] sm:$0xff]  ;;  %v7806_v1 = vld [vmem:[#allocation42_spill] sm:$0xff] }
 0x278   :  { %v7799_v9 = vrot.slane %v7794_v35, 4  ;;  %v7801_v17 = vrot.slane %v7794_v35, 5  ;;  %v7803_v38 = vrot.slane %v7794_v35, 6  ;;  %v7805_v12 = vrot.slane %v7794_v35, 7  ;;  %v7809_v49 = vld [vmem:[#allocation59_spill] sm:$0xff] }
 0x279   :  { %v1711_v39 = vsel %vm313_vm0, %v7795_v31, %v7793_v40  ;;  %v1723_v36 = vsel %vm313_vm0, %v7794_v35, %v7806_v1  ;;  %v7808_v53 = vrot.slane %v7794_v35, 1  ;;  %v7810_v31 = vrot.slane %v7809_v49, 2 }
 0x27a   :  { %v1715_v33 = vsel %vm313_vm0, %v7799_v9, %v7798_v30  ;;  %v1717_v34 = vsel %vm313_vm0, %v7801_v17, %v7800_v18  ;;  %v1719_v25 = vsel %vm313_vm0, %v7803_v38, %v7802_v21  ;;  %v1721_v16 = vsel %vm313_vm0, %v7805_v12, %v7804_v51 }
 0x27b   :  { %v1725_v62 = vsel %vm313_vm0, %v7808_v53, %v7807_v41  ;;  %v1745_v5 = vsel %vm313_vm0, %v7810_v31, %v7793_v40  ;;  %v7811_v9 = vrot.slane %v7809_v49, 3  ;;  %v7812_v38 = vrot.slane %v7809_v49, 4 }
 0x27c   :  { %v7813_v12 = vrot.slane %v7809_v49, 5  ;;  %v7814_v40 = vrot.slane %v7809_v49, 6  ;;  %v1785_v22 = vrot.slane %v1667_v14, 7  ;;  %v1791_v43 = vrot.slane %v1673_v50, 7 }
 0x27d   :  { %v1747_v17 = vsel %vm313_vm0, %v7811_v9, %v7796_v60  ;;  %v1749_v35 = vsel %vm313_vm0, %v7812_v38, %v7798_v30  ;;  %v7815_v60 = vrot.slane %v7809_v49, 7  ;;  %v1757_v30 = vsel %vm313_vm0, %v7809_v49, %v7806_v1 }
 0x27e   :  { %v1751_v53 = vsel %vm313_vm0, %v7813_v12, %v7800_v18  ;;  %v1753_v31 = vsel %vm313_vm0, %v7814_v40, %v7802_v21  ;;  %v1783_v38 = vrot.slane %v1665_v54, 7  ;;  %v1787_v18 = vrot.slane %v1669_v27, 7  ;;  %v7816_v54 = vld [vmem:[#allocation50_spill] sm:$0xff] }
 0x27f   :  { %v1755_v9 = vsel %vm313_vm0, %v7815_v60, %v7804_v51  ;;  %v1789_v12 = vrot.slane %v1671_v20, 7  ;;  %v1825_v26 = vrot.slane %v6411_v0, 7  ;;  %v1827_v21 = vrot.slane %v6413_v52, 7  ;;  %v7818_v20 = vld [vmem:[#allocation67_spill] sm:$0xff] }
 0x280   :  { %v1829_v40 = vrot.slane %v6415_v3, 7  ;;  %v1831_v24 = vrot.slane %v6417_v13, 7  ;;  %v1833_v51 = vrot.slane %v6419_v32, 7  ;;  %v1835_v60 = vrot.slane %v6421_v59, 7  ;;  %v7820_v3 = vld [vmem:[#allocation69_spill] sm:$0xff] }
 0x281   :  { %v1837_v10 = vrot.slane %v6423_v2, 7  ;;  %v1839_v1 = vrot.slane %v1641_v6, 7  ;;  %v7817_v14 = vrot.slane %v7816_v54, 7  ;;  %v7819_v0 = vrot.slane %v7818_v20, 7 }
 0x282   :  { %v7821_v50 = vrot.slane %v7820_v3, 7  ;;  %v1863_v32 = vsel %vm313_vm0, %v1783_v38, %v1831_v24  ;;  %v1865_v59 = vsel %vm313_vm0, %v1785_v22, %v1833_v51  ;;  %v1867_v2 = vsel %vm313_vm0, %v1787_v18, %v1835_v60 }
 0x283   :  { %v1857_v27 = vsel %vm313_vm0, %v7817_v14, %v1825_v26  ;;  %v1859_v52 = vsel %vm313_vm0, %v7819_v0, %v1827_v21  ;;  %v7822_v6 = vrot.slane %v7809_v49, 1  ;;  %v1869_v0 = vsel %vm313_vm0, %v1789_v12, %v1837_v10 }
 0x284   :  { %v1861_v13 = vsel %vm313_vm0, %v7821_v50, %v1829_v40  ;;  %v1871_v50 = vsel %vm313_vm0, %v1791_v43, %v1839_v1  ;;  %v6550_v56 = vmul.f32 %v1857_v27, %v1711_v39  ;;  %v6552_v23 = vmul.f32 %v1859_v52, %v1713_v28 }
 0x285   :  { %v1759_v14 = vsel %vm313_vm0, %v7822_v6, %v7807_v41  ;;  %v6554_v42 = vmul.f32 %v1861_v13, %v1715_v33  ;;  %v6556_v58 = vmul.f32 %v1863_v32, %v1717_v34  ;;  %v6558_v61 = vmul.f32 %v1865_v59, %v1719_v25 }
 0x286   :  { %v6560_v49 = vmul.f32 %v1867_v2, %v1721_v16  ;;  %v6562_v4 = vmul.f32 %v1869_v0, %v1723_v36  ;;  %v7823_v41 = vrot.slane %v7816_v54, 7  ;;  %v7824_v39 = vrot.slane %v7818_v20, 7 }
 0x287   :  { %v7825_v33 = vrot.slane %v7820_v3, 7  ;;  %v1895_v25 = vsel %vm313_vm0, %v1831_v24, %v1783_v38  ;;  %v1897_v16 = vsel %vm313_vm0, %v1833_v51, %v1785_v22  ;;  %v1899_v36 = vsel %vm313_vm0, %v1835_v60, %v1787_v18 }
 0x288   :  { %v1889_v6 = vsel %vm313_vm0, %v1825_v26, %v7823_v41  ;;  %v1891_v28 = vsel %vm313_vm0, %v1827_v21, %v7824_v39  ;;  %v1901_v26 = vsel %vm313_vm0, %v1837_v10, %v1789_v12  ;;  %v1903_v21 = vsel %vm313_vm0, %v1839_v1, %v1791_v43 }
 0x289   :  { %v1893_v34 = vsel %vm313_vm0, %v1829_v40, %v7825_v33  ;;  %v6586_v54 = vmul.f32 %v1889_v6, %v1745_v5  ;;  %v6588_v27 = vmul.f32 %v1891_v28, %v1747_v17  ;;  %v6592_v20 = vmul.f32 %v1895_v25, %v1751_v53 }
 0x28a   :  { %v6590_v40 = vmul.f32 %v1893_v34, %v1749_v35  ;;  %v6594_v24 = vmul.f32 %v1897_v16, %v1753_v31  ;;  %v6596_v22 = vmul.f32 %v1899_v36, %v1755_v9  ;;  %v6598_v38 = vmul.f32 %v1871_v50, %v1725_v62 }
 0x28b   :  { %v6600_v18 = vmul.f32 %v1901_v26, %v1757_v30  ;;  %v6602_v10 = vmul.f32 %v1903_v21, %v1759_v14  ;;  %v7826_v43 = vrot.slane %v5484_v55, 1  ;;  %v7827_v17 = vrot.slane %v5484_v55, 2 }
 0x28c   :  { %v7828_v62 = vrot.slane %v5484_v55, 3  ;;  %v7829_v31 = vrot.slane %v5484_v55, 4  ;;  %v7830_v30 = vrot.slane %v5484_v55, 5  ;;  %v7831_v51 = vrot.slane %v5484_v55, 6 }
 0x28d   :  { %v1957_v5 = vsel %vm313_vm0, %v7826_v43, %v6100_v44  ;;  %v1959_v35 = vsel %vm313_vm0, %v7827_v17, %v6103_v11  ;;  %v7832_v1 = vrot.slane %v5484_v55, 7  ;;  %v7236_v3 = vrot.slane %v6586_v54, 7 }
 0x28e   :  { %v1961_v53 = vsel %vm313_vm0, %v7828_v62, %v6106_v47  ;;  %v1963_v9 = vsel %vm313_vm0, %v7829_v31, %v6109_v15  ;;  %v1965_v12 = vsel %vm313_vm0, %v7830_v30, %v6112_v45  ;;  %v1967_v60 = vsel %vm313_vm0, %v7831_v51, %v6115_v19 }
 0x28f   :  { %v1969_v52 = vsel %vm313_vm0, %v7832_v1, %v6118_v63  ;;  %v7234_v13 = vrot.slane %v6588_v27, 7  ;;  %v7232_v32 = vrot.slane %v6590_v40, 7  ;;  %v7230_v59 = vrot.slane %v6592_v20, 7 }
 0x290   :  { %v7224_v2 = vrot.slane %v6594_v24, 7  ;;  %v7223_v14 = vrot.slane %v6596_v22, 7  ;;  %v7226_v0 = vrot.slane %v6600_v18, 7  ;;  %v7229_v50 = vrot.slane %v6602_v10, 7 }
 0x291   :  { %v7235_v41 = vrot.slane %v6550_v56, 7  ;;  %v7233_v6 = vrot.slane %v6552_v23, 7  ;;  %v7231_v39 = vrot.slane %v6554_v42, 7  ;;  %v7227_v28 = vrot.slane %v6556_v58, 7 }
 0x292   :  { %v7221_v33 = vrot.slane %v6558_v61, 7  ;;  %v7222_v34 = vrot.slane %v6560_v49, 7  ;;  %v7225_v25 = vrot.slane %v6562_v4, 7  ;;  %v7228_v16 = vrot.slane %v6598_v38, 7 }
 0x293   :  { %v2103_v36 = vsel %vm313_vm0, %v7236_v3, %v7235_v41  ;;  %v2105_v26 = vsel %vm313_vm0, %v7234_v13, %v7233_v6  ;;  %v2107_v21 = vsel %vm313_vm0, %v7232_v32, %v7231_v39  ;;  %v2109_v43 = vsel %vm313_vm0, %v7230_v59, %v7227_v28  ;;  %v7850_v13 = vld [vmem:[#allocation36_spill] sm:$0xff] }
 0x294   :  { %v2111_v17 = vsel %vm313_vm0, %v7224_v2, %v7221_v33  ;;  %v2113_v62 = vsel %vm313_vm0, %v7223_v14, %v7222_v34  ;;  %v2115_v31 = vsel %vm313_vm0, %v7226_v0, %v7225_v25  ;;  %v2117_v30 = vsel %vm313_vm0, %v7229_v50, %v7228_v16  ;;  %v2416_v25 = vld [vmem:[#allocation8 + $0x1e8] sm:$0xff]  ;;  %v2418_v0 = vld [vmem:[#allocation8 + $0x1f8] sm:$0xff] }
 0x295   :  { %v6703_v51 = vmul.f32 %v2103_v36, %v1957_v5  ;;  %v6705_v1 = vmul.f32 %v2105_v26, %v1959_v35  ;;  %v6707_v33 = vmul.f32 %v2107_v21, %v1961_v53  ;;  %v6709_v34 = vmul.f32 %v2109_v43, %v1963_v9  ;;  %v2415_v53 = vld [vmem:[#allocation8 + $0x1e0] sm:$0xff]  ;;  %v2417_v9 = vld [vmem:[#allocation8 + $0x1f0] sm:$0xff] }
 0x296   :  { %v6711_v14 = vmul.f32 %v2111_v17, %v1965_v12  ;;  %v6713_v2 = vmul.f32 %v2113_v62, %v1967_v60  ;;  %v1971_v28 = vsel %vm313_vm0, %v5484_v55, %v6072_v8  ;;  %v6719_v16 = vmul.f32 %v2115_v31, %v1969_v52  ;;  %v2552_v21 = vld [vmem:[#allocation10] sm:$0xff]  ;;  %v2554_v43 = vld [vmem:[#allocation10 + $0x10] sm:$0xff] }
 0x297   :  { %7833 = vst [vmem:[#allocation19_spill] sm:$0xff] %v6707_v33  ;;  %7834 = vst [vmem:[#allocation56_spill] sm:$0xff] %v6709_v34  ;;  %v2247_v5 = vrot.slane %v6703_v51, 7  ;;  %v2248_v35 = vrot.slane %v6705_v1, 6  ;;  %v6723_v36 = vmul.f32 %v2117_v30, %v1971_v28  ;;  %v2251_v12 = vrot.slane %v6707_v33, 5 }
 0x298   :  { %7835 = vst [vmem:[#allocation26_spill] sm:$0xff] %v6711_v14  ;;  %7836 = vst [vmem:[#allocation54_spill] sm:$0xff] %v6713_v2  ;;  %v2254_v60 = vrot.slane %v6709_v34, 4  ;;  %v2257_v26 = vrot.slane %v6711_v14, 3  ;;  %v2260_v52 = vrot.slane %v6713_v2, 2  ;;  %v2263_v17 = vrot.slane %v6719_v16, 1 }
 0x299   :  { %7837 = vst [vmem:[#allocation58_spill] sm:$0xff] %v6719_v16  ;;  %7838 = vst [vmem:[#allocation39_spill] sm:$0xff] %v6723_v36  ;;  %v2250_v55 = vsel %vm2249_vm2, %v2248_v35, %v2247_v5  ;;  %v3033_v62 = vpack.c.bf16 %v2418_v0, %v2416_v25  ;;  %v3035_v50 = vpack.c.bf16 %v2417_v9, %v2415_v53  ;;  %v1980_v28 = vrot.slane %v5561_v29, 5  ;;  %v7862_v2 = vld [vmem:[#allocation29_spill] sm:$0xff]  ;;  %v7868_v34 = vld [vmem:[#allocation74_spill] sm:$0xff] }
 0x29a   :  { %v2253_v31 = vsel %vm2252_vm3, %v2251_v12, %v2250_v55  ;;  %v1981_v30 = vrot.slane %v5561_v29, 6  ;;  %v3039_v39 = vpack.c.bf16 %v2554_v43, %v2552_v21  ;;  %v1982_v32 = vrot.slane %v5561_v29, 7 }
 0x29b   :  { %v2256_v59 = vsel %vm2255_vm4, %v2254_v60, %v2253_v31  ;;  %3034 = vmatprep.subr.bf16.mxu1 %v3033_v62  ;;  %v7839_v5 = vrot.slane %v5561_v29, 1  ;;  %v7840_v25 = vrot.slane %v5561_v29, 2  ;;  %v7841_v9 = vrot.slane %v5561_v29, 3 }
 0x29c   :  { %v2259_v0 = vsel %vm2258_vm5, %v2257_v26, %v2256_v59  ;;  %3036 = vmatpush1.bf16.msra.mxu1 %v3035_v50  ;;  %v7842_v60 = vrot.slane %v5561_v29, 4  ;;  %v2000_v50 = vsel %vm314_vm1, %v1980_v28, %v6112_v45  ;;  %v2002_v26 = vsel %vm314_vm1, %v1981_v30, %v6115_v19 }
 0x29d   :  { %v1992_v35 = vsel %vm314_vm1, %v7839_v5, %v6100_v44  ;;  %v1994_v53 = vsel %vm314_vm1, %v7840_v25, %v6103_v11  ;;  %v1996_v12 = vsel %vm314_vm1, %v7841_v9, %v6106_v47  ;;  %v2262_v59 = vsel %vm2261_vm6, %v2260_v52, %v2259_v0  ;;  %v7846_v25 = vld [vmem:[#allocation53_spill] sm:$0xff] }
 0x29e   :  { %v1998_v21 = vsel %vm314_vm1, %v7842_v60, %v6109_v15  ;;  %v2004_v43 = vsel %vm314_vm1, %v1982_v32, %v6118_v63  ;;  %v2265_v55 = vsel %vm2264_vm7, %v2263_v17, %v2262_v59  ;;  %v2006_v62 = vsel %vm314_vm1, %v5561_v29, %v6072_v8  ;;  %v7848_v59 = vld [vmem:[#allocation68_spill] sm:$0xff] }
 0x29f   :  { %v7843_v52 = vrot.slane %v6078_v7, 7  ;;  %v7844_v31 = vrot.slane %v6040_v37, 7  ;;  %v7845_v0 = vrot.slane %v6080_v48, 7  ;;  %v7847_v9 = vrot.slane %v7846_v25, 7  ;;  %v7852_v7 = vld [vmem:[#allocation70_spill] sm:$0xff]  ;;  %v7856_v25 = vld [vmem:[#allocation71_spill] sm:$0xff] }
 0x2a0   :  { %v2267_v17 = vsel %vm2266_vm8, %v6723_v36, %v2265_v55  ;;  %v7849_v6 = vrot.slane %v7848_v59, 7  ;;  %v7851_v41 = vrot.slane %v7850_v13, 7  ;;  %v7853_v3 = vrot.slane %v7852_v7, 7  ;;  %v7860_v59 = vld [vmem:[#allocation72_spill] sm:$0xff] }
 0x2a1   :  { %v2136_v5 = vsel %vm314_vm1, %v7844_v31, %v7843_v52  ;;  %v2138_v60 = vsel %vm314_vm1, %v7847_v9, %v7845_v0  ;;  %v7854_v52 = vld [vmem:[#allocation38_spill] sm:$0xff]  ;;  %v7857_v16 = vrot.slane %v7856_v25, 7  ;;  %v7858_v0 = vld [vmem:[#allocation45_spill] sm:$0xff]  ;;  %2349 = vmatmul.mubr.f32.vlgmr.msra.gmra.mrb[0].mxu0 %v2267_v17  ;;  %v7861_v13 = vrot.slane %v7860_v59, 7  ;;  %v2557_v59 = vld [vmem:[#allocation10 + $0x28] sm:$0xff] }
 0x2a2   :  { %v2140_v37 = vsel %vm314_vm1, %v7851_v41, %v7849_v6  ;;  %v7855_v31 = vrot.slane %v7854_v52, 7  ;;  %v7859_v9 = vrot.slane %v7858_v0, 7  ;;  %v7863_v36 = vrot.slane %v7862_v2, 7  ;;  %v7864_v6 = vld [vmem:[#allocation73_spill] sm:$0xff]  ;;  %v7866_v52 = vld [vmem:[#allocation64_spill] sm:$0xff]  ;;  %3040 = vmatpush1.bf16.msra.mxu0 %v3039_v39 }
 0x2a3   :  { %v7865_v7 = vrot.slane %v7864_v6, 7  ;;  %v7867_v14 = vrot.slane %v7866_v52, 7  ;;  %v2154_v25 = vmul.f32 %v2138_v60, %v1994_v53  ;;  %v2156_v0 = vmul.f32 %v2140_v37, %v1996_v12  ;;  %v2559_v2 = vld [vmem:[#allocation10 + $0x38] sm:$0xff] }
 0x2a4   :  { %v2142_v48 = vsel %vm314_vm1, %v7855_v31, %v7853_v3  ;;  %v2144_v55 = vsel %vm314_vm1, %v7859_v9, %v7857_v16  ;;  %v2146_v41 = vsel %vm314_vm1, %v7863_v36, %v7861_v13  ;;  %v2152_v31 = vmul.f32 %v2136_v5, %v1992_v35  ;;  %v7870_v36 = vld [vmem:[#allocation66_spill] sm:$0xff] }
 0x2a5   :  { %v2148_v3 = vsel %vm314_vm1, %v7867_v14, %v7865_v7  ;;  %v2158_v16 = vmul.f32 %v2142_v48, %v1998_v21  ;;  %v2160_v17 = vmul.f32 %v2144_v55, %v2000_v50  ;;  %v6816_v9 = vmul.f32 %v2146_v41, %v2002_v26 }
 0x2a6   :  { %v7869_v33 = vrot.slane %v7868_v34, 7  ;;  %v7871_v13 = vrot.slane %v7870_v36, 7  ;;  %v6824_v52 = vmul.f32 %v2148_v3, %v2004_v43  ;;  %v2449_v14 = vrot.slane %v2152_v31, 7 }
 0x2a7   :  { %v2450_v35 = vrot.slane %v2154_v25, 6  ;;  %v2452_v39 = vrot.slane %v2156_v0, 5  ;;  %v2454_v21 = vrot.slane %v2158_v16, 4  ;;  %v2456_v50 = vrot.slane %v2160_v17, 3 }
 0x2a8   :  { %v2150_v6 = vsel %vm314_vm1, %v7871_v13, %v7869_v33  ;;  %v3041_v26 = vpack.c.bf16 %v2559_v2, %v2557_v59  ;;  %v2458_v34 = vrot.slane %v6816_v9, 2  ;;  %v2460_v60 = vrot.slane %v6824_v52, 1 }
 0x2a9   :  { %v6826_v53 = vmul.f32 %v2150_v6, %v2006_v62  ;;  %v2451_v12 = vsel %vm2249_vm2, %v2450_v35, %v2449_v14  ;;  %v1991_v33 = vsel %vm313_vm0, %v7872_v57, %v6100_v44  ;;  %v7873_v62 = vrot.slane %v5561_v29, 2 }
 0x2aa   :  { %v2453_v5 = vsel %vm2252_vm3, %v2452_v39, %v2451_v12  ;;  %3042 = vmatprep.subr.bf16.mxu0 %v3041_v26  ;;  %v7874_v48 = vrot.slane %v5561_v29, 3  ;;  %v7875_v41 = vrot.slane %v5561_v29, 4  ;;  %v1999_v3 = vsel %vm313_vm0, %v1980_v28, %v6112_v45  ;;  %v2556_v26 = vld [vmem:[#allocation10 + $0x20] sm:$0xff] }
 0x2ab   :  { %v2455_v43 = vsel %vm2255_vm4, %v2454_v21, %v2453_v5  ;;  %v1993_v37 = vsel %vm313_vm0, %v7873_v62, %v6103_v11  ;;  %v2001_v11 = vsel %vm313_vm0, %v1981_v30, %v6115_v19  ;;  %v7876_v2 = vrot.slane %v6586_v54, 7  ;;  %v2558_v5 = vld [vmem:[#allocation10 + $0x30] sm:$0xff] }
 0x2ac   :  { %v1995_v55 = vsel %vm313_vm0, %v7874_v48, %v6106_v47  ;;  %v1997_v44 = vsel %vm313_vm0, %v7875_v41, %v6109_v15  ;;  %v2457_v7 = vsel %vm2258_vm5, %v2456_v50, %v2455_v43  ;;  %v2003_v47 = vsel %vm313_vm0, %v1982_v32, %v6118_v63 }
 0x2ad   :  { %v2459_v59 = vsel %vm2261_vm6, %v2458_v34, %v2457_v7  ;;  %v7877_v15 = vrot.slane %v6550_v56, 7  ;;  %v7878_v13 = vrot.slane %v6588_v27, 7  ;;  %v7879_v45 = vrot.slane %v6552_v23, 7 }
 0x2ae   :  { %v7880_v28 = vrot.slane %v6590_v40, 7  ;;  %v7881_v63 = vrot.slane %v6554_v42, 7  ;;  %v2461_v54 = vsel %vm2264_vm7, %v2460_v60, %v2459_v59  ;;  %v7882_v56 = vrot.slane %v6592_v20, 7  ;;  %v7896_v59 = vld [vmem:[#allocation79_spill] sm:$0xff] }
 0x2af   :  { %v2135_v36 = vsel %vm313_vm0, %v7877_v15, %v7876_v2  ;;  %v2137_v19 = vsel %vm313_vm0, %v7879_v45, %v7878_v13  ;;  %v7883_v30 = vrot.slane %v6556_v58, 7  ;;  %v7884_v23 = vrot.slane %v6594_v24, 7  ;;  %v7897_v13 = vld [vmem:[#allocation80_spill] sm:$0xff]  ;;  %v2561_v45 = vld [vmem:[#allocation10 + $0x48] sm:$0xff] }
 0x2b0   :  { %v2139_v32 = vsel %vm313_vm0, %v7881_v63, %v7880_v28  ;;  %v7885_v6 = vrot.slane %v6558_v61, 7  ;;  %v7886_v42 = vrot.slane %v6596_v22, 7  ;;  %v7887_v14 = vrot.slane %v6560_v49, 7 }
 0x2b1   :  { %v2141_v27 = vsel %vm313_vm0, %v7883_v30, %v7882_v56  ;;  %v2462_v58 = vsel %vm2266_vm8, %v6826_v53, %v2461_v54  ;;  %v6903_v20 = vmul.f32 %v2135_v36, %v1991_v33  ;;  %v6905_v39 = vmul.f32 %v2137_v19, %v1993_v37  ;;  %v2560_v19 = vld [vmem:[#allocation10 + $0x40] sm:$0xff]  ;;  %v2567_v54 = vld [vmem:[#allocation10 + $0x78] sm:$0xff] }
 0x2b2   :  { %v2143_v40 = vsel %vm313_vm0, %v7885_v6, %v7884_v23  ;;  %v2145_v35 = vsel %vm313_vm0, %v7887_v14, %v7886_v42  ;;  %v6907_v24 = vmul.f32 %v2139_v32, %v1995_v55  ;;  %2529 = vmatprep.mubr.f32.mxu1 %v2462_v58  ;;  %v7888_v61 = vrot.slane %v6600_v18, 7  ;;  %v2562_v32 = vld [vmem:[#allocation10 + $0x50] sm:$0xff] }
 0x2b3   :  { %v7889_v12 = vrot.slane %v6562_v4, 7  ;;  %v6915_v22 = vmul.f32 %v2141_v27, %v1997_v44  ;;  %v6917_v21 = vmul.f32 %v2143_v40, %v1999_v3  ;;  %v6919_v50 = vmul.f32 %v2145_v35, %v2001_v11  ;;  %v7892_v44 = vld [vmem:[#allocation75_spill] sm:$0xff]  ;;  %v7893_v3 = vld [vmem:[#allocation76_spill] sm:$0xff]  ;;  %v7898_v27 = vld [vmem:[#allocation81_spill] sm:$0xff] }
 0x2b4   :  { %v2435_v60 = vrot.slane %v6903_v20, 7  ;;  %v2436_v57 = vrot.slane %v6905_v39, 6  ;;  %v2438_v18 = vrot.slane %v6907_v24, 5  ;;  %v2005_v4 = vsel %vm313_vm0, %v5561_v29, %v6072_v8  ;;  %v7894_v8 = vld [vmem:[#allocation77_spill] sm:$0xff]  ;;  %v2564_v35 = vld [vmem:[#allocation10 + $0x60] sm:$0xff]  ;;  %v2566_v58 = vld [vmem:[#allocation10 + $0x70] sm:$0xff] }
 0x2b5   :  { %v2147_v49 = vsel %vm313_vm0, %v7889_v12, %v7888_v61  ;;  %v7890_v33 = vrot.slane %v6602_v10, 7  ;;  %v7891_v43 = vrot.slane %v6598_v38, 7  ;;  %v2440_v37 = vrot.slane %v6915_v22, 4 }
 0x2b6   :  { %v6921_v34 = vmul.f32 %v2147_v49, %v2003_v47  ;;  %v2442_v48 = vrot.slane %v6917_v21, 3  ;;  %v2437_v55 = vsel %vm2249_vm2, %v2436_v57, %v2435_v60  ;;  %v3043_v41 = vpack.c.bf16 %v2558_v5, %v2556_v26  ;;  %v7895_v47 = vld [vmem:[#allocation78_spill] sm:$0xff]  ;;  %v2569_v5 = vld [vmem:[#allocation10 + $0x88] sm:$0xff]  ;;  %v2571_v60 = vld [vmem:[#allocation10 + $0x98] sm:$0xff] }
 0x2b7   :  { %v2149_v62 = vsel %vm313_vm0, %v7891_v43, %v7890_v33  ;;  %v2537_v7 = vadd.f32 %v2152_v31, %v7892_v44  ;;  %v2539_v11 = vadd.f32 %v2154_v25, %v7893_v3  ;;  %v2439_v29 = vsel %vm2252_vm3, %v2438_v18, %v2437_v55  ;;  %v2563_v25 = vld [vmem:[#allocation10 + $0x58] sm:$0xff]  ;;  %v7899_v43 = vld [vmem:[#allocation82_spill] sm:$0xff] }
 0x2b8   :  { %v2541_v10 = vadd.f32 %v2156_v0, %v7894_v8  ;;  %v2543_v38 = vadd.f32 %v2158_v16, %v7895_v47  ;;  %v2545_v46 = vadd.f32 %v2160_v17, %v7896_v59  ;;  %v2441_v2 = vsel %vm2255_vm4, %v2440_v37, %v2439_v29  ;;  %3044 = vmatpush1.bf16.msra.mxu0 %v3043_v41  ;;  %v2565_v17 = vld [vmem:[#allocation10 + $0x68] sm:$0xff]  ;;  %v2568_v55 = vld [vmem:[#allocation10 + $0x80] sm:$0xff]  ;;  %v2570_v41 = vld [vmem:[#allocation10 + $0x90] sm:$0xff] }
 0x2b9   :  { %v2444_v15 = vrot.slane %v6919_v50, 2  ;;  %v2446_v36 = vrot.slane %v6921_v34, 1  ;;  %v2547_v31 = vadd.f32 %v6816_v9, %v7897_v13  ;;  %v2443_v28 = vsel %vm2258_vm5, %v2442_v48, %v2441_v2  ;;  %v2575_v3 = vld [vmem:[#allocation10 + $0xb8] sm:$0xff]  ;;  %v2572_v8 = vld [vmem:[#allocation10 + $0xa0] sm:$0xff]  ;;  %v2574_v47 = vld [vmem:[#allocation10 + $0xb0] sm:$0xff] }
 0x2ba   :  { %v2646_v0 = vrot.slane %v2537_v7, 7  ;;  %v2647_v63 = vrot.slane %v2539_v11, 6  ;;  %v2649_v16 = vrot.slane %v2541_v10, 5  ;;  %v2165_v56 = vmul.f32 %v2149_v62, %v2005_v4  ;;  %v2573_v7 = vld [vmem:[#allocation10 + $0xa8] sm:$0xff] }
 0x2bb   :  { %v2445_v30 = vsel %vm2261_vm6, %v2444_v15, %v2443_v28  ;;  %v2549_v23 = vadd.f32 %v6824_v52, %v7898_v27  ;;  %v2651_v6 = vrot.slane %v2543_v38, 4  ;;  %v2653_v42 = vrot.slane %v2545_v46, 3  ;;  %v2579_v38 = vld [vmem:[#allocation10 + $0xd8] sm:$0xff]  ;;  %v7900_v2 = vld [vmem:[#allocation19_spill] sm:$0xff] }
 0x2bc   :  { %v2447_v9 = vsel %vm2264_vm7, %v2446_v36, %v2445_v30  ;;  %v2648_v40 = vsel %vm2249_vm2, %v2647_v63, %v2646_v0  ;;  %v3045_v14 = vpack.c.bf16 %v2563_v25, %v2561_v45  ;;  %v3047_v49 = vpack.c.bf16 %v2562_v32, %v2560_v19  ;;  %v7901_v36 = vld [vmem:[#allocation56_spill] sm:$0xff]  ;;  %v7902_v25 = vld [vmem:[#allocation26_spill] sm:$0xff]  ;;  %v7903_v28 = vld [vmem:[#allocation39_spill] sm:$0xff] }
 0x2bd   :  { %v2448_v61 = vsel %vm2266_vm8, %v2165_v56, %v2447_v9  ;;  %v2650_v12 = vsel %vm2252_vm3, %v2649_v16, %v2648_v40  ;;  %v3049_v26 = vpack.c.bf16 %v2567_v54, %v2565_v17  ;;  %v2655_v57 = vrot.slane %v2547_v31, 2  ;;  %v2576_v63 = vld [vmem:[#allocation10 + $0xc0] sm:$0xff]  ;;  %v2581_v32 = vld [vmem:[#allocation10 + $0xe8] sm:$0xff]  ;;  %v2583_v17 = vld [vmem:[#allocation10 + $0xf8] sm:$0xff] }
 0x2be   :  { %2530 = vmatmul.mubr.f32.vlgmr.msra.gmra.mrb[0].mxu1 %v2448_v61  ;;  %v2652_v52 = vsel %vm2255_vm4, %v2651_v6, %v2650_v12  ;;  %3046 = vmatprep.subr.bf16.mxu0 %v3045_v14  ;;  %v2657_v4 = vrot.slane %v2549_v23, 1  ;;  %v3051_v33 = vpack.c.bf16 %v2566_v58, %v2564_v35  ;;  %v2551_v62 = vadd.f32 %v6826_v53, %v7899_v43  ;;  %v2577_v53 = vld [vmem:[#allocation10 + $0xc8] sm:$0xff]  ;;  %v2580_v9 = vld [vmem:[#allocation10 + $0xe0] sm:$0xff]  ;;  %v2587_v35 = vld [vmem:[#allocation10 + $0x118] sm:$0xff] }
 0x2bf   :  { %v2654_v18 = vsel %vm2258_vm5, %v2653_v42, %v2652_v52  ;;  %3048 = vmatpush1.bf16.msra.mxu0 %v3047_v49  ;;  %v3053_v48 = vpack.c.bf16 %v2571_v60, %v2569_v5  ;;  %v3055_v29 = vpack.c.bf16 %v2570_v41, %v2568_v55  ;;  %v3057_v10 = vpack.c.bf16 %v2575_v3, %v2573_v7  ;;  %v2585_v14 = vld [vmem:[#allocation10 + $0x108] sm:$0xff]  ;;  %v2584_v5 = vld [vmem:[#allocation10 + $0x100] sm:$0xff]  ;;  %v2586_v60 = vld [vmem:[#allocation10 + $0x110] sm:$0xff] }
 0x2c0   :  { %v2656_v37 = vsel %vm2261_vm6, %v2655_v57, %v2654_v18  ;;  %3050 = vmatprep.subr.bf16.mxu0 %v3049_v26  ;;  %v2536_v59 = vadd.f32 %v6903_v20, %v6703_v51  ;;  %v2538_v46 = vadd.f32 %v6905_v39, %v6705_v1  ;;  %v2540_v15 = vadd.f32 %v6907_v24, %v7900_v2  ;;  %v2578_v51 = vld [vmem:[#allocation10 + $0xd0] sm:$0xff]  ;;  %v7904_v20 = vld [vmem:[#allocation54_spill] sm:$0xff]  ;;  %v2589_v57 = vld [vmem:[#allocation10 + $0x128] sm:$0xff] }
 0x2c1   :  { %v2658_v44 = vsel %vm2264_vm7, %v2657_v4, %v2656_v37  ;;  %v2542_v13 = vadd.f32 %v6915_v22, %v7901_v36  ;;  %v3059_v31 = vpack.c.bf16 %v2574_v47, %v2572_v8  ;;  %v3061_v45 = vpack.c.bf16 %v2579_v38, %v2577_v53  ;;  %v7905_v22 = vld [vmem:[#allocation58_spill] sm:$0xff]  ;;  %v2591_v18 = vld [vmem:[#allocation10 + $0x138] sm:$0xff]  ;;  %v2593_v37 = vld [vmem:[#allocation10 + $0x148] sm:$0xff] }
 0x2c2   :  { %v2659_v11 = vsel %vm2266_vm8, %v2551_v62, %v2658_v44  ;;  %v2544_v19 = vadd.f32 %v6917_v21, %v7902_v25  ;;  %v2550_v0 = vadd.f32 %v2165_v56, %v7903_v28  ;;  %v2546_v1 = vadd.f32 %v6919_v50, %v7904_v20  ;;  %v2582_v50 = vld [vmem:[#allocation10 + $0xf0] sm:$0xff]  ;;  %v2588_v43 = vld [vmem:[#allocation10 + $0x120] sm:$0xff]  ;;  %v2597_v3 = vld [vmem:[#allocation10 + $0x168] sm:$0xff] }
 0x2c3   :  { %2726 = vmatprep.mubr.f32.mxu0 %v2659_v11  ;;  %3052 = vmatpush1.bf16.msra.mxu0 %v3051_v33  ;;  %v2632_v39 = vrot.slane %v2536_v59, 7  ;;  %v2633_v16 = vrot.slane %v2538_v46, 6  ;;  %v2635_v24 = vrot.slane %v2540_v15, 5  ;;  %v2548_v54 = vadd.f32 %v6921_v34, %v7905_v22  ;;  %v2590_v62 = vld [vmem:[#allocation10 + $0x130] sm:$0xff]  ;;  %v2592_v44 = vld [vmem:[#allocation10 + $0x140] sm:$0xff]  ;;  %v2599_v11 = vld [vmem:[#allocation10 + $0x178] sm:$0xff] }
 0x2c4   :  { %3054 = vmatprep.subr.bf16.mxu0 %v3053_v48  ;;  %v2637_v27 = vrot.slane %v2542_v13, 4  ;;  %v3063_v21 = vpack.c.bf16 %v2578_v51, %v2576_v63  ;;  %v2639_v23 = vrot.slane %v2544_v19, 3  ;;  %v3065_v6 = vpack.c.bf16 %v2583_v17, %v2581_v32  ;;  %v2595_v48 = vld [vmem:[#allocation10 + $0x158] sm:$0xff]  ;;  %v2594_v7 = vld [vmem:[#allocation10 + $0x150] sm:$0xff]  ;;  %v2601_v53 = vld [vmem:[#allocation10 + $0x188] sm:$0xff] }
 0x2c5   :  { %v2634_v30 = vsel %vm2249_vm2, %v2633_v16, %v2632_v39  ;;  %v2641_v42 = vrot.slane %v2546_v1, 2  ;;  %v2643_v34 = vrot.slane %v2548_v54, 1  ;;  %v3067_v12 = vpack.c.bf16 %v2582_v50, %v2580_v9  ;;  %v2598_v47 = vld [vmem:[#allocation10 + $0x170] sm:$0xff]  ;;  %v2603_v38 = vld [vmem:[#allocation10 + $0x198] sm:$0xff]  ;;  %v2600_v2 = vld [vmem:[#allocation10 + $0x180] sm:$0xff] }
 0x2c6   :  { %v2636_v56 = vsel %vm2252_vm3, %v2635_v24, %v2634_v30  ;;  %v3069_v26 = vpack.c.bf16 %v2587_v35, %v2585_v14  ;;  %v3071_v4 = vpack.c.bf16 %v2586_v60, %v2584_v5  ;;  %v3073_v33 = vpack.c.bf16 %v2591_v18, %v2589_v57  ;;  %v2602_v15 = vld [vmem:[#allocation10 + $0x190] sm:$0xff]  ;;  %v2605_v36 = vld [vmem:[#allocation10 + $0x1a8] sm:$0xff]  ;;  %v2607_v13 = vld [vmem:[#allocation10 + $0x1b8] sm:$0xff] }
 0x2c7   :  { %3056 = vmatpush1.bf16.msra.mxu0 %v3055_v29  ;;  %v2638_v40 = vsel %vm2255_vm4, %v2637_v27, %v2636_v56  ;;  %v3075_v55 = vpack.c.bf16 %v2590_v62, %v2588_v43  ;;  %v3077_v41 = vpack.c.bf16 %v2595_v48, %v2593_v37  ;;  %v3079_v29 = vpack.c.bf16 %v2594_v7, %v2592_v44  ;;  %v2604_v25 = vld [vmem:[#allocation10 + $0x1a0] sm:$0xff]  ;;  %v2606_v19 = vld [vmem:[#allocation10 + $0x1b0] sm:$0xff]  ;;  %v2609_v28 = vld [vmem:[#allocation10 + $0x1c8] sm:$0xff] }
 0x2c8   :  { %3058 = vmatprep.subr.bf16.mxu0 %v3057_v10  ;;  %v2640_v58 = vsel %vm2258_vm5, %v2639_v23, %v2638_v40  ;;  %v3081_v8 = vpack.c.bf16 %v2599_v11, %v2597_v3  ;;  %v2596_v10 = vld [vmem:[#allocation10 + $0x160] sm:$0xff]  ;;  %v3085_v46 = vpack.c.bf16 %v2603_v38, %v2601_v53  ;;  %v3091_v63 = vpack.c.bf16 %v2606_v19, %v2604_v25  ;;  %v2610_v1 = vld [vmem:[#allocation10 + $0x1d0] sm:$0xff]  ;;  %v2613_v39 = vld [vmem:[#allocation10 + $0x1e8] sm:$0xff] }
 0x2c9   :  { %v2642_v61 = vsel %vm2261_vm6, %v2641_v42, %v2640_v58  ;;  %v3083_v59 = vpack.c.bf16 %v2598_v47, %v2596_v10  ;;  %v2608_v20 = vld [vmem:[#allocation10 + $0x1c0] sm:$0xff]  ;;  %v2615_v16 = vld [vmem:[#allocation10 + $0x1f8] sm:$0xff]  ;;  %v2614_v22 = vld [vmem:[#allocation10 + $0x1f0] sm:$0xff] }
 0x2ca   :  { %v2644_v49 = vsel %vm2264_vm7, %v2643_v34, %v2642_v61  ;;  %v3095_v24 = vpack.c.bf16 %v2610_v1, %v2608_v20  ;;  %v3097_v32 = vpack.c.bf16 %v2615_v16, %v2613_v39  ;;  %v2612_v17 = vld [vmem:[#allocation10 + $0x1e0] sm:$0xff]  ;;  %v2762_v27 = vld [vmem:[#allocation11 + $0x88] sm:$0xff]  ;;  %v2764_v9 = vld [vmem:[#allocation11 + $0x98] sm:$0xff] }
 0x2cb   :  { %3060 = vmatpush1.bf16.msra.mxu0 %v3059_v31  ;;  %v2645_v52 = vsel %vm2266_vm8, %v2550_v0, %v2644_v49  ;;  %v3087_v31 = vpack.c.bf16 %v2602_v15, %v2600_v2  ;;  %v2611_v0 = vld [vmem:[#allocation10 + $0x1d8] sm:$0xff]  ;;  %v3099_v54 = vpack.c.bf16 %v2614_v22, %v2612_v17  ;;  %v2761_v30 = vld [vmem:[#allocation11 + $0x80] sm:$0xff]  ;;  %v2746_v23 = vld [vmem:[#allocation11 + $0x8] sm:$0xff] }
 0x2cc   :  { %3062 = vmatprep.subr.bf16.mxu0 %v3061_v45  ;;  %v3089_v45 = vpack.c.bf16 %v2607_v13, %v2605_v36  ;;  %v3093_v51 = vpack.c.bf16 %v2611_v0, %v2609_v28  ;;  %v3101_v56 = vpack.c.bf16 %v2762_v27, %v2761_v30  ;;  %v2747_v42 = vld [vmem:[#allocation11 + $0x10] sm:$0xff]  ;;  %v2748_v14 = vld [vmem:[#allocation11 + $0x18] sm:$0xff]  ;;  %v2765_v35 = vld [vmem:[#allocation11 + $0xa0] sm:$0xff] }
 0x2cd   :  { %v2766_v58 = vld [vmem:[#allocation11 + $0xa8] sm:$0xff]  ;;  %v3107_v34 = vpack.c.bf16 %v2748_v14, %v2747_v42  ;;  %v2768_v5 = vld [vmem:[#allocation11 + $0xb8] sm:$0xff]  ;;  %v2751_v57 = vld [vmem:[#allocation11 + $0x30] sm:$0xff] }
 0x2ce   :  { %3102 = vmatprep.subr.bf16.mxu1 %v3101_v56  ;;  %v3109_v61 = vpack.c.bf16 %v2766_v58, %v2765_v35  ;;  %v2750_v49 = vld [vmem:[#allocation11 + $0x28] sm:$0xff]  ;;  %v2752_v18 = vld [vmem:[#allocation11 + $0x38] sm:$0xff]  ;;  %v2753_v37 = vld [vmem:[#allocation11 + $0x40] sm:$0xff] }
 0x2cf   :  { %3064 = vmatpush1.bf16.msra.mxu0 %v3063_v21  ;;  %v2745_v21 = vld [vmem:[#allocation11] sm:$0xff]  ;;  %v3115_v43 = vpack.c.bf16 %v2752_v18, %v2751_v57  ;;  %v2754_v48 = vld [vmem:[#allocation11 + $0x48] sm:$0xff]  ;;  %v2755_v3 = vld [vmem:[#allocation11 + $0x50] sm:$0xff] }
 0x2d0   :  { %3066 = vmatprep.subr.bf16.mxu0 %v3065_v6  ;;  %v2763_v6 = vld [vmem:[#allocation11 + $0x90] sm:$0xff]  ;;  %v3103_v50 = vpack.c.bf16 %v2746_v23, %v2745_v21  ;;  %v3119_v44 = vpack.c.bf16 %v2754_v48, %v2753_v37  ;;  %v2756_v11 = vld [vmem:[#allocation11 + $0x58] sm:$0xff]  ;;  %v2774_v10 = vld [vmem:[#allocation11 + $0xe8] sm:$0xff] }
 0x2d1   :  { %v3105_v40 = vpack.c.bf16 %v2764_v9, %v2763_v6  ;;  %v2757_v47 = vld [vmem:[#allocation11 + $0x60] sm:$0xff]  ;;  %v2758_v53 = vld [vmem:[#allocation11 + $0x68] sm:$0xff]  ;;  %v2759_v36 = vld [vmem:[#allocation11 + $0x70] sm:$0xff] }
 0x2d2   :  { %3104 = vmatpush3.bf16.msra.mxu1 %v3103_v50  ;;  %v3127_v2 = vpack.c.bf16 %v2758_v53, %v2757_v47  ;;  %v2760_v13 = vld [vmem:[#allocation11 + $0x78] sm:$0xff] }
 0x2d3   :  { %3068 = vmatpush1.bf16.msra.mxu0 %v3067_v12  ;;  %3106 = vmatprep.subr.bf16.mxu1 %v3105_v40  ;;  %v2749_v12 = vld [vmem:[#allocation11 + $0x20] sm:$0xff] }
 0x2d4   :  { %3070 = vmatprep.subr.bf16.mxu0 %v3069_v26  ;;  %v2767_v26 = vld [vmem:[#allocation11 + $0xb0] sm:$0xff]  ;;  %v3111_v60 = vpack.c.bf16 %v2750_v49, %v2749_v12 }
 0x2d6   :  { %3108 = vmatpush3.bf16.msra.mxu1 %v3107_v34 }
 0x2d7   :  { %3072 = vmatpush1.bf16.msra.mxu0 %v3071_v4  ;;  %3110 = vmatprep.subr.bf16.mxu1 %v3109_v61  ;;  %v2769_v4 = vld [vmem:[#allocation11 + $0xc0] sm:$0xff] }
 0x2d8   :  { %3074 = vmatprep.subr.bf16.mxu0 %v3073_v33  ;;  %v2770_v33 = vld [vmem:[#allocation11 + $0xc8] sm:$0xff] }
 0x2d9   :  { %v3117_v62 = vpack.c.bf16 %v2770_v33, %v2769_v4 }
 0x2da   :  { %3112 = vmatpush3.bf16.msra.mxu1 %v3111_v60 }
 0x2db   :  { %3076 = vmatpush1.bf16.msra.mxu0 %v3075_v55  ;;  %v2771_v55 = vld [vmem:[#allocation11 + $0xd0] sm:$0xff] }
 0x2dc   :  { %3078 = vmatprep.subr.bf16.mxu0 %v3077_v41  ;;  %v2772_v41 = vld [vmem:[#allocation11 + $0xd8] sm:$0xff] }
 0x2dd   :  { %v3121_v7 = vpack.c.bf16 %v2772_v41, %v2771_v55 }
 0x2df   :  { %3080 = vmatpush1.bf16.msra.mxu0 %v3079_v29  ;;  %v2773_v29 = vld [vmem:[#allocation11 + $0xe0] sm:$0xff] }
 0x2e0   :  { %3082 = vmatprep.subr.bf16.mxu0 %v3081_v8  ;;  %v3123_v8 = vpack.c.bf16 %v2756_v11, %v2755_v3  ;;  %v3125_v38 = vpack.c.bf16 %v2774_v10, %v2773_v29 }
 0x2e3   :  { %3084 = vmatpush1.bf16.msra.mxu0 %v3083_v59  ;;  %v2775_v59 = vld [vmem:[#allocation11 + $0xf0] sm:$0xff] }
 0x2e4   :  { %3086 = vmatprep.subr.bf16.mxu0 %v3085_v46  ;;  %v2776_v46 = vld [vmem:[#allocation11 + $0xf8] sm:$0xff] }
 0x2e5   :  { %v3129_v15 = vpack.c.bf16 %v2776_v46, %v2775_v59 }
 0x2e7   :  { %3088 = vmatpush1.bf16.msra.mxu0 %v3087_v31  ;;  %v3131_v31 = vpack.c.bf16 %v2760_v13, %v2759_v36 }
 0x2e8   :  { %3090 = vmatprep.subr.bf16.mxu0 %v3089_v45 }
 0x2eb   :  { %3092 = vmatpush1.bf16.msra.mxu0 %v3091_v63 }
 0x2ec   :  { %3094 = vmatprep.subr.bf16.mxu0 %v3093_v51 }
 0x2ef   :  { %3096 = vmatpush1.bf16.msra.mxu0 %v3095_v24 }
 0x2f0   :  { %3098 = vmatprep.subr.bf16.mxu0 %v3097_v32 }
 0x2f3   :  { %3100 = vmatpush1.bf16.msra.mxu0 %v3099_v54 }
 0x2f6   :  { %2727 = vmatmul.mubr.f32.vlgmr.msra.gmra.mrb[2].mxu0 %v2645_v52  ;;  %v3113_v52 = vpack.c.bf16 %v2768_v5, %v2767_v26 }
 0x2f8   :  { %3114 = vmatprep.subr.bf16.mxu1 %v3113_v52 }
 0x2f9   :  { %3116 = vmatpush3.bf16.msra.mxu1 %v3115_v43 }
 0x2fa   :  { %3118 = vmatprep.subr.bf16.mxu1 %v3117_v62 }
 0x2fd   :  { %3120 = vmatpush3.bf16.msra.mxu1 %v3119_v44 }
 0x2fe   :  { %3122 = vmatprep.subr.bf16.mxu1 %v3121_v7 }
 0x301   :  { %3124 = vmatpush3.bf16.msra.mxu1 %v3123_v8 }
 0x302   :  { %3126 = vmatprep.subr.bf16.mxu1 %v3125_v38 }
 0x305   :  { %3128 = vmatpush3.bf16.msra.mxu1 %v3127_v2 }
 0x306   :  { %3130 = vmatprep.subr.bf16.mxu1 %v3129_v15 }
 0x309   :  { %3132 = vmatpush3.bf16.msra.mxu1 %v3131_v31 }
 0x374   :  { %v2350_v45 = vpop.f32.mrb[0].mxu0 }
 0x375   :  { %v2352_v25 = vpop.f32.mrb[1].mxu0 }
 0x391   :  { %v2531_v19 = vpop.f32.mrb[0].mxu1 }
 0x392   :  { %v2733_v28 = vsub.f32 %v2350_v45, %v2531_v19  ;;  %v2533_v0 = vpop.f32.mrb[1].mxu1 }
 0x393   :  { %v2734_v63 = vsub.f32 %v2352_v25, %v2533_v0 }
 0x394   :  { %v2739_v32 = vmul.f32 %v2733_v28, %v2733_v28 }
 0x395   :  { %v2740_v22 = vmul.f32 %v2734_v63, %v2734_v63 }
 0x3c9   :  { %v2728_v51 = vpop.f32.mrb[2].mxu0 }
 0x3ca   :  { %v2735_v20 = vsub.f32 %v2728_v51, %v2350_v45  ;;  %v2730_v1 = vpop.f32.mrb[3].mxu0 }
 0x3cb   :  { %v2736_v39 = vsub.f32 %v2730_v1, %v2352_v25 }
 0x3cc   :  { %v2737_v16 = vsub.f32 %v2735_v20, %v2531_v19 }
 0x3cd   :  { %v2738_v24 = vsub.f32 %v2736_v39, %v2533_v0 }
 0x3ce   :  { %v2741_v17 = vmul.f32 %v2737_v16, %v2737_v16 }
 0x3cf   :  { %v2742_v54 = vmul.f32 %v2738_v24, %v2738_v24 }
 0x3d0   :  { %v2743_v30 = vadd.f32 %v2741_v17, %v2739_v32 }
 0x3d1   :  { %v2744_v27 = vadd.f32 %v2742_v54, %v2740_v22 }
 0x3d3   :  { %2841 = vmatprep.mubr.f32.mxu1 %v2744_v27 }
 0x3d4   :  { %2842 = vmatmul.mubr.f32.vlgmr.msra.gmra.mrb[2].mxu1 %v2743_v30 }
 0x4a7   :  { %v2906_v21 = vpop.f32.mrb[2].mxu1 }
 0x4a8   :  { %v2907_v56 = vpop.f32.mrb[3].mxu1 }
 0x4a9   :  { %v2908_v23 = vadd.f32 %v2907_v56, %v2906_v21 }
 0x4ab   :  { %2847 = vst [vmem:[#allocation13] sm:$0xff] %v2908_v23 }
 0x4ac   :  { %3332 = shalt.err (!%p3329_p10)
}
 0x4ad   :  { %s3333_s22 = scalar_lea.hbm %s7005_s6, 128 }
 0x4ae   :  { %p3334_p11 = scmp.ne.s32.totalorder %s7005_s6, %s3333_s22  ;;  %p3337_p12 = scmp.lt.u32.totalorder %s3333_s22, %s7005_s6 }
 0x4b0   :  { %p3339_p13 = pnand %p3337_p12, %p3334_p11 }
 0x4b2   :  { %3342 = shalt.err (!%p3339_p13)
}
 0x4b3   :  { %2857 = dma.vmem_to_hbm [thread:$0]  %s2855_s19, 128, %s7005_s6, [#allocation4]  }
 0x4b4   :  { %3351 = dma.done.wait [#allocation4], 128  }
 0x4b5   :  { %3352 = vsyncadd [#allocation4], 4294967168 }
 0x4b6   :  { %2861 = vsyncpa [#allocation3], 1 }
 0x4b7   :  { %2862 = vsyncpa [#allocation6], 1 }
 0x4b8   :  { %2863 = vsyncpa [#allocation9], 1 }
 0x4b9   :  { %2864 = vsyncpa [#allocation12], 1 }
 0x4ba   :  { %2865 = vsyncpa [#allocation4], 1 }

</bundles_post_ra>
